<compile_context>
chip_gen: v5e
topology: v5e:2x2
jax: 0.10.0
libtpu: 0.0.40
codegen_flags: <defaults>
</compile_context>

<pallas_src>
import functools

import numpy as np
import jax
import jax.numpy as jnp
from jax.experimental import pallas as pl
from jax.experimental.pallas import tpu as pltpu

HID_DIM = 32            # encoder hidden size (hid_dim)
D_IN = 4 * HID_DIM      # classifier input width (4 gathered embeddings)
MLP_HID = 768           # agg output width (fixed by the module)
N_CLASSES = 8           # re_cls output width (fixed by the module)
OUT_PAD = 128           # lane-dense padded output width
TM_MAX = 512            # max row tile (>= ~200 MFLOP per grid step)
TM_MIN = 128            # min row tile (MXU / (8,128) friendly)


# ----------------------------- Pallas kernel ------------------------------ #
def _re_classifier_kernel(x_ref, w1_ref, b1_ref, w2_ref, b2_ref, o_ref):
    # hidden = relu(x @ W1 + b1)   (bf16 matmul inputs, f32 accumulation)
    h = jnp.dot(x_ref[...], w1_ref[...], preferred_element_type=jnp.float32)
    # Fuse the bf16 cast into the ReLU epilogue so any spill of the (TM, 768)
    # intermediate is bf16 rather than f32 (halves vst/vld spill traffic).
    h = jnp.maximum(h + b1_ref[...], 0.0).astype(w2_ref.dtype)
    # TODO(synk): nn.Dropout(0.2) is identity in eval mode; training-mode
    # dropout cannot reproduce torch's RNG stream, so it is omitted here.
    out = jnp.dot(h, w2_ref[...], preferred_element_type=jnp.float32)
    o_ref[...] = (out + b2_ref[...]).astype(o_ref.dtype)


def _pick_tm(n_pad):
    # Biggest tile <= 512 that still leaves >= 2 grid steps when n_pad >= 256
    # (v7x has 2 TensorCores; a single-step grid leaves one idle).
    return min(TM_MAX, max(TM_MIN, n_pad // 2))


def _bucket_rows(n):
    # Bucket padded row count to powers of two (>= 128) so the number of
    # distinct traces / Mosaic compiles stays small regardless of per-call N.
    return max(TM_MIN, 1 << (max(1, int(n)) - 1).bit_length())


def _weight_spec(shape, mode):
    # Grid-invariant operand: constant index_map; optionally single-buffered.
    if mode is None:
        return pl.BlockSpec(shape, lambda i: (0, 0))
    return pl.BlockSpec(shape, lambda i: (0, 0), pipeline_mode=mode)


@functools.partial(jax.jit, static_argnames=("tm", "single_buffer_weights"))
def _re_classifier_call(x, w1, b1, w2, b2, *, tm, single_buffer_weights):
    n_pad, d_in = x.shape
    assert n_pad % tm == 0
    grid = (n_pad // tm,)
    w_mode = pl.Buffered(1) if single_buffer_weights else None

    flops = 2 * n_pad * (d_in * MLP_HID + MLP_HID * OUT_PAD)
    bytes_accessed = int(
        x.size * 2 + w1.size * 2 + w2.size * 2        # bf16 operands
        + b1.size * 4 + b2.size * 4                   # f32 biases
        + n_pad * OUT_PAD * 2)                        # bf16 padded output

    return pl.pallas_call(
        _re_classifier_kernel,
        out_shape=jax.ShapeDtypeStruct((n_pad, OUT_PAD), jnp.bfloat16),
        grid_spec=pltpu.PrefetchScalarGridSpec(
            num_scalar_prefetch=0,
            grid=grid,
            in_specs=[
                pl.BlockSpec((tm, d_in), lambda i: (i, 0)),          # pair feats
                _weight_spec((d_in, MLP_HID), w_mode),               # W1
                _weight_spec((1, MLP_HID), w_mode),                  # b1
                _weight_spec((MLP_HID, OUT_PAD), w_mode),            # W2 (padded)
                _weight_spec((1, OUT_PAD), w_mode),                  # b2 (padded)
            ],
            out_specs=pl.BlockSpec((tm, OUT_PAD), lambda i: (i, 0)),
        ),
        compiler_params=pltpu.CompilerParams(
            dimension_semantics=("parallel",)),
        cost_estimate=pl.CostEstimate(
            flops=flops, transcendentals=0, bytes_accessed=bytes_accessed),
    )(x, w1, b1, w2, b2)


_SINGLE_BUFFER_OK = [True]


def re_classifier(x, cls_params):
    """x: [n_pad, 4H] bf16 -> padded bf16 logits [n_pad, OUT_PAD] (fused MLP)."""
    n_pad, _ = x.shape
    tm = _pick_tm(n_pad)
    args = (x, cls_params["w1"], cls_params["b1"],
            cls_params["w2"], cls_params["b2"])
    if _SINGLE_BUFFER_OK[0]:
        try:
            return _re_classifier_call(*args, tm=tm, single_buffer_weights=True)
        except Exception:
            # TODO(synk): pipeline_mode=pl.Buffered(1) rejected by this jax
            # build; fall back to default double-buffered weight blocks.
            _SINGLE_BUFFER_OK[0] = False
    return _re_classifier_call(*args, tm=tm, single_buffer_weights=False)


# ------------------------------- glue (JAX) -------------------------------- #
def fake_encoder(seq, mask, params):
    # TODO(synk): the real BERT encoder is an external nn.Module argument; it
    # is replaced by a deterministic embedding-lookup + linear + tanh so the
    # pair-gather/classifier path receives realistic [B, S, H] activations.
    emb = params["tok_emb"][seq]                                  # [B, S, H]
    emb = emb * mask[..., None].astype(emb.dtype)
    return jnp.tanh(emb @ params["enc_w"] + params["enc_b"])      # [B, S, H]


def prepare_classifier_params(params):
    # One-time cast/pad of the classifier weights, hoisted off the hot path:
    #   agg:    Linear(4H, 768)  -> bf16 W1, f32 b1
    #   re_cls: Linear(768, 8)   -> bf16 W2 lane-padded to 128 cols, f32 b2
    return {
        "w1": params["w1"].astype(jnp.bfloat16),
        "b1": params["b1"].astype(jnp.float32),
        "w2": jnp.pad(params["w2"],
                      ((0, 0), (0, OUT_PAD - N_CLASSES))).astype(jnp.bfloat16),
        "b2": jnp.pad(params["b2"],
                      ((0, 0), (0, OUT_PAD - N_CLASSES))).astype(jnp.float32),
    }


def bert_re_forward(params, cls_params, seq, mask, pair_batch, pair_index):
    # TODO(synk): only the attention=False branch is implemented; the
    # attention=True branch (nn.MultiheadAttention over the context) is not.
    embs = fake_encoder(seq, mask, params)                        # [B, S, H]
    B, S, H = embs.shape

    # pair_index is host-side python metadata [(offset, count), ...]; build
    # flat row indices once on the host, then do ONE fused XLA gather (no
    # per-batch slice/concat HLOs, no per-span retrace).
    # TODO(synk): in-kernel gather fusion was skipped on purpose — with H=32
    # each gathered row is only 32 elements, far too small per DMA descriptor.
    row_sel = np.concatenate(
        [np.arange(j, j + k, dtype=np.int32) for (j, k) in pair_index])
    batch_id = np.concatenate(
        [np.full((k,), i, dtype=np.int32) for i, (j, k) in enumerate(pair_index)])
    n = int(row_sel.shape[0])

    pairs = pair_batch[jnp.asarray(row_sel)].astype(jnp.int32)    # [N, 4]
    gidx = jnp.asarray(batch_id)[:, None] * S + (1 + pairs)       # [N, 4] flat rows
    flat = embs.reshape(B * S, H)
    feats = jnp.take(flat, gidx.reshape(-1), axis=0).reshape(n, 4 * H)  # [N, 4H]

    # bucket rows to a bounded set of padded sizes; cast activations to bf16
    n_pad = _bucket_rows(n)
    feats_p = jnp.pad(feats, ((0, n_pad - n), (0, 0))).astype(jnp.bfloat16)

    logits = re_classifier(feats_p, cls_params)                   # [n_pad, 128] bf16
    return logits[:n, :N_CLASSES].astype(jnp.float32)             # [N, 8] f32


def init_params(key, vocab_size, hid_dim):
    ks = jax.random.split(key, 6)
    d_in = hid_dim * 4
    return {
        "tok_emb": jax.random.normal(ks[0], (vocab_size, hid_dim), jnp.float32) * 0.1,
        "enc_w": jax.random.normal(ks[1], (hid_dim, hid_dim), jnp.float32) * 0.1,
        "enc_b": jnp.zeros((hid_dim,), jnp.float32),
        # agg: Linear(4*hid_dim, 768); re_cls: Linear(768, 8)
        "w1": jax.random.normal(ks[2], (d_in, MLP_HID), jnp.float32) * 0.05,
        "b1": jax.random.normal(ks[3], (1, MLP_HID), jnp.float32) * 0.01,
        "w2": jax.random.normal(ks[4], (MLP_HID, N_CLASSES), jnp.float32) * 0.05,
        "b2": jax.random.normal(ks[5], (1, N_CLASSES), jnp.float32) * 0.01,
    }


if __name__ == "__main__":
    key = jax.random.PRNGKey(0)
    B, S, VOCAB = 2, 9, 50        # embs [2, 9, 32]; gathered positions 1..8

    kp, kseq, kpair = jax.random.split(key, 3)
    params = init_params(kp, VOCAB, HID_DIM)
    cls_params = prepare_classifier_params(params)   # one-time cast/pad

    seq = jax.random.randint(kseq, (B, S), 0, VOCAB, dtype=jnp.int32)
    mask = jnp.ones((B, S), dtype=jnp.int32)

    # 5 pairs for sentence 0, 3 pairs for sentence 1; pair entries in [0, S-2]
    pair_index = [(0, 5), (5, 3)]
    pair_batch = jax.random.randint(kpair, (8, 4), 0, S - 1, dtype=jnp.int32)

    logits = bert_re_forward(params, cls_params, seq, mask, pair_batch, pair_index)
    logits = jax.block_until_ready(logits)

    assert logits.shape == (8, N_CLASSES)
    assert jnp.all(jnp.isfinite(logits))

    # sanity check vs. a plain-JAX reference that mirrors the torch loop
    embs = fake_encoder(seq, mask, params)
    rows = []
    for i, (j, k) in enumerate(pair_index):
        pr = pair_batch[j:j + k].astype(jnp.int32)
        rows.append(jnp.concatenate(
            [embs[i, 1 + pr[:, 0], :], embs[i, 1 + pr[:, 1], :],
             embs[i, 1 + pr[:, 2], :], embs[i, 1 + pr[:, 3], :]], axis=-1))
    feats_ref = jnp.concatenate(rows, axis=0)                     # [N, 4H]
    ref = (jnp.maximum(feats_ref @ params["w1"] + params["b1"], 0.0)
           @ params["w2"] + params["b2"])
    # tolerance covers bf16 matmul inputs + bf16 kernel output (f32 accum)
    assert jnp.allclose(logits, ref, atol=5e-2, rtol=5e-2)

    print("KERNEL_OK")
</pallas_src>

<mosaic_0001>
module attributes {stable_mosaic.version = 11 : i64} {
  func.func @_re_classifier_kernel(%arg0: i32, %arg1: memref<128x128xbf16, #tpu.memory_space<vmem>>, %arg2: memref<128x768xbf16, #tpu.memory_space<vmem>>, %arg3: memref<1x768xf32, #tpu.memory_space<vmem>>, %arg4: memref<768x128xbf16, #tpu.memory_space<vmem>>, %arg5: memref<1x128xf32, #tpu.memory_space<vmem>>, %arg6: memref<128x128xbf16, #tpu.memory_space<vmem>>) attributes {dimension_semantics = [#tpu.dimension_semantics<parallel>], iteration_bounds = array<i64: 1>, scalar_prefetch = 0 : i64, scratch_operands = 0 : i64, tpu.core_type = #tpu.core_type<tc>, window_params = [{transform_indices = @transform_0, window_bounds = array<i64: 128, 128>}, {pipeline_mode = #tpu.pipeline_mode<synchronous>, transform_indices = @transform_1, window_bounds = array<i64: 128, 768>}, {pipeline_mode = #tpu.pipeline_mode<synchronous>, transform_indices = @transform_2, window_bounds = array<i64: 1, 768>}, {pipeline_mode = #tpu.pipeline_mode<synchronous>, transform_indices = @transform_3, window_bounds = array<i64: 768, 128>}, {pipeline_mode = #tpu.pipeline_mode<synchronous>, transform_indices = @transform_4, window_bounds = array<i64: 1, 128>}, {transform_indices = @transform_5, window_bounds = array<i64: 128, 128>}]} {
    %c0 = arith.constant 0 : index
    %c0_0 = arith.constant 0 : index
    %0 = vector.load %arg1[%c0, %c0_0] : memref<128x128xbf16, #tpu.memory_space<vmem>>, vector<128x128xbf16>
    %c0_1 = arith.constant 0 : index
    %c0_2 = arith.constant 0 : index
    %1 = vector.load %arg2[%c0_1, %c0_2] : memref<128x768xbf16, #tpu.memory_space<vmem>>, vector<128x768xbf16>
    %cst = arith.constant dense<0.000000e+00> : vector<128x768xf32>
    %2 = tpu.matmul %0, %1, %cst {dimension_numbers = #tpu.dot_dimension_numbers<[1], [0], [0], [1], [0, 0, 1, 1], [], []>} : vector<128x128xbf16>, vector<128x768xbf16>, vector<128x768xf32> -> vector<128x768xf32>
    %c0_3 = arith.constant 0 : index
    %c0_4 = arith.constant 0 : index
    %3 = vector.load %arg3[%c0_3, %c0_4] : memref<1x768xf32, #tpu.memory_space<vmem>>, vector<1x768xf32>
    %4 = vector.broadcast %3 : vector<1x768xf32> to vector<128x768xf32>
    %5 = arith.addf %2, %4 : vector<128x768xf32>
    %cst_5 = arith.constant 0.000000e+00 : f32
    %6 = vector.broadcast %cst_5 : f32 to vector<128x768xf32>
    %7 = arith.maximumf %5, %6 : vector<128x768xf32>
    %8 = arith.truncf %7 : vector<128x768xf32> to vector<128x768xbf16>
    %c0_6 = arith.constant 0 : index
    %c0_7 = arith.constant 0 : index
    %9 = vector.load %arg4[%c0_6, %c0_7] : memref<768x128xbf16, #tpu.memory_space<vmem>>, vector<768x128xbf16>
    %cst_8 = arith.constant dense<0.000000e+00> : vector<128x128xf32>
    %10 = tpu.matmul %8, %9, %cst_8 {dimension_numbers = #tpu.dot_dimension_numbers<[1], [0], [0], [1], [0, 0, 1, 1], [], []>} : vector<128x768xbf16>, vector<768x128xbf16>, vector<128x128xf32> -> vector<128x128xf32>
    %c0_9 = arith.constant 0 : index
    %c0_10 = arith.constant 0 : index
    %11 = vector.load %arg5[%c0_9, %c0_10] : memref<1x128xf32, #tpu.memory_space<vmem>>, vector<1x128xf32>
    %12 = vector.broadcast %11 : vector<1x128xf32> to vector<128x128xf32>
    %13 = arith.addf %10, %12 : vector<128x128xf32>
    %14 = arith.truncf %13 : vector<128x128xf32> to vector<128x128xbf16>
    %c0_11 = arith.constant 0 : index
    %c0_12 = arith.constant 0 : index
    %15 = vector.load %arg6[%c0_11, %c0_12] : memref<128x128xbf16, #tpu.memory_space<vmem>>, vector<128x128xbf16>
    tpu.vector_store %arg6[%c0_11, %c0_12], %14 {strides = array<i32>} : memref<128x128xbf16, #tpu.memory_space<vmem>>, vector<128x128xbf16>,
    return
  }
  func.func @transform_0(%arg0: i32) -> (i32, i32) {
    %c0_i32 = arith.constant 0 : i32
    %c0_i32_0 = arith.constant 0 : i32
    return %arg0, %c0_i32 : i32, i32
  }
  func.func @transform_1(%arg0: i32) -> (i32, i32) {
    %c0_i32 = arith.constant 0 : i32
    %c0_i32_0 = arith.constant 0 : i32
    %c0_i32_1 = arith.constant 0 : i32
    return %c0_i32, %c0_i32_0 : i32, i32
  }
  func.func @transform_2(%arg0: i32) -> (i32, i32) {
    %c0_i32 = arith.constant 0 : i32
    %c0_i32_0 = arith.constant 0 : i32
    %c0_i32_1 = arith.constant 0 : i32
    return %c0_i32, %c0_i32_0 : i32, i32
  }
  func.func @transform_3(%arg0: i32) -> (i32, i32) {
    %c0_i32 = arith.constant 0 : i32
    %c0_i32_0 = arith.constant 0 : i32
    %c0_i32_1 = arith.constant 0 : i32
    return %c0_i32, %c0_i32_0 : i32, i32
  }
  func.func @transform_4(%arg0: i32) -> (i32, i32) {
    %c0_i32 = arith.constant 0 : i32
    %c0_i32_0 = arith.constant 0 : i32
    %c0_i32_1 = arith.constant 0 : i32
    return %c0_i32, %c0_i32_0 : i32, i32
  }
  func.func @transform_5(%arg0: i32) -> (i32, i32) {
    %c0_i32 = arith.constant 0 : i32
    %c0_i32_0 = arith.constant 0 : i32
    return %arg0, %c0_i32 : i32, i32
  }
}

module attributes {stable_mosaic.version = 11 : i64} {
  func.func @_re_classifier_kernel(%arg0: i32, %arg1: memref<128x128xbf16, #tpu.memory_space<vmem>>, %arg2: memref<128x768xbf16, #tpu.memory_space<vmem>>, %arg3: memref<1x768xf32, #tpu.memory_space<vmem>>, %arg4: memref<768x128xbf16, #tpu.memory_space<vmem>>, %arg5: memref<1x128xf32, #tpu.memory_space<vmem>>, %arg6: memref<128x128xbf16, #tpu.memory_space<vmem>>) attributes {dimension_semantics = [#tpu.dimension_semantics<parallel>], iteration_bounds = array<i64: 1>, scalar_prefetch = 0 : i64, scratch_operands = 0 : i64, tpu.core_type = #tpu.core_type<tc>, window_params = [{transform_indices = @transform_0, window_bounds = array<i64: 128, 128>}, {pipeline_mode = #tpu.pipeline_mode<synchronous>, transform_indices = @transform_1, window_bounds = array<i64: 128, 768>}, {pipeline_mode = #tpu.pipeline_mode<synchronous>, transform_indices = @transform_2, window_bounds = array<i64: 1, 768>}, {pipeline_mode = #tpu.pipeline_mode<synchronous>, transform_indices = @transform_3, window_bounds = array<i64: 768, 128>}, {pipeline_mode = #tpu.pipeline_mode<synchronous>, transform_indices = @transform_4, window_bounds = array<i64: 1, 128>}, {transform_indices = @transform_5, window_bounds = array<i64: 128, 128>}]} {
    %c0 = arith.constant 0 : index
    %c0_0 = arith.constant 0 : index
    %0 = vector.load %arg1[%c0, %c0_0] : memref<128x128xbf16, #tpu.memory_space<vmem>>, vector<128x128xbf16>
    %c0_1 = arith.constant 0 : index
    %c0_2 = arith.constant 0 : index
    %1 = vector.load %arg2[%c0_1, %c0_2] : memref<128x768xbf16, #tpu.memory_space<vmem>>, vector<128x768xbf16>
    %cst = arith.constant dense<0.000000e+00> : vector<128x768xf32>
    %2 = tpu.matmul %0, %1, %cst {dimension_numbers = #tpu.dot_dimension_numbers<[1], [0], [0], [1], [0, 0, 1, 1], [], []>} : vector<128x128xbf16>, vector<128x768xbf16>, vector<128x768xf32> -> vector<128x768xf32>
    %c0_3 = arith.constant 0 : index
    %c0_4 = arith.constant 0 : index
    %3 = vector.load %arg3[%c0_3, %c0_4] : memref<1x768xf32, #tpu.memory_space<vmem>>, vector<1x768xf32>
    %4 = vector.broadcast %3 : vector<1x768xf32> to vector<128x768xf32>
    %5 = arith.addf %2, %4 : vector<128x768xf32>
    %cst_5 = arith.constant 0.000000e+00 : f32
    %6 = vector.broadcast %cst_5 : f32 to vector<128x768xf32>
    %7 = arith.maximumf %5, %6 : vector<128x768xf32>
    %8 = arith.truncf %7 : vector<128x768xf32> to vector<128x768xbf16>
    %c0_6 = arith.constant 0 : index
    %c0_7 = arith.constant 0 : index
    %9 = vector.load %arg4[%c0_6, %c0_7] : memref<768x128xbf16, #tpu.memory_space<vmem>>, vector<768x128xbf16>
    %cst_8 = arith.constant dense<0.000000e+00> : vector<128x128xf32>
    %10 = tpu.matmul %8, %9, %cst_8 {dimension_numbers = #tpu.dot_dimension_numbers<[1], [0], [0], [1], [0, 0, 1, 1], [], []>} : vector<128x768xbf16>, vector<768x128xbf16>, vector<128x128xf32> -> vector<128x128xf32>
    %c0_9 = arith.constant 0 : index
    %c0_10 = arith.constant 0 : index
    %11 = vector.load %arg5[%c0_9, %c0_10] : memref<1x128xf32, #tpu.memory_space<vmem>>, vector<1x128xf32>
    %12 = vector.broadcast %11 : vector<1x128xf32> to vector<128x128xf32>
    %13 = arith.addf %10, %12 : vector<128x128xf32>
    %14 = arith.truncf %13 : vector<128x128xf32> to vector<128x128xbf16>
    %c0_11 = arith.constant 0 : index
    %c0_12 = arith.constant 0 : index
    %15 = vector.load %arg6[%c0_11, %c0_12] : memref<128x128xbf16, #tpu.memory_space<vmem>>, vector<128x128xbf16>
    tpu.vector_store %arg6[%c0_11, %c0_12], %14 {strides = array<i32>} : memref<128x128xbf16, #tpu.memory_space<vmem>>, vector<128x128xbf16>,
    return
  }
  func.func @transform_0(%arg0: i32) -> (i32, i32) {
    %c0_i32 = arith.constant 0 : i32
    %c0_i32_0 = arith.constant 0 : i32
    return %arg0, %c0_i32 : i32, i32
  }
  func.func @transform_1(%arg0: i32) -> (i32, i32) {
    %c0_i32 = arith.constant 0 : i32
    %c0_i32_0 = arith.constant 0 : i32
    %c0_i32_1 = arith.constant 0 : i32
    return %c0_i32, %c0_i32_0 : i32, i32
  }
  func.func @transform_2(%arg0: i32) -> (i32, i32) {
    %c0_i32 = arith.constant 0 : i32
    %c0_i32_0 = arith.constant 0 : i32
    %c0_i32_1 = arith.constant 0 : i32
    return %c0_i32, %c0_i32_0 : i32, i32
  }
  func.func @transform_3(%arg0: i32) -> (i32, i32) {
    %c0_i32 = arith.constant 0 : i32
    %c0_i32_0 = arith.constant 0 : i32
    %c0_i32_1 = arith.constant 0 : i32
    return %c0_i32, %c0_i32_0 : i32, i32
  }
  func.func @transform_4(%arg0: i32) -> (i32, i32) {
    %c0_i32 = arith.constant 0 : i32
    %c0_i32_0 = arith.constant 0 : i32
    %c0_i32_1 = arith.constant 0 : i32
    return %c0_i32, %c0_i32_0 : i32, i32
  }
  func.func @transform_5(%arg0: i32) -> (i32, i32) {
    %c0_i32 = arith.constant 0 : i32
    %c0_i32_0 = arith.constant 0 : i32
    return %arg0, %c0_i32 : i32, i32
  }
}

</mosaic_0001>

<bundles_post_ra>
// kernel: _re_classifier_call.1
= control target key start
LH: loop header
LB: loop body
LE: loop exit
PB: predicated region body
PF: predicated region fallthrough
CT: control target
= control target key end

     0   :  { %10 = vsyncpa [#allocation3], 0  ;;  %s2686_s0 = inlined_call_operand.hbm [shape: bf16[128,128], index: 0, kind: input, shape index: {}]   ;;  %s2687_s1 = inlined_call_operand.hbm [shape: bf16[128,768], index: 1, kind: input, shape index: {}]   ;;  %s2688_s2 = inlined_call_operand.hbm [shape: f32[1,768], index: 2, kind: input, shape index: {}]   ;;  %s2689_s3 = inlined_call_operand.hbm [shape: bf16[768,128], index: 3, kind: input, shape index: {}]   ;;  %s2690_s4 = inlined_call_operand.vmem [shape: f32[1,128], index: 4, kind: input, shape index: {}]   ;;  %s2691_s5 = inlined_call_operand.hbm [shape: bf16[128,128], index: 5, kind: output, shape index: {}]  }
   0x1   :  { %11 = vsyncpa [#allocation6], 0 }
   0x2   :  { %12 = vsyncpa [#allocation9], 0  ;;  %s31_s20 = sshll.u32 %s2687_s1, 4  ;;  %s32_s20 = int_to_ptr.hbm [resolvable:$true] %s31_s20 }
   0x3   :  { %13 = vsyncpa [#allocation4], 0  ;;  %s2326_s21 = smov [#allocation5]   ;;  %s18_s25 = sshll.u32 %s2686_s0, 4  ;;  %s19_s25 = int_to_ptr.hbm [resolvable:$true] %s18_s25 }
   0x4   :  { %s33_s22 = sshll.u32 %s2326_s21, 4  ;;  %s2327_s26 = smov 384   ;;  %s34_s22 = int_to_ptr.vmem [resolvable:$true] %s33_s22 }
   0x5   :  { %s2328_s27 = smov 24   ;;  %s2329_s28 = smov [#allocation2]  }
   0x6   :  { %39 = dma.hbm_to_vmem [thread:$0]  %s32_s20, 6144, %s34_s22, [#allocation6], %s2327_s26, %s2327_s26, %s2328_s27  }
   0x7   :  { %s20_s29 = sshll.u32 %s2329_s28, 4  ;;  %s2330_s30 = smov 64   ;;  %s21_s29 = int_to_ptr.vmem [resolvable:$true] %s20_s29 }
   0x8   :  { %s2331_s6 = smov 4   ;;  %s45_s8 = sshll.u32 %s2688_s2, 4  ;;  %s46_s8 = int_to_ptr.hbm [resolvable:$true] %s45_s8 }
   0x9   :  { %26 = dma.hbm_to_vmem [thread:$0]  %s19_s25, 1024, %s21_s29, [#allocation3], %s2330_s30, %s2330_s30, %s2331_s6  }
   0xa   :  { %s2332_s9 = smov [#allocation7]   ;;  %s55_s12 = sshll.u32 %s2689_s3, 4  ;;  %s56_s12 = int_to_ptr.hbm [resolvable:$true] %s55_s12 }
   0xb   :  { %s47_s0 = sshll.u32 %s2332_s9, 4  ;;  %s2333_s13 = smov [#allocation8]   ;;  %s48_s0 = int_to_ptr.vmem [resolvable:$true] %s47_s0 }
   0xc   :  { %50 = dma.hbm_to_vmem [thread:$0]  %s46_s8, 96, %s48_s0, [#allocation6]  }
   0xd   :  { %s57_s14 = sshll.u32 %s2333_s13, 4  ;;  %s58_s14 = int_to_ptr.vmem [resolvable:$true] %s57_s14 }
   0xe   :  { %63 = dma.hbm_to_vmem [thread:$0]  %s56_s12, 6144, %s58_s14, [#allocation9], %s2330_s30, %s2330_s30, %s2331_s6  }
   0xf   :  { %2318 = dma.done.wait [#allocation3], 1024  }
  0x10   :  { %2319 = vsyncadd [#allocation3], 4294966272 }
  0x11   :  { %2320 = dma.done.wait [#allocation6], 6240  }
  0x12   :  { %2321 = vsyncadd [#allocation6], 4294961056 }
  0x13   :  { %2322 = dma.done.wait [#allocation9], 6144  }
  0x14   :  { %2323 = vsyncadd [#allocation9], 4294961152  ;;  %v1823_v0 = vld [vmem:[#allocation5 + $0x150] sm:$0xf]  ;;  %v2090_v1 = vld [vmem:[#allocation5 + $0x164] sm:$0xf0] }
  0x15   :  { %v2087_v2 = vld [vmem:[#allocation5 + $0x154] sm:$0xf]  ;;  %v1824_v3 = vor.u32 %v2090_v1, %v1823_v0  ;;  %v1825_v4 = vld [vmem:[#allocation5 + $0x168] sm:$0xf0]  ;;  %v1799_v5 = vld [vmem:[#allocation5 + $0x120] sm:$0xf] }
  0x16   :  { %v2084_v6 = vld [vmem:[#allocation5 + $0x134] sm:$0xf0]  ;;  %v1828_v7 = vor.u32 %v2087_v2, %v1825_v4  ;;  %v2081_v8 = vld [vmem:[#allocation5 + $0x124] sm:$0xf]  ;;  %v1801_v9 = vld [vmem:[#allocation5 + $0x138] sm:$0xf0] }
  0x17   :  { %v1831_v10 = vld [vmem:[#allocation5 + $0x158] sm:$0xf]  ;;  %448 = vmatpush.bf16.msra.mxu0 %v1824_v3  ;;  %v1800_v11 = vor.u32 %v2084_v6, %v1799_v5  ;;  %v2091_v12 = vld [vmem:[#allocation5 + $0x16c] sm:$0xf0]  ;;  %v2088_v13 = vld [vmem:[#allocation5 + $0x15c] sm:$0xf]  ;;  %v1804_v15 = vor.u32 %v2081_v8, %v1801_v9 }
  0x18   :  { %v1833_v14 = vld [vmem:[#allocation5 + $0x170] sm:$0xf0]  ;;  %497 = vmatpush.bf16.msra.mxu1 %v1828_v7  ;;  %v1832_v16 = vor.u32 %v2091_v12, %v1831_v10  ;;  %v1775_v18 = vld [vmem:[#allocation5 + $0xf0] sm:$0xf]  ;;  %v2078_v19 = vld [vmem:[#allocation5 + $0x104] sm:$0xf0] }
  0x19   :  { %v1836_v17 = vor.u32 %v2088_v13, %v1833_v14  ;;  %v2075_v20 = vld [vmem:[#allocation5 + $0xf4] sm:$0xf]  ;;  %v1777_v21 = vld [vmem:[#allocation5 + $0x108] sm:$0xf0]  ;;  %v1807_v22 = vld [vmem:[#allocation5 + $0x128] sm:$0xf]  ;;  %v1776_v27 = vor.u32 %v2078_v19, %v1775_v18 }
  0x1a   :  { %v2085_v23 = vld [vmem:[#allocation5 + $0x13c] sm:$0xf0]  ;;  %546 = vmatpush.bf16.msra.mxu2 %v1832_v16  ;;  %v2082_v25 = vld [vmem:[#allocation5 + $0x12c] sm:$0xf]  ;;  %v1809_v26 = vld [vmem:[#allocation5 + $0x140] sm:$0xf0]  ;;  %v1780_v31 = vor.u32 %v2075_v20, %v1777_v21 }
  0x1b   :  { %595 = vmatpush.bf16.msra.mxu3 %v1836_v17  ;;  %v1808_v24 = vor.u32 %v2085_v23, %v1807_v22  ;;  %449 = vmatpush.bf16.msra.mxu0 %v1800_v11  ;;  %v1812_v28 = vor.u32 %v2082_v25, %v1809_v26  ;;  %v1751_v29 = vld [vmem:[#allocation5 + $0xc0] sm:$0xf]  ;;  %v2072_v30 = vld [vmem:[#allocation5 + $0xd4] sm:$0xf0]  ;;  %v2079_v33 = vld [vmem:[#allocation5 + $0x10c] sm:$0xf0] }
  0x1c   :  { %498 = vmatpush.bf16.msra.mxu1 %v1804_v15  ;;  %v1783_v32 = vld [vmem:[#allocation5 + $0xf8] sm:$0xf]  ;;  %v2076_v34 = vld [vmem:[#allocation5 + $0xfc] sm:$0xf]  ;;  %v2069_v35 = vld [vmem:[#allocation5 + $0xc4] sm:$0xf]  ;;  %v1752_v41 = vor.u32 %v2072_v30, %v1751_v29 }
  0x1d   :  { %v1753_v36 = vld [vmem:[#allocation5 + $0xd8] sm:$0xf0]  ;;  %v1785_v37 = vld [vmem:[#allocation5 + $0x110] sm:$0xf0]  ;;  %v1784_v38 = vor.u32 %v2079_v33, %v1783_v32  ;;  %v1759_v40 = vld [vmem:[#allocation5 + $0xc8] sm:$0xf] }
  0x1e   :  { %547 = vmatpush.bf16.msra.mxu2 %v1808_v24  ;;  %v1788_v39 = vor.u32 %v2076_v34, %v1785_v37  ;;  %v2073_v42 = vld [vmem:[#allocation5 + $0xdc] sm:$0xf0]  ;;  %v2070_v43 = vld [vmem:[#allocation5 + $0xcc] sm:$0xf]  ;;  %v1761_v44 = vld [vmem:[#allocation5 + $0xe0] sm:$0xf0]  ;;  %v1756_v45 = vor.u32 %v2069_v35, %v1753_v36 }
  0x1f   :  { %596 = vmatpush.bf16.msra.mxu3 %v1812_v28  ;;  %450 = vmatpush.bf16.msra.mxu0 %v1776_v27  ;;  %v1727_v46 = vld [vmem:[#allocation5 + $0x90] sm:$0xf]  ;;  %v2066_v47 = vld [vmem:[#allocation5 + $0xa4] sm:$0xf0]  ;;  %v2063_v48 = vld [vmem:[#allocation5 + $0x94] sm:$0xf]  ;;  %v1760_v50 = vor.u32 %v2073_v42, %v1759_v40  ;;  %v1764_v51 = vor.u32 %v2070_v43, %v1761_v44 }
  0x20   :  { %499 = vmatpush.bf16.msra.mxu1 %v1780_v31  ;;  %v1729_v49 = vld [vmem:[#allocation5 + $0xa8] sm:$0xf0]  ;;  %v1735_v52 = vld [vmem:[#allocation5 + $0x98] sm:$0xf]  ;;  %v1728_v53 = vor.u32 %v2066_v47, %v1727_v46  ;;  %v2067_v54 = vld [vmem:[#allocation5 + $0xac] sm:$0xf0] }
  0x21   :  { %v2064_v55 = vld [vmem:[#allocation5 + $0x9c] sm:$0xf]  ;;  %v1737_v56 = vld [vmem:[#allocation5 + $0xb0] sm:$0xf0]  ;;  %v1732_v57 = vor.u32 %v2063_v48, %v1729_v49  ;;  %v1703_v58 = vld [vmem:[#allocation5 + $0x60] sm:$0xf]  ;;  %v1736_v62 = vor.u32 %v2067_v54, %v1735_v52 }
  0x22   :  { %548 = vmatpush.bf16.msra.mxu2 %v1784_v38  ;;  %v2060_v59 = vld [vmem:[#allocation5 + $0x74] sm:$0xf0]  ;;  %v2057_v60 = vld [vmem:[#allocation5 + $0x64] sm:$0xf]  ;;  %v1705_v61 = vld [vmem:[#allocation5 + $0x78] sm:$0xf0]  ;;  %v1740_v63 = vor.u32 %v2064_v55, %v1737_v56 }
  0x23   :  { %597 = vmatpush.bf16.msra.mxu3 %v1788_v39  ;;  %451 = vmatpush.bf16.msra.mxu0 %v1752_v41  ;;  %v1711_v0 = vld [vmem:[#allocation5 + $0x68] sm:$0xf]  ;;  %v1704_v1 = vor.u32 %v2060_v59, %v1703_v58  ;;  %v2061_v2 = vld [vmem:[#allocation5 + $0x7c] sm:$0xf0]  ;;  %v2058_v3 = vld [vmem:[#allocation5 + $0x6c] sm:$0xf]  ;;  %v1708_v5 = vor.u32 %v2057_v60, %v1705_v61 }
  0x24   :  { %500 = vmatpush.bf16.msra.mxu1 %v1756_v45  ;;  %v1713_v4 = vld [vmem:[#allocation5 + $0x80] sm:$0xf0]  ;;  %v1679_v6 = vld [vmem:[#allocation5 + $0x30] sm:$0xf]  ;;  %v2054_v7 = vld [vmem:[#allocation5 + $0x44] sm:$0xf0]  ;;  %v1712_v10 = vor.u32 %v2061_v2, %v1711_v0 }
  0x25   :  { %v2051_v8 = vld [vmem:[#allocation5 + $0x34] sm:$0xf]  ;;  %v1681_v9 = vld [vmem:[#allocation5 + $0x48] sm:$0xf0]  ;;  %v1716_v11 = vor.u32 %v2058_v3, %v1713_v4  ;;  %v1687_v12 = vld [vmem:[#allocation5 + $0x38] sm:$0xf]  ;;  %v1680_v13 = vor.u32 %v2054_v7, %v1679_v6 }
  0x26   :  { %549 = vmatpush.bf16.msra.mxu2 %v1760_v50  ;;  %v2055_v14 = vld [vmem:[#allocation5 + $0x4c] sm:$0xf0]  ;;  %v2052_v15 = vld [vmem:[#allocation5 + $0x3c] sm:$0xf]  ;;  %v1689_v16 = vld [vmem:[#allocation5 + $0x50] sm:$0xf0]  ;;  %v1684_v17 = vor.u32 %v2051_v8, %v1681_v9 }
  0x27   :  { %598 = vmatpush.bf16.msra.mxu3 %v1764_v51  ;;  %452 = vmatpush.bf16.msra.mxu0 %v1728_v53  ;;  %v1655_v18 = vld [vmem:[#allocation5] sm:$0xf]  ;;  %v2048_v19 = vld [vmem:[#allocation5 + $0x14] sm:$0xf0]  ;;  %v2045_v20 = vld [vmem:[#allocation5 + $0x4] sm:$0xf]  ;;  %v1688_v24 = vor.u32 %v2055_v14, %v1687_v12  ;;  %v1692_v25 = vor.u32 %v2052_v15, %v1689_v16 }
  0x28   :  { %501 = vmatpush.bf16.msra.mxu1 %v1732_v57  ;;  %v1657_v21 = vld [vmem:[#allocation5 + $0x18] sm:$0xf0]  ;;  %v1839_v22 = vld [vmem:[#allocation5 + $0x160] sm:$0xf]  ;;  %v2092_v23 = vld [vmem:[#allocation5 + $0x174] sm:$0xf0]  ;;  %v1656_v28 = vor.u32 %v2048_v19, %v1655_v18 }
  0x29   :  { %v2089_v26 = vld [vmem:[#allocation5 + $0x164] sm:$0xf]  ;;  %v1841_v27 = vld [vmem:[#allocation5 + $0x178] sm:$0xf0]  ;;  %v1663_v29 = vld [vmem:[#allocation5 + $0x8] sm:$0xf]  ;;  %v1660_v31 = vor.u32 %v2045_v20, %v1657_v21  ;;  %v1840_v32 = vor.u32 %v2092_v23, %v1839_v22 }
  0x2a   :  { %550 = vmatpush.bf16.msra.mxu2 %v1736_v62  ;;  %v2049_v30 = vld [vmem:[#allocation5 + $0x1c] sm:$0xf0]  ;;  %v2046_v33 = vld [vmem:[#allocation5 + $0xc] sm:$0xf]  ;;  %v1665_v34 = vld [vmem:[#allocation5 + $0x20] sm:$0xf0]  ;;  %v1844_v35 = vor.u32 %v2089_v26, %v1841_v27 }
  0x2b   :  { %599 = vmatpush.bf16.msra.mxu3 %v1740_v63  ;;  %453 = vmatpush.bf16.msra.mxu0 %v1704_v1  ;;  %v2383_v36 = vld [vmem:[#allocation2] sm:$0xff]  ;;  %v1664_v37 = vor.u32 %v2049_v30, %v1663_v29  ;;  %v1815_v38 = vld [vmem:[#allocation5 + $0x130] sm:$0xf]  ;;  %v2086_v39 = vld [vmem:[#allocation5 + $0x144] sm:$0xf0]  ;;  %v1668_v40 = vor.u32 %v2046_v33, %v1665_v34  ;;  %s1606_s18 = sshll.u32 %s2691_s5, 4  ;;  %s1607_s18 = int_to_ptr.hbm [resolvable:$true] %s1606_s18 }
  0x2c   :  { %502 = vmatpush.bf16.msra.mxu1 %v1708_v5  ;;  %v2083_v41 = vld [vmem:[#allocation5 + $0x134] sm:$0xf]  ;;  %v1817_v42 = vld [vmem:[#allocation5 + $0x148] sm:$0xf0]  ;;  %v2100_v43 = vld [vmem:[#allocation8 + $0x38] sm:$0xff]  ;;  %v1816_v45 = vor.u32 %v2086_v39, %v1815_v38 }
  0x2d   :  { %v2108_v44 = vld [vmem:[#allocation8 + $0x78] sm:$0xff]  ;;  %v1820_v46 = vor.u32 %v2083_v41, %v1817_v42  ;;  %v2080_v48 = vld [vmem:[#allocation5 + $0x114] sm:$0xf0]  ;;  %v2098_v55 = vld [vmem:[#allocation8 + $0x28] sm:$0xff] }
  0x2e   :  { %551 = vmatpush.bf16.msra.mxu2 %v1712_v10  ;;  %v1791_v47 = vld [vmem:[#allocation5 + $0x100] sm:$0xf]  ;;  %v2077_v49 = vld [vmem:[#allocation5 + $0x104] sm:$0xf]  ;;  %v2099_v50 = vld [vmem:[#allocation8 + $0x30] sm:$0xff] }
  0x2f   :  { %600 = vmatpush.bf16.msra.mxu3 %v1716_v11  ;;  %454 = vmatpush.bf16.msra.mxu0 %v1680_v13  ;;  %v2107_v51 = vld [vmem:[#allocation8 + $0x70] sm:$0xff]  ;;  %v1792_v53 = vor.u32 %v2080_v48, %v1791_v47  ;;  %v2106_v56 = vld [vmem:[#allocation8 + $0x68] sm:$0xff]  ;;  %v2074_v59 = vld [vmem:[#allocation5 + $0xe4] sm:$0xf0] }
  0x30   :  { %503 = vmatpush.bf16.msra.mxu1 %v1684_v17  ;;  %v1793_v52 = vld [vmem:[#allocation5 + $0x118] sm:$0xf0]  ;;  %v2389_v57 = vld [vmem:[#allocation2 + $0x8] sm:$0xff]  ;;  %v1767_v58 = vld [vmem:[#allocation5 + $0xd0] sm:$0xf] }
  0x31   :  { %v1796_v54 = vor.u32 %v2077_v49, %v1793_v52  ;;  %v2071_v60 = vld [vmem:[#allocation5 + $0xd4] sm:$0xf]  ;;  %v1768_v61 = vor.u32 %v2074_v59, %v1767_v58  ;;  %v1769_v62 = vld [vmem:[#allocation5 + $0xe8] sm:$0xf0]  ;;  %v1743_v3 = vld [vmem:[#allocation5 + $0xa0] sm:$0xf] }
  0x32   :  { %552 = vmatpush.bf16.msra.mxu2 %v1688_v24  ;;  %v1772_v63 = vor.u32 %v2071_v60, %v1769_v62  ;;  %v2097_v0 = vld [vmem:[#allocation8 + $0x20] sm:$0xff]  ;;  %v2395_v2 = vld [vmem:[#allocation2 + $0x10] sm:$0xff]  ;;  %v2068_v4 = vld [vmem:[#allocation5 + $0xb4] sm:$0xf0] }
  0x33   :  { %601 = vmatpush.bf16.msra.mxu3 %v1692_v25  ;;  %455 = vmatpush.bf16.msra.mxu0 %v1656_v28  ;;  %v2105_v1 = vld [vmem:[#allocation8 + $0x60] sm:$0xff]  ;;  %v1744_v6 = vor.u32 %v2068_v4, %v1743_v3  ;;  %v1745_v7 = vld [vmem:[#allocation5 + $0xb8] sm:$0xf0]  ;;  %v1719_v12 = vld [vmem:[#allocation5 + $0x70] sm:$0xf] }
  0x34   :  { %504 = vmatpush.bf16.msra.mxu1 %v1660_v31  ;;  %v2065_v5 = vld [vmem:[#allocation5 + $0xa4] sm:$0xf]  ;;  %v2401_v11 = vld [vmem:[#allocation2 + $0x18] sm:$0xff]  ;;  %v2062_v13 = vld [vmem:[#allocation5 + $0x84] sm:$0xf0] }
  0x35   :  { %v1748_v8 = vor.u32 %v2065_v5, %v1745_v7  ;;  %v2096_v9 = vld [vmem:[#allocation8 + $0x18] sm:$0xff]  ;;  %v2059_v14 = vld [vmem:[#allocation5 + $0x74] sm:$0xf]  ;;  %v1720_v15 = vor.u32 %v2062_v13, %v1719_v12  ;;  %v1721_v16 = vld [vmem:[#allocation5 + $0x88] sm:$0xf0] }
  0x36   :  { %456 = vmatmul.bf16.vlgmr.msra.gmra.mxu0 %v2383_v36  ;;  %553 = vmatpush.bf16.msra.mxu2 %v1664_v37  ;;  %v2104_v10 = vld [vmem:[#allocation8 + $0x58] sm:$0xff]  ;;  %v1724_v17 = vor.u32 %v2059_v14, %v1721_v16  ;;  %v2095_v18 = vld [vmem:[#allocation8 + $0x10] sm:$0xff]  ;;  %v2094_v27 = vld [vmem:[#allocation8 + $0x8] sm:$0xff] }
  0x37   :  { %644 = vmatpush.bf16.msrb.mxu0 %v1840_v32  ;;  %505 = vmatmul.bf16.vlgmr.msra.gmra.mxu1 %v2383_v36  ;;  %v2103_v19 = vld [vmem:[#allocation8 + $0x50] sm:$0xff]  ;;  %v2407_v20 = vld [vmem:[#allocation2 + $0x20] sm:$0xff]  ;;  %v2102_v28 = vld [vmem:[#allocation8 + $0x48] sm:$0xff] }
  0x38   :  { %693 = vmatpush.bf16.msrb.mxu1 %v1844_v35  ;;  %602 = vmatpush.bf16.msra.mxu3 %v1668_v40  ;;  %v1695_v21 = vld [vmem:[#allocation5 + $0x40] sm:$0xf]  ;;  %v2056_v22 = vld [vmem:[#allocation5 + $0x54] sm:$0xf0]  ;;  %v2053_v23 = vld [vmem:[#allocation5 + $0x44] sm:$0xf] }
  0x39   :  { %554 = vmatmul.bf16.vlgmr.msra.gmra.mxu2 %v2383_v36  ;;  %v1696_v24 = vor.u32 %v2056_v22, %v1695_v21  ;;  %v1697_v25 = vld [vmem:[#allocation5 + $0x58] sm:$0xf0]  ;;  %v2413_v29 = vld [vmem:[#allocation2 + $0x28] sm:$0xff]  ;;  %v1671_v30 = vld [vmem:[#allocation5 + $0x10] sm:$0xf] }
  0x3a   :  { %1274 = vmatpush.bf16.msrb.mxu2 %v2100_v43  ;;  %v1700_v26 = vor.u32 %v2053_v23, %v1697_v25  ;;  %v2050_v31 = vld [vmem:[#allocation5 + $0x24] sm:$0xf0]  ;;  %v2047_v32 = vld [vmem:[#allocation5 + $0x14] sm:$0xf]  ;;  %v1673_v34 = vld [vmem:[#allocation5 + $0x28] sm:$0xf0] }
  0x3b   :  { %645 = vmatpush.bf16.msrb.mxu0 %v1816_v45  ;;  %603 = vmatmul.bf16.vlgmr.msra.gmra.mxu3 %v2383_v36  ;;  %v1672_v33 = vor.u32 %v2050_v31, %v1671_v30  ;;  %v1676_v35 = vor.u32 %v2047_v32, %v1673_v34  ;;  %v2093_v37 = vld [vmem:[#allocation8] sm:$0xff]  ;;  %v2419_v38 = vld [vmem:[#allocation2 + $0x30] sm:$0xff]  ;;  %v2425_v40 = vld [vmem:[#allocation2 + $0x38] sm:$0xff] }
  0x3c   :  { %1323 = vmatpush.bf16.msrb.mxu3 %v2108_v44  ;;  %694 = vmatpush.bf16.msrb.mxu1 %v1820_v46  ;;  %v2101_v39 = vld [vmem:[#allocation8 + $0x40] sm:$0xff]  ;;  %v2132_v41 = vld [vmem:[#allocation8 + $0x138] sm:$0xff]  ;;  %v2131_v47 = vld [vmem:[#allocation8 + $0x130] sm:$0xff] }
  0x3d   :  { %v2116_v42 = vld [vmem:[#allocation8 + $0xb8] sm:$0xff]  ;;  %v2139_v52 = vld [vmem:[#allocation8 + $0x170] sm:$0xff]  ;;  %v2114_v21 = vld [vmem:[#allocation8 + $0xa8] sm:$0xff] }
  0x3e   :  { %1275 = vmatpush.bf16.msrb.mxu2 %v2099_v50  ;;  %v2140_v43 = vld [vmem:[#allocation8 + $0x178] sm:$0xff]  ;;  %v2138_v22 = vld [vmem:[#allocation8 + $0x168] sm:$0xff] }
  0x3f   :  { %646 = vmatpush.bf16.msrb.mxu0 %v1792_v53  ;;  %v2124_v44 = vld [vmem:[#allocation8 + $0xf8] sm:$0xff]  ;;  %v2123_v53 = vld [vmem:[#allocation8 + $0xf0] sm:$0xff]  ;;  %v2122_v23 = vld [vmem:[#allocation8 + $0xe8] sm:$0xff] }
  0x40   :  { %1324 = vmatpush.bf16.msrb.mxu3 %v2107_v51  ;;  %695 = vmatpush.bf16.msrb.mxu1 %v1796_v54  ;;  %v2431_v45 = vld [vmem:[#allocation7] sm:$0x3f]  ;;  %v2115_v51 = vld [vmem:[#allocation8 + $0xb0] sm:$0xff] }
  0x41   :  { %v2434_v49 = vperm.slane %v2431_v45, 0  ;;  %v2438_v50 = vperm.slane %v2431_v45, 1  ;;  %v2446_v62 = vperm.slane %v2431_v45, 2 }
  0x42   :  { %1276 = vmatpush.bf16.msrb.mxu2 %v2098_v55 }
  0x43   :  { %647 = vmatpush.bf16.msrb.mxu0 %v1768_v61 }
  0x44   :  { %1325 = vmatpush.bf16.msrb.mxu3 %v2106_v56  ;;  %696 = vmatpush.bf16.msrb.mxu1 %v1772_v63 }
  0x46   :  { %461 = vmatmul.bf16.gmra.mxu0 %v2389_v57  ;;  %1277 = vmatpush.bf16.msrb.mxu2 %v2097_v0 }
  0x47   :  { %510 = vmatmul.bf16.gmra.mxu1 %v2389_v57  ;;  %648 = vmatpush.bf16.msrb.mxu0 %v1744_v6 }
  0x48   :  { %1326 = vmatpush.bf16.msrb.mxu3 %v2105_v1  ;;  %697 = vmatpush.bf16.msrb.mxu1 %v1748_v8  ;;  %v2449_v1 = vperm.slane %v2431_v45, 3 }
  0x49   :  { %559 = vmatmul.bf16.gmra.mxu2 %v2389_v57 }
  0x4a   :  { %1278 = vmatpush.bf16.msrb.mxu2 %v2096_v9 }
  0x4b   :  { %608 = vmatmul.bf16.gmra.mxu3 %v2389_v57  ;;  %649 = vmatpush.bf16.msrb.mxu0 %v1720_v15 }
  0x4c   :  { %1327 = vmatpush.bf16.msrb.mxu3 %v2104_v10  ;;  %698 = vmatpush.bf16.msrb.mxu1 %v1724_v17  ;;  %v2130_v10 = vld [vmem:[#allocation8 + $0x128] sm:$0xff] }
  0x4e   :  { %1279 = vmatpush.bf16.msrb.mxu2 %v2095_v18 }
  0x4f   :  { %650 = vmatpush.bf16.msrb.mxu0 %v1696_v24 }
  0x50   :  { %1328 = vmatpush.bf16.msrb.mxu3 %v2103_v19  ;;  %699 = vmatpush.bf16.msrb.mxu1 %v1700_v26 }
  0x52   :  { %1280 = vmatpush.bf16.msrb.mxu2 %v2094_v27 }
  0x53   :  { %651 = vmatpush.bf16.msrb.mxu0 %v1672_v33 }
  0x54   :  { %1329 = vmatpush.bf16.msrb.mxu3 %v2102_v28  ;;  %700 = vmatpush.bf16.msrb.mxu1 %v1676_v35 }
  0x56   :  { %466 = vmatmul.bf16.gmra.mxu0 %v2395_v2  ;;  %1281 = vmatpush.bf16.msrb.mxu2 %v2093_v37 }
  0x57   :  { %515 = vmatmul.bf16.gmra.mxu1 %v2395_v2  ;;  %1372 = vmatpush.bf16.msra.mxu0 %v2116_v42 }
  0x58   :  { %1330 = vmatpush.bf16.msrb.mxu3 %v2101_v39  ;;  %1421 = vmatpush.bf16.msra.mxu1 %v2124_v44 }
  0x59   :  { %564 = vmatmul.bf16.gmra.mxu2 %v2395_v2 }
  0x5a   :  { %1470 = vmatpush.bf16.msra.mxu2 %v2132_v41 }
  0x5b   :  { %613 = vmatmul.bf16.gmra.mxu3 %v2395_v2  ;;  %1373 = vmatpush.bf16.msra.mxu0 %v2115_v51 }
  0x5c   :  { %1519 = vmatpush.bf16.msra.mxu3 %v2140_v43  ;;  %1422 = vmatpush.bf16.msra.mxu1 %v2123_v53 }
  0x5e   :  { %1471 = vmatpush.bf16.msra.mxu2 %v2131_v47 }
  0x5f   :  { %1374 = vmatpush.bf16.msra.mxu0 %v2114_v21 }
  0x60   :  { %1520 = vmatpush.bf16.msra.mxu3 %v2139_v52  ;;  %1423 = vmatpush.bf16.msra.mxu1 %v2122_v23 }
  0x62   :  { %1472 = vmatpush.bf16.msra.mxu2 %v2130_v10 }
  0x64   :  { %1521 = vmatpush.bf16.msra.mxu3 %v2138_v22  ;;  %v2128_v22 = vld [vmem:[#allocation8 + $0x118] sm:$0xff] }
  0x66   :  { %471 = vmatmul.bf16.gmra.mxu0 %v2401_v11 }
  0x67   :  { %520 = vmatmul.bf16.gmra.mxu1 %v2401_v11 }
  0x69   :  { %569 = vmatmul.bf16.gmra.mxu2 %v2401_v11 }
  0x6b   :  { %618 = vmatmul.bf16.gmra.mxu3 %v2401_v11 }
  0x76   :  { %476 = vmatmul.bf16.gmra.mxu0 %v2407_v20 }
  0x77   :  { %525 = vmatmul.bf16.gmra.mxu1 %v2407_v20 }
  0x79   :  { %574 = vmatmul.bf16.gmra.mxu2 %v2407_v20 }
  0x7b   :  { %623 = vmatmul.bf16.gmra.mxu3 %v2407_v20 }
  0x86   :  { %481 = vmatmul.bf16.gmra.mxu0 %v2413_v29 }
  0x87   :  { %530 = vmatmul.bf16.gmra.mxu1 %v2413_v29 }
  0x89   :  { %579 = vmatmul.bf16.gmra.mxu2 %v2413_v29 }
  0x8b   :  { %628 = vmatmul.bf16.gmra.mxu3 %v2413_v29 }
  0x96   :  { %486 = vmatmul.bf16.gmra.mxu0 %v2419_v38 }
  0x97   :  { %535 = vmatmul.bf16.gmra.mxu1 %v2419_v38 }
  0x99   :  { %584 = vmatmul.bf16.gmra.mxu2 %v2419_v38 }
  0x9b   :  { %633 = vmatmul.bf16.gmra.mxu3 %v2419_v38 }
  0xa6   :  { %491 = vmatmul.bf16.gmra.mxu0 %v2425_v40 }
  0xa7   :  { %540 = vmatmul.bf16.gmra.mxu1 %v2425_v40 }
  0xa9   :  { %589 = vmatmul.bf16.gmra.mxu2 %v2425_v40 }
  0xab   :  { %638 = vmatmul.bf16.gmra.mxu3 %v2425_v40 }
  0xb3   :  { %v457_v46 = vpop.f32.mrf.mxu0 }
  0xb4   :  { %v506_v48 = vpop.f32.mrf.mxu1  ;;  %v458_v54 = vadd.f32 %v457_v46, %v2434_v49 }
  0xb5   :  { %v507_v55 = vadd.f32 %v506_v48, %v2438_v50  ;;  %v2129_v48 = vld [vmem:[#allocation8 + $0x120] sm:$0xff] }
  0xb6   :  { %652 = vmatmul.bf16.vlgmr.msrb.gmra.mxu0 %v2383_v36  ;;  %v742_v63 = vmax.f32 %v458_v54, 0.0  ;;  %1473 = vmatpush.bf16.msra.mxu2 %v2129_v48 }
  0xb7   :  { %701 = vmatmul.bf16.vlgmr.msrb.gmra.mxu1 %v2383_v36  ;;  %v743_v3 = vmax.f32 %v507_v55, 0.0 }
  0xba   :  { %1474 = vmatpush.bf16.msra.mxu2 %v2128_v22 }
  0xbb   :  { %v459_v56 = vpop.f32.mrf.mxu0 }
  0xbc   :  { %v460_v58 = vadd.f32 %v459_v56, %v2434_v49  ;;  %v508_v59 = vpop.f32.mrf.mxu1  ;;  %v555_v60 = vpop.f32.mrf.mxu2 }
  0xbd   :  { %v509_v61 = vadd.f32 %v508_v59, %v2438_v50  ;;  %v556_v6 = vadd.f32 %v555_v60, %v2446_v62  ;;  %v2113_v60 = vld [vmem:[#allocation8 + $0xa0] sm:$0xff] }
  0xbe   :  { %v604_v36 = vpop.f32.mrf.mxu3  ;;  %v748_v0 = vmax.f32 %v460_v58, 0.0  ;;  %1375 = vmatpush.bf16.msra.mxu0 %v2113_v60 }
  0xbf   :  { %v749_v4 = vmax.f32 %v509_v61, 0.0  ;;  %v605_v8 = vadd.f32 %v604_v36, %v2449_v1  ;;  %v744_v14 = vmax.f32 %v556_v6, 0.0  ;;  %v2137_v61 = vld [vmem:[#allocation8 + $0x160] sm:$0xff] }
  0xc0   :  { %v838_v5 = vpack.c.bf16 %v748_v0, %v742_v63  ;;  %v2121_v36 = vld [vmem:[#allocation8 + $0xe0] sm:$0xff]  ;;  %1522 = vmatpush.bf16.msra.mxu3 %v2137_v61 }
  0xc1   :  { %v839_v7 = vpack.c.bf16 %v749_v4, %v743_v3  ;;  %v745_v17 = vmax.f32 %v605_v8, 0.0  ;;  %1424 = vmatpush.bf16.msra.mxu1 %v2121_v36  ;;  %v2127_v36 = vld [vmem:[#allocation8 + $0x110] sm:$0xff] }
  0xc2   :  { %1282 = vmatmul.bf16.vlgmr.msrb.gmra.mxu2 %v838_v5 }
  0xc3   :  { %1331 = vmatmul.bf16.vlgmr.msrb.gmra.mxu3 %v839_v7  ;;  %v462_v9 = vpop.f32.mrf.mxu0  ;;  %1475 = vmatpush.bf16.msra.mxu2 %v2127_v36 }
  0xc4   :  { %v511_v12 = vpop.f32.mrf.mxu1  ;;  %v557_v13 = vpop.f32.mrf.mxu2  ;;  %v463_v26 = vadd.f32 %v462_v9, %v2434_v49 }
  0xc5   :  { %v558_v15 = vadd.f32 %v557_v13, %v2446_v62  ;;  %v512_v28 = vadd.f32 %v511_v12, %v2438_v50 }
  0xc6   :  { %v606_v16 = vpop.f32.mrf.mxu3  ;;  %657 = vmatmul.bf16.gmra.mxu0 %v2389_v57  ;;  %v754_v35 = vmax.f32 %v463_v26, 0.0 }
  0xc7   :  { %v607_v18 = vadd.f32 %v606_v16, %v2449_v1  ;;  %v750_v19 = vmax.f32 %v558_v15, 0.0  ;;  %706 = vmatmul.bf16.gmra.mxu1 %v2389_v57  ;;  %v755_v39 = vmax.f32 %v512_v28, 0.0 }
  0xc9   :  { %v751_v24 = vmax.f32 %v607_v18, 0.0  ;;  %v2457_v25 = vpack.c.bf16 %v750_v19, %v744_v14 }
  0xcb   :  { %v2460_v27 = vpack.c.bf16 %v751_v24, %v745_v17  ;;  %v464_v30 = vpop.f32.mrf.mxu0 }
  0xcc   :  { %v465_v31 = vadd.f32 %v464_v30, %v2434_v49  ;;  %v513_v32 = vpop.f32.mrf.mxu1  ;;  %v560_v57 = vpop.f32.mrf.mxu2 }
  0xcd   :  { %v514_v33 = vadd.f32 %v513_v32, %v2438_v50  ;;  %v561_v43 = vadd.f32 %v560_v57, %v2446_v62 }
  0xce   :  { %v609_v34 = vpop.f32.mrf.mxu3  ;;  %v760_v37 = vmax.f32 %v465_v31, 0.0 }
  0xcf   :  { %v761_v41 = vmax.f32 %v514_v33, 0.0  ;;  %v610_v46 = vadd.f32 %v609_v34, %v2449_v1  ;;  %v756_v53 = vmax.f32 %v561_v43, 0.0  ;;  %v2112_v33 = vld [vmem:[#allocation8 + $0x98] sm:$0xff] }
  0xd0   :  { %v844_v42 = vpack.c.bf16 %v760_v37, %v754_v35  ;;  %v2136_v34 = vld [vmem:[#allocation8 + $0x158] sm:$0xff]  ;;  %1376 = vmatpush.bf16.msra.mxu0 %v2112_v33 }
  0xd1   :  { %v845_v44 = vpack.c.bf16 %v761_v41, %v755_v39  ;;  %v757_v56 = vmax.f32 %v610_v46, 0.0  ;;  %v2120_v35 = vld [vmem:[#allocation8 + $0xd8] sm:$0xff]  ;;  %1523 = vmatpush.bf16.msra.mxu3 %v2136_v34 }
  0xd2   :  { %1287 = vmatmul.bf16.gmra.mxu2 %v844_v42  ;;  %1425 = vmatpush.bf16.msra.mxu1 %v2120_v35 }
  0xd3   :  { %1336 = vmatmul.bf16.gmra.mxu3 %v845_v44  ;;  %v467_v47 = vpop.f32.mrf.mxu0 }
  0xd4   :  { %v516_v51 = vpop.f32.mrf.mxu1  ;;  %v562_v52 = vpop.f32.mrf.mxu2  ;;  %v468_v3 = vadd.f32 %v467_v47, %v2434_v49 }
  0xd5   :  { %v563_v54 = vadd.f32 %v562_v52, %v2446_v62  ;;  %v517_v5 = vadd.f32 %v516_v51, %v2438_v50 }
  0xd6   :  { %v611_v55 = vpop.f32.mrf.mxu3  ;;  %662 = vmatmul.bf16.gmra.mxu0 %v2395_v2  ;;  %v766_v12 = vmax.f32 %v468_v3, 0.0 }
  0xd7   :  { %v612_v58 = vadd.f32 %v611_v55, %v2449_v1  ;;  %v762_v59 = vmax.f32 %v563_v54, 0.0  ;;  %711 = vmatmul.bf16.gmra.mxu1 %v2395_v2  ;;  %v767_v14 = vmax.f32 %v517_v5, 0.0 }
  0xd9   :  { %v763_v63 = vmax.f32 %v612_v58, 0.0  ;;  %v2471_v0 = vpack.c.bf16 %v762_v59, %v756_v53 }
  0xdb   :  { %v2474_v4 = vpack.c.bf16 %v763_v63, %v757_v56  ;;  %v469_v6 = vpop.f32.mrf.mxu0 }
  0xdc   :  { %v470_v7 = vadd.f32 %v469_v6, %v2434_v49  ;;  %v518_v8 = vpop.f32.mrf.mxu1  ;;  %v565_v2 = vpop.f32.mrf.mxu2 }
  0xdd   :  { %v519_v9 = vadd.f32 %v518_v8, %v2438_v50  ;;  %v566_v17 = vadd.f32 %v565_v2, %v2446_v62 }
  0xde   :  { %v614_v10 = vpop.f32.mrf.mxu3  ;;  %v772_v13 = vmax.f32 %v470_v7, 0.0 }
  0xdf   :  { %v773_v15 = vmax.f32 %v519_v9, 0.0  ;;  %v615_v19 = vadd.f32 %v614_v10, %v2449_v1  ;;  %v768_v26 = vmax.f32 %v566_v17, 0.0  ;;  %v2111_v10 = vld [vmem:[#allocation8 + $0x90] sm:$0xff] }
  0xe0   :  { %v850_v16 = vpack.c.bf16 %v772_v13, %v766_v12  ;;  %v2135_v12 = vld [vmem:[#allocation8 + $0x150] sm:$0xff]  ;;  %1377 = vmatpush.bf16.msra.mxu0 %v2111_v10 }
  0xe1   :  { %v851_v18 = vpack.c.bf16 %v773_v15, %v767_v14  ;;  %v769_v31 = vmax.f32 %v615_v19, 0.0  ;;  %v2119_v13 = vld [vmem:[#allocation8 + $0xd0] sm:$0xff]  ;;  %1524 = vmatpush.bf16.msra.mxu3 %v2135_v12 }
  0xe2   :  { %1292 = vmatmul.bf16.gmra.mxu2 %v850_v16  ;;  %1426 = vmatpush.bf16.msra.mxu1 %v2119_v13 }
  0xe3   :  { %1341 = vmatmul.bf16.gmra.mxu3 %v851_v18  ;;  %v472_v21 = vpop.f32.mrf.mxu0 }
  0xe4   :  { %v521_v23 = vpop.f32.mrf.mxu1  ;;  %v567_v24 = vpop.f32.mrf.mxu2  ;;  %v473_v41 = vadd.f32 %v472_v21, %v2434_v49 }
  0xe5   :  { %v568_v28 = vadd.f32 %v567_v24, %v2446_v62  ;;  %v522_v43 = vadd.f32 %v521_v23, %v2438_v50 }
  0xe6   :  { %v616_v30 = vpop.f32.mrf.mxu3  ;;  %667 = vmatmul.bf16.gmra.mxu0 %v2401_v11  ;;  %v778_v52 = vmax.f32 %v473_v41, 0.0 }
  0xe7   :  { %v617_v32 = vadd.f32 %v616_v30, %v2449_v1  ;;  %v774_v57 = vmax.f32 %v568_v28, 0.0  ;;  %716 = vmatmul.bf16.gmra.mxu1 %v2401_v11  ;;  %v779_v54 = vmax.f32 %v522_v43, 0.0 }
  0xe9   :  { %v775_v37 = vmax.f32 %v617_v32, 0.0  ;;  %v2485_v39 = vpack.c.bf16 %v774_v57, %v768_v26 }
  0xeb   :  { %v2488_v42 = vpack.c.bf16 %v775_v37, %v769_v31  ;;  %v474_v44 = vpop.f32.mrf.mxu0  ;;  %v2126_v37 = vld [vmem:[#allocation8 + $0x108] sm:$0xff] }
  0xec   :  { %v475_v46 = vadd.f32 %v474_v44, %v2434_v49  ;;  %v523_v47 = vpop.f32.mrf.mxu1  ;;  %v570_v11 = vpop.f32.mrf.mxu2  ;;  %1476 = vmatpush.bf16.msra.mxu2 %v2126_v37 }
  0xed   :  { %v524_v48 = vadd.f32 %v523_v47, %v2438_v50  ;;  %v571_v58 = vadd.f32 %v570_v11, %v2446_v62 }
  0xee   :  { %v619_v51 = vpop.f32.mrf.mxu3  ;;  %v784_v53 = vmax.f32 %v475_v46, 0.0 }
  0xef   :  { %v785_v55 = vmax.f32 %v524_v48, 0.0  ;;  %v620_v60 = vadd.f32 %v619_v51, %v2449_v1  ;;  %v780_v5 = vmax.f32 %v571_v58, 0.0 }
  0xf0   :  { %v856_v56 = vpack.c.bf16 %v784_v53, %v778_v52  ;;  %v2110_v52 = vld [vmem:[#allocation8 + $0x88] sm:$0xff] }
  0xf1   :  { %v857_v59 = vpack.c.bf16 %v785_v55, %v779_v54  ;;  %v781_v8 = vmax.f32 %v620_v60, 0.0  ;;  %v2134_v53 = vld [vmem:[#allocation8 + $0x148] sm:$0xff]  ;;  %1378 = vmatpush.bf16.msra.mxu0 %v2110_v52 }
  0xf2   :  { %1297 = vmatmul.bf16.gmra.mxu2 %v856_v56  ;;  %v2118_v54 = vld [vmem:[#allocation8 + $0xc8] sm:$0xff]  ;;  %1525 = vmatpush.bf16.msra.mxu3 %v2134_v53 }
  0xf3   :  { %1346 = vmatmul.bf16.gmra.mxu3 %v857_v59  ;;  %v477_v61 = vpop.f32.mrf.mxu0  ;;  %1427 = vmatpush.bf16.msra.mxu1 %v2118_v54 }
  0xf4   :  { %v526_v63 = vpop.f32.mrf.mxu1  ;;  %v572_v3 = vpop.f32.mrf.mxu2  ;;  %v478_v16 = vadd.f32 %v477_v61, %v2434_v49 }
  0xf5   :  { %v573_v6 = vadd.f32 %v572_v3, %v2446_v62  ;;  %v527_v18 = vadd.f32 %v526_v63, %v2438_v50 }
  0xf6   :  { %v621_v7 = vpop.f32.mrf.mxu3  ;;  %672 = vmatmul.bf16.gmra.mxu0 %v2407_v20  ;;  %v790_v26 = vmax.f32 %v478_v16, 0.0  ;;  %v2117_v16 = vld [vmem:[#allocation8 + $0xc0] sm:$0xff] }
  0xf7   :  { %v622_v2 = vadd.f32 %v621_v7, %v2449_v1  ;;  %v786_v9 = vmax.f32 %v573_v6, 0.0  ;;  %721 = vmatmul.bf16.gmra.mxu1 %v2407_v20  ;;  %v791_v30 = vmax.f32 %v527_v18, 0.0 }
  0xf8   :  { %1428 = vmatpush.bf16.msra.mxu1 %v2117_v16 }
  0xf9   :  { %v787_v14 = vmax.f32 %v622_v2, 0.0  ;;  %v2499_v15 = vpack.c.bf16 %v786_v9, %v780_v5 }
  0xfb   :  { %v2502_v17 = vpack.c.bf16 %v787_v14, %v781_v8  ;;  %v479_v19 = vpop.f32.mrf.mxu0  ;;  %v2109_v14 = vld [vmem:[#allocation8 + $0x80] sm:$0xff] }
  0xfc   :  { %v480_v21 = vadd.f32 %v479_v19, %v2434_v49  ;;  %v528_v22 = vpop.f32.mrf.mxu1  ;;  %v575_v20 = vpop.f32.mrf.mxu2  ;;  %v2125_v19 = vld [vmem:[#allocation8 + $0x100] sm:$0xff]  ;;  %1379 = vmatpush.bf16.msra.mxu0 %v2109_v14 }
  0xfd   :  { %v529_v23 = vadd.f32 %v528_v22, %v2438_v50  ;;  %v576_v57 = vadd.f32 %v575_v20, %v2446_v62  ;;  %1477 = vmatpush.bf16.msra.mxu2 %v2125_v19 }
  0xfe   :  { %v624_v24 = vpop.f32.mrf.mxu3  ;;  %v796_v28 = vmax.f32 %v480_v21, 0.0 }
  0xff   :  { %v797_v31 = vmax.f32 %v529_v23, 0.0  ;;  %v625_v34 = vadd.f32 %v624_v24, %v2449_v1  ;;  %v792_v44 = vmax.f32 %v576_v57, 0.0 }
 0x100   :  { %v862_v32 = vpack.c.bf16 %v796_v28, %v790_v26 }
 0x101   :  { %v863_v33 = vpack.c.bf16 %v797_v31, %v791_v30  ;;  %v793_v11 = vmax.f32 %v625_v34, 0.0  ;;  %v2133_v31 = vld [vmem:[#allocation8 + $0x140] sm:$0xff] }
 0x102   :  { %1302 = vmatmul.bf16.gmra.mxu2 %v862_v32  ;;  %1526 = vmatpush.bf16.msra.mxu3 %v2133_v31 }
 0x103   :  { %1351 = vmatmul.bf16.gmra.mxu3 %v863_v33  ;;  %v482_v35 = vpop.f32.mrf.mxu0 }
 0x104   :  { %v531_v41 = vpop.f32.mrf.mxu1  ;;  %v577_v43 = vpop.f32.mrf.mxu2  ;;  %v483_v58 = vadd.f32 %v482_v35, %v2434_v49 }
 0x105   :  { %v578_v46 = vadd.f32 %v577_v43, %v2446_v62  ;;  %v532_v60 = vadd.f32 %v531_v41, %v2438_v50 }
 0x106   :  { %v626_v47 = vpop.f32.mrf.mxu3  ;;  %677 = vmatmul.bf16.gmra.mxu0 %v2413_v29  ;;  %v802_v6 = vmax.f32 %v483_v58, 0.0 }
 0x107   :  { %v627_v48 = vadd.f32 %v626_v47, %v2449_v1  ;;  %v798_v51 = vmax.f32 %v578_v46, 0.0  ;;  %726 = vmatmul.bf16.gmra.mxu1 %v2413_v29  ;;  %v803_v8 = vmax.f32 %v532_v60, 0.0 }
 0x109   :  { %v799_v55 = vmax.f32 %v627_v48, 0.0  ;;  %v2513_v56 = vpack.c.bf16 %v798_v51, %v792_v44 }
 0x10b   :  { %v2516_v59 = vpack.c.bf16 %v799_v55, %v793_v11  ;;  %v484_v61 = vpop.f32.mrf.mxu0 }
 0x10c   :  { %v485_v36 = vadd.f32 %v484_v61, %v2434_v49  ;;  %v533_v63 = vpop.f32.mrf.mxu1  ;;  %v580_v29 = vpop.f32.mrf.mxu2 }
 0x10d   :  { %v534_v3 = vadd.f32 %v533_v63, %v2438_v50  ;;  %v581_v10 = vadd.f32 %v580_v29, %v2446_v62 }
 0x10e   :  { %v629_v5 = vpop.f32.mrf.mxu3  ;;  %v808_v7 = vmax.f32 %v485_v36, 0.0 }
 0x10f   :  { %v809_v2 = vmax.f32 %v534_v3, 0.0  ;;  %v630_v13 = vadd.f32 %v629_v5, %v2449_v1  ;;  %v804_v20 = vmax.f32 %v581_v10, 0.0 }
 0x110   :  { %v868_v9 = vpack.c.bf16 %v808_v7, %v802_v6 }
 0x111   :  { %v869_v12 = vpack.c.bf16 %v809_v2, %v803_v8  ;;  %v805_v26 = vmax.f32 %v630_v13, 0.0 }
 0x112   :  { %1307 = vmatmul.bf16.gmra.mxu2 %v868_v9 }
 0x113   :  { %1356 = vmatmul.bf16.gmra.mxu3 %v869_v12  ;;  %v487_v18 = vpop.f32.mrf.mxu0 }
 0x114   :  { %v536_v21 = vpop.f32.mrf.mxu1  ;;  %v582_v22 = vpop.f32.mrf.mxu2  ;;  %v488_v33 = vadd.f32 %v487_v18, %v2434_v49 }
 0x115   :  { %v583_v23 = vadd.f32 %v582_v22, %v2446_v62  ;;  %v537_v35 = vadd.f32 %v536_v21, %v2438_v50 }
 0x116   :  { %v631_v24 = vpop.f32.mrf.mxu3  ;;  %682 = vmatmul.bf16.gmra.mxu0 %v2419_v38 }
 0x117   :  { %v632_v28 = vadd.f32 %v631_v24, %v2449_v1  ;;  %v810_v30 = vmax.f32 %v583_v23, 0.0  ;;  %731 = vmatmul.bf16.gmra.mxu1 %v2419_v38  ;;  %v814_v38 = vmax.f32 %v488_v33, 0.0  ;;  %v815_v48 = vmax.f32 %v537_v35, 0.0 }
 0x119   :  { %v811_v32 = vmax.f32 %v632_v28, 0.0  ;;  %v2527_v57 = vpack.c.bf16 %v810_v30, %v804_v20 }
 0x11b   :  { %v2530_v34 = vpack.c.bf16 %v811_v32, %v805_v26  ;;  %v489_v37 = vpop.f32.mrf.mxu0 }
 0x11c   :  { %v490_v41 = vadd.f32 %v489_v37, %v2434_v49  ;;  %v538_v43 = vpop.f32.mrf.mxu1  ;;  %v585_v44 = vpop.f32.mrf.mxu2  ;;  %v2553_v37 = vperm.slane %v2431_v45, 4 }
 0x11d   :  { %v539_v46 = vadd.f32 %v538_v43, %v2438_v50  ;;  %v586_v53 = vadd.f32 %v585_v44, %v2446_v62  ;;  %v2558_v43 = vperm.slane %v2431_v45, 5 }
 0x11e   :  { %v634_v47 = vpop.f32.mrf.mxu3  ;;  %v820_v11 = vmax.f32 %v490_v41, 0.0 }
 0x11f   :  { %v821_v51 = vmax.f32 %v539_v46, 0.0  ;;  %v635_v55 = vadd.f32 %v634_v47, %v2449_v1  ;;  %v816_v36 = vmax.f32 %v586_v53, 0.0 }
 0x120   :  { %v874_v52 = vpack.c.bf16 %v820_v11, %v814_v38 }
 0x121   :  { %v875_v54 = vpack.c.bf16 %v821_v51, %v815_v48  ;;  %v817_v3 = vmax.f32 %v635_v55, 0.0 }
 0x122   :  { %1312 = vmatmul.bf16.gmra.mxu2 %v874_v52 }
 0x123   :  { %1361 = vmatmul.bf16.gmra.mxu3 %v875_v54  ;;  %v492_v58 = vpop.f32.mrf.mxu0 }
 0x124   :  { %v541_v60 = vpop.f32.mrf.mxu1  ;;  %v587_v61 = vpop.f32.mrf.mxu2  ;;  %v493_v2 = vadd.f32 %v492_v58, %v2434_v49  ;;  %v2572_v58 = vld [vmem:[%s2690_s4] ss:$0 sm:$0xff]  ;;  %s2334_s4 = smov [#allocation10]  }
 0x125   :  { %v588_v63 = vadd.f32 %v587_v61, %v2446_v62  ;;  %v542_v10 = vadd.f32 %v541_v60, %v2438_v50  ;;  %s1604_s15 = sshll.u32 %s2334_s4, 4  ;;  %s1605_s15 = int_to_ptr.vmem [resolvable:$true] %s1604_s15 }
 0x126   :  { %v636_v29 = vpop.f32.mrf.mxu3  ;;  %687 = vmatmul.bf16.gmra.mxu0 %v2425_v40  ;;  %v826_v21 = vmax.f32 %v493_v2, 0.0 }
 0x127   :  { %v637_v5 = vadd.f32 %v636_v29, %v2449_v1  ;;  %v822_v6 = vmax.f32 %v588_v63, 0.0  ;;  %736 = vmatmul.bf16.gmra.mxu1 %v2425_v40  ;;  %v827_v40 = vmax.f32 %v542_v10, 0.0 }
 0x129   :  { %v823_v7 = vmax.f32 %v637_v5, 0.0  ;;  %v2541_v8 = vpack.c.bf16 %v822_v6, %v816_v36 }
 0x12b   :  { %v2544_v9 = vpack.c.bf16 %v823_v7, %v817_v3  ;;  %v494_v12 = vpop.f32.mrf.mxu0 }
 0x12c   :  { %v495_v13 = vadd.f32 %v494_v12, %v2434_v49  ;;  %v543_v14 = vpop.f32.mrf.mxu1  ;;  %v590_v16 = vpop.f32.mrf.mxu2 }
 0x12d   :  { %v544_v18 = vadd.f32 %v543_v14, %v2438_v50  ;;  %v591_v24 = vadd.f32 %v590_v16, %v2446_v62 }
 0x12e   :  { %v639_v19 = vpop.f32.mrf.mxu3  ;;  %v832_v22 = vmax.f32 %v495_v13, 0.0 }
 0x12f   :  { %v833_v20 = vmax.f32 %v544_v18, 0.0  ;;  %v640_v28 = vadd.f32 %v639_v19, %v2449_v1  ;;  %v828_v32 = vmax.f32 %v591_v24, 0.0 }
 0x130   :  { %v880_v23 = vpack.c.bf16 %v832_v22, %v826_v21 }
 0x131   :  { %v881_v26 = vpack.c.bf16 %v833_v20, %v827_v40  ;;  %v829_v35 = vmax.f32 %v640_v28, 0.0 }
 0x132   :  { %1317 = vmatmul.bf16.gmra.mxu2 %v880_v23 }
 0x133   :  { %1366 = vmatmul.bf16.gmra.mxu3 %v881_v26  ;;  %v653_v30 = vpop.f32.mrf.mxu0 }
 0x134   :  { %v702_v31 = vpop.f32.mrf.mxu1  ;;  %v592_v49 = vpop.f32.mrf.mxu2 }
 0x135   :  { %v593_v33 = vadd.f32 %v592_v49, %v2446_v62  ;;  %v654_v62 = vadd.f32 %v653_v30, %v2553_v37  ;;  %v703_v11 = vadd.f32 %v702_v31, %v2558_v43 }
 0x136   :  { %v641_v50 = vpop.f32.mrf.mxu3  ;;  %1380 = vmatmul.bf16.vlgmr.msra.gmra.mxu0 %v2457_v25 }
 0x137   :  { %v642_v41 = vadd.f32 %v641_v50, %v2449_v1  ;;  %v834_v44 = vmax.f32 %v593_v33, 0.0  ;;  %1429 = vmatmul.bf16.vlgmr.msra.gmra.mxu1 %v2460_v27  ;;  %v746_v45 = vmax.f32 %v654_v62, 0.0  ;;  %v747_v53 = vmax.f32 %v703_v11, 0.0 }
 0x139   :  { %v835_v46 = vmax.f32 %v642_v41, 0.0  ;;  %v2561_v47 = vpack.c.bf16 %v834_v44, %v828_v32 }
 0x13b   :  { %v2564_v38 = vpack.c.bf16 %v835_v46, %v829_v35  ;;  %v655_v48 = vpop.f32.mrf.mxu0 }
 0x13c   :  { %v656_v25 = vadd.f32 %v655_v48, %v2553_v37  ;;  %v704_v51 = vpop.f32.mrf.mxu1 }
 0x13d   :  { %v705_v1 = vadd.f32 %v704_v51, %v2558_v43 }
 0x13e   :  { %v752_v52 = vmax.f32 %v656_v25, 0.0 }
 0x13f   :  { %v753_v54 = vmax.f32 %v705_v1, 0.0 }
 0x140   :  { %v842_v27 = vpack.c.bf16 %v752_v52, %v746_v45 }
 0x141   :  { %v843_v55 = vpack.c.bf16 %v753_v54, %v747_v53 }
 0x142   :  { %1478 = vmatmul.bf16.vlgmr.msra.gmra.mxu2 %v842_v27 }
 0x143   :  { %1527 = vmatmul.bf16.vlgmr.msra.gmra.mxu3 %v843_v55  ;;  %v658_v60 = vpop.f32.mrf.mxu0 }
 0x144   :  { %v707_v61 = vpop.f32.mrf.mxu1  ;;  %v659_v5 = vadd.f32 %v658_v60, %v2553_v37 }
 0x145   :  { %v1283_v36 = vpop.f32.mrf.mxu2  ;;  %v708_v6 = vadd.f32 %v707_v61, %v2558_v43 }
 0x146   :  { %v1284_v63 = vadd.f32 %v2572_v58, %v1283_v36  ;;  %v1332_v29 = vpop.f32.mrf.mxu3  ;;  %1385 = vmatmul.bf16.gmra.mxu0 %v2471_v0  ;;  %v758_v14 = vmax.f32 %v659_v5, 0.0 }
 0x147   :  { %1434 = vmatmul.bf16.gmra.mxu1 %v2474_v4  ;;  %v759_v19 = vmax.f32 %v708_v6, 0.0 }
 0x148   :  { %v2577_v3 = vadd.f32 %v1332_v29, %v1284_v63 }
 0x14b   :  { %v660_v7 = vpop.f32.mrf.mxu0 }
 0x14c   :  { %v661_v2 = vadd.f32 %v660_v7, %v2553_v37  ;;  %v709_v10 = vpop.f32.mrf.mxu1 }
 0x14d   :  { %v710_v12 = vadd.f32 %v709_v10, %v2558_v43  ;;  %v1285_v13 = vpop.f32.mrf.mxu2 }
 0x14e   :  { %v764_v16 = vmax.f32 %v661_v2, 0.0  ;;  %v1286_v18 = vadd.f32 %v2572_v58, %v1285_v13  ;;  %v1334_v0 = vpop.f32.mrf.mxu3 }
 0x14f   :  { %v765_v4 = vmax.f32 %v710_v12, 0.0 }
 0x150   :  { %v2584_v21 = vadd.f32 %v1334_v0, %v1286_v18  ;;  %v848_v22 = vpack.c.bf16 %v764_v16, %v758_v14 }
 0x151   :  { %v849_v40 = vpack.c.bf16 %v765_v4, %v759_v19 }
 0x152   :  { %1483 = vmatmul.bf16.gmra.mxu2 %v848_v22 }
 0x153   :  { %1532 = vmatmul.bf16.gmra.mxu3 %v849_v40  ;;  %v663_v20 = vpop.f32.mrf.mxu0 }
 0x154   :  { %v712_v23 = vpop.f32.mrf.mxu1  ;;  %v664_v31 = vadd.f32 %v663_v20, %v2553_v37 }
 0x155   :  { %v1288_v24 = vpop.f32.mrf.mxu2  ;;  %v713_v49 = vadd.f32 %v712_v23, %v2558_v43 }
 0x156   :  { %v1289_v26 = vadd.f32 %v2572_v58, %v1288_v24  ;;  %v1337_v28 = vpop.f32.mrf.mxu3  ;;  %1390 = vmatmul.bf16.gmra.mxu0 %v2485_v39  ;;  %v770_v44 = vmax.f32 %v664_v31, 0.0 }
 0x157   :  { %1439 = vmatmul.bf16.gmra.mxu1 %v2488_v42  ;;  %v771_v11 = vmax.f32 %v713_v49, 0.0 }
 0x158   :  { %v2589_v30 = vadd.f32 %v1337_v28, %v1289_v26 }
 0x15b   :  { %v665_v32 = vpop.f32.mrf.mxu0 }
 0x15c   :  { %v666_v33 = vadd.f32 %v665_v32, %v2553_v37  ;;  %v714_v50 = vpop.f32.mrf.mxu1 }
 0x15d   :  { %v715_v35 = vadd.f32 %v714_v50, %v2558_v43  ;;  %v1290_v41 = vpop.f32.mrf.mxu2 }
 0x15e   :  { %v776_v46 = vmax.f32 %v666_v33, 0.0  ;;  %v1291_v62 = vadd.f32 %v2572_v58, %v1290_v41  ;;  %v1339_v39 = vpop.f32.mrf.mxu3 }
 0x15f   :  { %v777_v42 = vmax.f32 %v715_v35, 0.0 }
 0x160   :  { %v2596_v48 = vadd.f32 %v1339_v39, %v1291_v62  ;;  %v854_v25 = vpack.c.bf16 %v776_v46, %v770_v44 }
 0x161   :  { %v855_v51 = vpack.c.bf16 %v777_v42, %v771_v11 }
 0x162   :  { %1488 = vmatmul.bf16.gmra.mxu2 %v854_v25 }
 0x163   :  { %1537 = vmatmul.bf16.gmra.mxu3 %v855_v51  ;;  %v668_v1 = vpop.f32.mrf.mxu0 }
 0x164   :  { %v717_v45 = vpop.f32.mrf.mxu1  ;;  %v669_v55 = vadd.f32 %v668_v1, %v2553_v37 }
 0x165   :  { %v1293_v52 = vpop.f32.mrf.mxu2  ;;  %v718_v60 = vadd.f32 %v717_v45, %v2558_v43 }
 0x166   :  { %v1294_v53 = vadd.f32 %v2572_v58, %v1293_v52  ;;  %v1342_v54 = vpop.f32.mrf.mxu3  ;;  %1395 = vmatmul.bf16.gmra.mxu0 %v2499_v15  ;;  %v782_v6 = vmax.f32 %v669_v55, 0.0 }
 0x167   :  { %1444 = vmatmul.bf16.gmra.mxu1 %v2502_v17  ;;  %v783_v10 = vmax.f32 %v718_v60, 0.0 }
 0x168   :  { %v2601_v27 = vadd.f32 %v1342_v54, %v1294_v53 }
 0x16b   :  { %v670_v61 = vpop.f32.mrf.mxu0 }
 0x16c   :  { %v671_v36 = vadd.f32 %v670_v61, %v2553_v37  ;;  %v719_v63 = vpop.f32.mrf.mxu1 }
 0x16d   :  { %v720_v29 = vadd.f32 %v719_v63, %v2558_v43  ;;  %v1295_v5 = vpop.f32.mrf.mxu2 }
 0x16e   :  { %v788_v7 = vmax.f32 %v671_v36, 0.0  ;;  %v1296_v2 = vadd.f32 %v2572_v58, %v1295_v5  ;;  %v1344_v15 = vpop.f32.mrf.mxu3 }
 0x16f   :  { %v789_v17 = vmax.f32 %v720_v29, 0.0 }
 0x170   :  { %v2608_v12 = vadd.f32 %v1344_v15, %v1296_v2  ;;  %v860_v13 = vpack.c.bf16 %v788_v7, %v782_v6 }
 0x171   :  { %v861_v14 = vpack.c.bf16 %v789_v17, %v783_v10 }
 0x172   :  { %1493 = vmatmul.bf16.gmra.mxu2 %v860_v13 }
 0x173   :  { %1542 = vmatmul.bf16.gmra.mxu3 %v861_v14  ;;  %v673_v16 = vpop.f32.mrf.mxu0 }
 0x174   :  { %v722_v18 = vpop.f32.mrf.mxu1  ;;  %v674_v40 = vadd.f32 %v673_v16, %v2553_v37 }
 0x175   :  { %v1298_v0 = vpop.f32.mrf.mxu2  ;;  %v723_v20 = vadd.f32 %v722_v18, %v2558_v43 }
 0x176   :  { %v1299_v19 = vadd.f32 %v2572_v58, %v1298_v0  ;;  %v1347_v4 = vpop.f32.mrf.mxu3  ;;  %1400 = vmatmul.bf16.gmra.mxu0 %v2513_v56  ;;  %v794_v49 = vmax.f32 %v674_v40, 0.0 }
 0x177   :  { %1449 = vmatmul.bf16.gmra.mxu1 %v2516_v59  ;;  %v795_v50 = vmax.f32 %v723_v20, 0.0 }
 0x178   :  { %v2613_v22 = vadd.f32 %v1347_v4, %v1299_v19 }
 0x17b   :  { %v675_v23 = vpop.f32.mrf.mxu0 }
 0x17c   :  { %v676_v24 = vadd.f32 %v675_v23, %v2553_v37  ;;  %v724_v26 = vpop.f32.mrf.mxu1 }
 0x17d   :  { %v725_v28 = vadd.f32 %v724_v26, %v2558_v43  ;;  %v1300_v31 = vpop.f32.mrf.mxu2 }
 0x17e   :  { %v800_v32 = vmax.f32 %v676_v24, 0.0  ;;  %v1301_v33 = vadd.f32 %v2572_v58, %v1300_v31  ;;  %v1349_v56 = vpop.f32.mrf.mxu3 }
 0x17f   :  { %v801_v59 = vmax.f32 %v725_v28, 0.0 }
 0x180   :  { %v866_v35 = vpack.c.bf16 %v800_v32, %v794_v49  ;;  %v2620_v41 = vadd.f32 %v1349_v56, %v1301_v33 }
 0x181   :  { %v867_v44 = vpack.c.bf16 %v801_v59, %v795_v50 }
 0x182   :  { %1498 = vmatmul.bf16.gmra.mxu2 %v866_v35 }
 0x183   :  { %1547 = vmatmul.bf16.gmra.mxu3 %v867_v44  ;;  %v678_v46 = vpop.f32.mrf.mxu0 }
 0x184   :  { %v727_v62 = vpop.f32.mrf.mxu1  ;;  %v679_v51 = vadd.f32 %v678_v46, %v2553_v37 }
 0x185   :  { %v1303_v39 = vpop.f32.mrf.mxu2  ;;  %v728_v1 = vadd.f32 %v727_v62, %v2558_v43 }
 0x186   :  { %v1304_v11 = vadd.f32 %v2572_v58, %v1303_v39  ;;  %v1352_v42 = vpop.f32.mrf.mxu3  ;;  %1405 = vmatmul.bf16.gmra.mxu0 %v2527_v57  ;;  %v806_v60 = vmax.f32 %v679_v51, 0.0 }
 0x187   :  { %1454 = vmatmul.bf16.gmra.mxu1 %v2530_v34  ;;  %v807_v63 = vmax.f32 %v728_v1, 0.0 }
 0x188   :  { %v2625_v25 = vadd.f32 %v1352_v42, %v1304_v11 }
 0x18b   :  { %v680_v45 = vpop.f32.mrf.mxu0 }
 0x18c   :  { %v681_v52 = vadd.f32 %v680_v45, %v2553_v37  ;;  %v729_v53 = vpop.f32.mrf.mxu1 }
 0x18d   :  { %v730_v54 = vadd.f32 %v729_v53, %v2558_v43  ;;  %v1305_v55 = vpop.f32.mrf.mxu2 }
 0x18e   :  { %v812_v61 = vmax.f32 %v681_v52, 0.0  ;;  %v1306_v36 = vadd.f32 %v2572_v58, %v1305_v55  ;;  %v1354_v57 = vpop.f32.mrf.mxu3 }
 0x18f   :  { %v813_v34 = vmax.f32 %v730_v54, 0.0 }
 0x190   :  { %v872_v29 = vpack.c.bf16 %v812_v61, %v806_v60  ;;  %v2632_v5 = vadd.f32 %v1354_v57, %v1306_v36 }
 0x191   :  { %v873_v6 = vpack.c.bf16 %v813_v34, %v807_v63 }
 0x192   :  { %1503 = vmatmul.bf16.gmra.mxu2 %v872_v29 }
 0x193   :  { %1552 = vmatmul.bf16.gmra.mxu3 %v873_v6  ;;  %v683_v7 = vpop.f32.mrf.mxu0 }
 0x194   :  { %v732_v2 = vpop.f32.mrf.mxu1  ;;  %v684_v14 = vadd.f32 %v683_v7, %v2553_v37 }
 0x195   :  { %v1308_v15 = vpop.f32.mrf.mxu2  ;;  %v733_v16 = vadd.f32 %v732_v2, %v2558_v43 }
 0x196   :  { %v1309_v10 = vadd.f32 %v2572_v58, %v1308_v15  ;;  %v1357_v17 = vpop.f32.mrf.mxu3  ;;  %1410 = vmatmul.bf16.gmra.mxu0 %v2541_v8  ;;  %v818_v20 = vmax.f32 %v684_v14, 0.0 }
 0x197   :  { %1459 = vmatmul.bf16.gmra.mxu1 %v2544_v9  ;;  %v819_v26 = vmax.f32 %v733_v16, 0.0 }
 0x198   :  { %v2637_v13 = vadd.f32 %v1357_v17, %v1309_v10 }
 0x19b   :  { %v685_v18 = vpop.f32.mrf.mxu0 }
 0x19c   :  { %v686_v0 = vadd.f32 %v685_v18, %v2553_v37  ;;  %v734_v19 = vpop.f32.mrf.mxu1 }
 0x19d   :  { %v735_v4 = vadd.f32 %v734_v19, %v2558_v43  ;;  %v1310_v40 = vpop.f32.mrf.mxu2 }
 0x19e   :  { %v824_v23 = vmax.f32 %v686_v0, 0.0  ;;  %v1311_v24 = vadd.f32 %v2572_v58, %v1310_v40  ;;  %v1359_v8 = vpop.f32.mrf.mxu3 }
 0x19f   :  { %v825_v9 = vmax.f32 %v735_v4, 0.0 }
 0x1a0   :  { %v878_v28 = vpack.c.bf16 %v824_v23, %v818_v20  ;;  %v2644_v31 = vadd.f32 %v1359_v8, %v1311_v24 }
 0x1a1   :  { %v879_v49 = vpack.c.bf16 %v825_v9, %v819_v26 }
 0x1a2   :  { %1508 = vmatmul.bf16.gmra.mxu2 %v878_v28 }
 0x1a3   :  { %1557 = vmatmul.bf16.gmra.mxu3 %v879_v49  ;;  %v688_v32 = vpop.f32.mrf.mxu0 }
 0x1a4   :  { %v737_v33 = vpop.f32.mrf.mxu1  ;;  %v689_v44 = vadd.f32 %v688_v32, %v2553_v37 }
 0x1a5   :  { %v1313_v56 = vpop.f32.mrf.mxu2  ;;  %v738_v46 = vadd.f32 %v737_v33, %v2558_v43 }
 0x1a6   :  { %v1314_v50 = vadd.f32 %v2572_v58, %v1313_v56  ;;  %v1362_v59 = vpop.f32.mrf.mxu3  ;;  %1415 = vmatmul.bf16.gmra.mxu0 %v2561_v47  ;;  %v830_v1 = vmax.f32 %v689_v44, 0.0 }
 0x1a7   :  { %1464 = vmatmul.bf16.gmra.mxu1 %v2564_v38  ;;  %v831_v53 = vmax.f32 %v738_v46, 0.0 }
 0x1a8   :  { %v2649_v35 = vadd.f32 %v1362_v59, %v1314_v50 }
 0x1ab   :  { %v690_v62 = vpop.f32.mrf.mxu0 }
 0x1ac   :  { %v691_v39 = vadd.f32 %v690_v62, %v2553_v37  ;;  %v739_v11 = vpop.f32.mrf.mxu1 }
 0x1ad   :  { %v740_v42 = vadd.f32 %v739_v11, %v2558_v43  ;;  %v1315_v51 = vpop.f32.mrf.mxu2 }
 0x1ae   :  { %v836_v45 = vmax.f32 %v691_v39, 0.0  ;;  %v1316_v52 = vadd.f32 %v2572_v58, %v1315_v51  ;;  %v1364_v47 = vpop.f32.mrf.mxu3 }
 0x1af   :  { %v837_v38 = vmax.f32 %v740_v42, 0.0 }
 0x1b0   :  { %v884_v54 = vpack.c.bf16 %v836_v45, %v830_v1  ;;  %v2656_v55 = vadd.f32 %v1364_v47, %v1316_v52 }
 0x1b1   :  { %v885_v60 = vpack.c.bf16 %v837_v38, %v831_v53 }
 0x1b2   :  { %1513 = vmatmul.bf16.gmra.mxu2 %v884_v54 }
 0x1b3   :  { %1562 = vmatmul.bf16.gmra.mxu3 %v885_v60  ;;  %v1381_v61 = vpop.f32.mrf.mxu0 }
 0x1b4   :  { %v1430_v36 = vpop.f32.mrf.mxu1  ;;  %v1382_v16 = vadd.f32 %v1381_v61, %v2577_v3 }
 0x1b5   :  { %v1318_v37 = vpop.f32.mrf.mxu2 }
 0x1b6   :  { %v1319_v57 = vadd.f32 %v2572_v58, %v1318_v37  ;;  %v1367_v43 = vpop.f32.mrf.mxu3  ;;  %v1431_v19 = vadd.f32 %v1430_v36, %v1382_v16 }
 0x1b8   :  { %v2659_v63 = vadd.f32 %v1367_v43, %v1319_v57 }
 0x1bb   :  { %v1383_v34 = vpop.f32.mrf.mxu0 }
 0x1bc   :  { %v1432_v29 = vpop.f32.mrf.mxu1  ;;  %v1384_v0 = vadd.f32 %v1383_v34, %v2584_v21 }
 0x1bd   :  { %v1320_v6 = vpop.f32.mrf.mxu2 }
 0x1be   :  { %v1321_v7 = vadd.f32 %v2572_v58, %v1320_v6  ;;  %v1369_v2 = vpop.f32.mrf.mxu3  ;;  %v1433_v40 = vadd.f32 %v1432_v29, %v1384_v0 }
 0x1c0   :  { %v2662_v15 = vadd.f32 %v1369_v2, %v1321_v7 }
 0x1c3   :  { %v1386_v10 = vpop.f32.mrf.mxu0 }
 0x1c4   :  { %v1435_v17 = vpop.f32.mrf.mxu1  ;;  %v1387_v3 = vadd.f32 %v1386_v10, %v2589_v30 }
 0x1c5   :  { %v1479_v14 = vpop.f32.mrf.mxu2 }
 0x1c6   :  { %v1528_v18 = vpop.f32.mrf.mxu3  ;;  %v1480_v20 = vadd.f32 %v1479_v14, %v1431_v19  ;;  %v1436_v50 = vadd.f32 %v1435_v17, %v1387_v3 }
 0x1c8   :  { %v1529_v58 = vadd.f32 %v1528_v18, %v1480_v20 }
 0x1cb   :  { %v1388_v4 = vpop.f32.mrf.mxu0 }
 0x1cc   :  { %v1437_v23 = vpop.f32.mrf.mxu1  ;;  %v1389_v21 = vadd.f32 %v1388_v4, %v2596_v48 }
 0x1cd   :  { %v1481_v24 = vpop.f32.mrf.mxu2 }
 0x1ce   :  { %v1482_v8 = vadd.f32 %v1481_v24, %v1433_v40  ;;  %v1530_v26 = vpop.f32.mrf.mxu3  ;;  %v1438_v44 = vadd.f32 %v1437_v23, %v1389_v21 }
 0x1d0   :  { %v1531_v9 = vadd.f32 %v1530_v26, %v1482_v8 }
 0x1d2   :  { %v2144_v28 = vpack.c.bf16 %v1531_v9, %v1529_v58 }
 0x1d3   :  { %v1391_v49 = vpop.f32.mrf.mxu0 }
 0x1d4   :  { %2145 = vst [vmem:[#allocation10] sm:$0xff] %v2144_v28   ;;  %v1440_v32 = vpop.f32.mrf.mxu1  ;;  %v1392_v30 = vadd.f32 %v1391_v49, %v2601_v27 }
 0x1d5   :  { %v1484_v33 = vpop.f32.mrf.mxu2 }
 0x1d6   :  { %v1533_v56 = vpop.f32.mrf.mxu3  ;;  %v1485_v46 = vadd.f32 %v1484_v33, %v1436_v50  ;;  %v1441_v54 = vadd.f32 %v1440_v32, %v1392_v30 }
 0x1d8   :  { %v1534_v51 = vadd.f32 %v1533_v56, %v1485_v46 }
 0x1db   :  { %v1393_v59 = vpop.f32.mrf.mxu0 }
 0x1dc   :  { %v1442_v62 = vpop.f32.mrf.mxu1  ;;  %v1394_v48 = vadd.f32 %v1393_v59, %v2608_v12 }
 0x1dd   :  { %v1486_v39 = vpop.f32.mrf.mxu2 }
 0x1de   :  { %v1487_v11 = vadd.f32 %v1486_v39, %v1438_v44  ;;  %v1535_v42 = vpop.f32.mrf.mxu3  ;;  %v1443_v61 = vadd.f32 %v1442_v62, %v1394_v48 }
 0x1e0   :  { %v1536_v1 = vadd.f32 %v1535_v42, %v1487_v11 }
 0x1e2   :  { %v2149_v45 = vpack.c.bf16 %v1536_v1, %v1534_v51 }
 0x1e3   :  { %v1396_v52 = vpop.f32.mrf.mxu0 }
 0x1e4   :  { %2181 = vst [vmem:[#allocation10 + $0x8] sm:$0xff] %v2149_v45   ;;  %v1445_v47 = vpop.f32.mrf.mxu1  ;;  %v1397_v27 = vadd.f32 %v1396_v52, %v2613_v22 }
 0x1e5   :  { %v1489_v53 = vpop.f32.mrf.mxu2 }
 0x1e6   :  { %v1538_v38 = vpop.f32.mrf.mxu3  ;;  %v1490_v36 = vadd.f32 %v1489_v53, %v1441_v54  ;;  %v1446_v16 = vadd.f32 %v1445_v47, %v1397_v27 }
 0x1e8   :  { %v1539_v29 = vadd.f32 %v1538_v38, %v1490_v36 }
 0x1eb   :  { %v1398_v60 = vpop.f32.mrf.mxu0 }
 0x1ec   :  { %v1447_v37 = vpop.f32.mrf.mxu1  ;;  %v1399_v12 = vadd.f32 %v1398_v60, %v2620_v41 }
 0x1ed   :  { %v1491_v57 = vpop.f32.mrf.mxu2 }
 0x1ee   :  { %v1492_v43 = vadd.f32 %v1491_v57, %v1443_v61  ;;  %v1540_v34 = vpop.f32.mrf.mxu3  ;;  %v1448_v0 = vadd.f32 %v1447_v37, %v1399_v12 }
 0x1f0   :  { %v1541_v6 = vadd.f32 %v1540_v34, %v1492_v43 }
 0x1f2   :  { %v2154_v7 = vpack.c.bf16 %v1541_v6, %v1539_v29 }
 0x1f3   :  { %v1401_v2 = vpop.f32.mrf.mxu0 }
 0x1f4   :  { %2182 = vst [vmem:[#allocation10 + $0x10] sm:$0xff] %v2154_v7   ;;  %v1450_v10 = vpop.f32.mrf.mxu1  ;;  %v1402_v28 = vadd.f32 %v1401_v2, %v2625_v25 }
 0x1f5   :  { %v1494_v17 = vpop.f32.mrf.mxu2 }
 0x1f6   :  { %v1543_v14 = vpop.f32.mrf.mxu3  ;;  %v1495_v19 = vadd.f32 %v1494_v17, %v1446_v16  ;;  %v1451_v32 = vadd.f32 %v1450_v10, %v1402_v28 }
 0x1f8   :  { %v1544_v24 = vadd.f32 %v1543_v14, %v1495_v19 }
 0x1fb   :  { %v1403_v18 = vpop.f32.mrf.mxu0 }
 0x1fc   :  { %v1452_v23 = vpop.f32.mrf.mxu1  ;;  %v1404_v49 = vadd.f32 %v1403_v18, %v2632_v5 }
 0x1fd   :  { %v1496_v4 = vpop.f32.mrf.mxu2 }
 0x1fe   :  { %v1497_v40 = vadd.f32 %v1496_v4, %v1448_v0  ;;  %v1545_v20 = vpop.f32.mrf.mxu3  ;;  %v1453_v33 = vadd.f32 %v1452_v23, %v1404_v49 }
 0x200   :  { %v1546_v8 = vadd.f32 %v1545_v20, %v1497_v40 }
 0x202   :  { %v2159_v26 = vpack.c.bf16 %v1546_v8, %v1544_v24 }
 0x203   :  { %v1406_v58 = vpop.f32.mrf.mxu0 }
 0x204   :  { %2183 = vst [vmem:[#allocation10 + $0x18] sm:$0xff] %v2159_v26   ;;  %v1455_v41 = vpop.f32.mrf.mxu1  ;;  %v1407_v42 = vadd.f32 %v1406_v58, %v2637_v13 }
 0x205   :  { %v1499_v9 = vpop.f32.mrf.mxu2 }
 0x206   :  { %v1548_v22 = vpop.f32.mrf.mxu3  ;;  %v1500_v3 = vadd.f32 %v1499_v9, %v1451_v32  ;;  %v1456_v1 = vadd.f32 %v1455_v41, %v1407_v42 }
 0x208   :  { %v1549_v44 = vadd.f32 %v1548_v22, %v1500_v3 }
 0x20b   :  { %v1408_v56 = vpop.f32.mrf.mxu0 }
 0x20c   :  { %v1457_v39 = vpop.f32.mrf.mxu1  ;;  %v1409_v5 = vadd.f32 %v1408_v56, %v2644_v31 }
 0x20d   :  { %v1501_v21 = vpop.f32.mrf.mxu2 }
 0x20e   :  { %v1502_v50 = vadd.f32 %v1501_v21, %v1453_v33  ;;  %v1550_v59 = vpop.f32.mrf.mxu3  ;;  %v1458_v45 = vadd.f32 %v1457_v39, %v1409_v5 }
 0x210   :  { %v1551_v46 = vadd.f32 %v1550_v59, %v1502_v50 }
 0x212   :  { %v2164_v62 = vpack.c.bf16 %v1551_v46, %v1549_v44 }
 0x213   :  { %v1411_v51 = vpop.f32.mrf.mxu0 }
 0x214   :  { %2184 = vst [vmem:[#allocation10 + $0x20] sm:$0xff] %v2164_v62   ;;  %v1460_v47 = vpop.f32.mrf.mxu1  ;;  %v1412_v37 = vadd.f32 %v1411_v51, %v2649_v35 }
 0x215   :  { %v1504_v11 = vpop.f32.mrf.mxu2 }
 0x216   :  { %v1553_v25 = vpop.f32.mrf.mxu3  ;;  %v1505_v52 = vadd.f32 %v1504_v11, %v1456_v1  ;;  %v1461_v31 = vadd.f32 %v1460_v47, %v1412_v37 }
 0x218   :  { %v1554_v48 = vadd.f32 %v1553_v25, %v1505_v52 }
 0x21b   :  { %v1413_v60 = vpop.f32.mrf.mxu0 }
 0x21c   :  { %v1462_v57 = vpop.f32.mrf.mxu1  ;;  %v1414_v43 = vadd.f32 %v1413_v60, %v2656_v55 }
 0x21d   :  { %v1506_v53 = vpop.f32.mrf.mxu2 }
 0x21e   :  { %v1507_v30 = vadd.f32 %v1506_v53, %v1458_v45  ;;  %v1555_v38 = vpop.f32.mrf.mxu3  ;;  %v1463_v29 = vadd.f32 %v1462_v57, %v1414_v43 }
 0x220   :  { %v1556_v54 = vadd.f32 %v1555_v38, %v1507_v30 }
 0x222   :  { %v2169_v61 = vpack.c.bf16 %v1556_v54, %v1554_v48 }
 0x223   :  { %v1416_v34 = vpop.f32.mrf.mxu0 }
 0x224   :  { %2185 = vst [vmem:[#allocation10 + $0x28] sm:$0xff] %v2169_v61   ;;  %v1465_v14 = vpop.f32.mrf.mxu1  ;;  %v1417_v35 = vadd.f32 %v1416_v34, %v2659_v63 }
 0x225   :  { %v1509_v36 = vpop.f32.mrf.mxu2 }
 0x226   :  { %v1558_v13 = vpop.f32.mrf.mxu3  ;;  %v1510_v6 = vadd.f32 %v1509_v36, %v1461_v31  ;;  %v1466_v55 = vadd.f32 %v1465_v14, %v1417_v35 }
 0x228   :  { %v1559_v17 = vadd.f32 %v1558_v13, %v1510_v6 }
 0x22b   :  { %v1418_v16 = vpop.f32.mrf.mxu0 }
 0x22c   :  { %v1419_v19 = vadd.f32 %v1418_v16, %v2662_v15  ;;  %v1467_v4 = vpop.f32.mrf.mxu1 }
 0x22d   :  { %v1511_v7 = vpop.f32.mrf.mxu2 }
 0x22e   :  { %v1512_v2 = vadd.f32 %v1511_v7, %v1463_v29  ;;  %v1560_v10 = vpop.f32.mrf.mxu3  ;;  %v1468_v40 = vadd.f32 %v1467_v4, %v1419_v19 }
 0x230   :  { %v1561_v27 = vadd.f32 %v1560_v10, %v1512_v2 }
 0x232   :  { %v2174_v12 = vpack.c.bf16 %v1561_v27, %v1559_v17 }
 0x234   :  { %2186 = vst [vmem:[#allocation10 + $0x30] sm:$0xff] %v2174_v12  }
 0x235   :  { %v1514_v18 = vpop.f32.mrf.mxu2 }
 0x236   :  { %v1563_v0 = vpop.f32.mrf.mxu3  ;;  %v1515_v20 = vadd.f32 %v1514_v18, %v1466_v55 }
 0x238   :  { %v1564_v26 = vadd.f32 %v1563_v0, %v1515_v20 }
 0x23d   :  { %v1516_v23 = vpop.f32.mrf.mxu2 }
 0x23e   :  { %v1517_v24 = vadd.f32 %v1516_v23, %v1468_v40  ;;  %v1565_v8 = vpop.f32.mrf.mxu3 }
 0x240   :  { %v1566_v58 = vadd.f32 %v1565_v8, %v1517_v24 }
 0x242   :  { %v2179_v9 = vpack.c.bf16 %v1566_v58, %v1564_v26 }
 0x244   :  { %2187 = vst [vmem:[#allocation10 + $0x38] sm:$0xff] %v2179_v9  }
 0x245   :  { %1612 = dma.vmem_to_hbm [thread:$0]  %s1605_s15, 1024, %s1607_s18, [#allocation4], %s2330_s30, %s2330_s30, %s2331_s6  }
 0x246   :  { %2324 = dma.done.wait [#allocation4], 1024  }
 0x247   :  { %2325 = vsyncadd [#allocation4], 4294966272 }
 0x248   :  { %1617 = vsyncpa [#allocation3], 1 }
 0x249   :  { %1618 = vsyncpa [#allocation6], 1 }
 0x24a   :  { %1619 = vsyncpa [#allocation9], 1 }
 0x24b   :  { %1620 = vsyncpa [#allocation4], 1 }

// kernel: _re_classifier_call.1
= control target key start
LH: loop header
LB: loop body
LE: loop exit
PB: predicated region body
PF: predicated region fallthrough
CT: control target
= control target key end

     0   :  { %10 = vsyncpa [#allocation3], 0  ;;  %s2686_s0 = inlined_call_operand.hbm [shape: bf16[128,128], index: 0, kind: input, shape index: {}]   ;;  %s2687_s1 = inlined_call_operand.hbm [shape: bf16[128,768], index: 1, kind: input, shape index: {}]   ;;  %s2688_s2 = inlined_call_operand.hbm [shape: f32[1,768], index: 2, kind: input, shape index: {}]   ;;  %s2689_s3 = inlined_call_operand.hbm [shape: bf16[768,128], index: 3, kind: input, shape index: {}]   ;;  %s2690_s4 = inlined_call_operand.vmem [shape: f32[1,128], index: 4, kind: input, shape index: {}]   ;;  %s2691_s5 = inlined_call_operand.hbm [shape: bf16[128,128], index: 5, kind: output, shape index: {}]  }
   0x1   :  { %11 = vsyncpa [#allocation6], 0 }
   0x2   :  { %12 = vsyncpa [#allocation9], 0  ;;  %s31_s20 = sshll.u32 %s2687_s1, 4  ;;  %s32_s20 = int_to_ptr.hbm [resolvable:$true] %s31_s20 }
   0x3   :  { %13 = vsyncpa [#allocation4], 0  ;;  %s2326_s21 = smov [#allocation5]   ;;  %s18_s25 = sshll.u32 %s2686_s0, 4  ;;  %s19_s25 = int_to_ptr.hbm [resolvable:$true] %s18_s25 }
   0x4   :  { %s33_s22 = sshll.u32 %s2326_s21, 4  ;;  %s2327_s26 = smov 384   ;;  %s34_s22 = int_to_ptr.vmem [resolvable:$true] %s33_s22 }
   0x5   :  { %s2328_s27 = smov 24   ;;  %s2329_s28 = smov [#allocation2]  }
   0x6   :  { %39 = dma.hbm_to_vmem [thread:$0]  %s32_s20, 6144, %s34_s22, [#allocation6], %s2327_s26, %s2327_s26, %s2328_s27  }
   0x7   :  { %s20_s29 = sshll.u32 %s2329_s28, 4  ;;  %s2330_s30 = smov 64   ;;  %s21_s29 = int_to_ptr.vmem [resolvable:$true] %s20_s29 }
   0x8   :  { %s2331_s6 = smov 4   ;;  %s45_s8 = sshll.u32 %s2688_s2, 4  ;;  %s46_s8 = int_to_ptr.hbm [resolvable:$true] %s45_s8 }
   0x9   :  { %26 = dma.hbm_to_vmem [thread:$0]  %s19_s25, 1024, %s21_s29, [#allocation3], %s2330_s30, %s2330_s30, %s2331_s6  }
   0xa   :  { %s2332_s9 = smov [#allocation7]   ;;  %s55_s12 = sshll.u32 %s2689_s3, 4  ;;  %s56_s12 = int_to_ptr.hbm [resolvable:$true] %s55_s12 }
   0xb   :  { %s47_s0 = sshll.u32 %s2332_s9, 4  ;;  %s2333_s13 = smov [#allocation8]   ;;  %s48_s0 = int_to_ptr.vmem [resolvable:$true] %s47_s0 }
   0xc   :  { %50 = dma.hbm_to_vmem [thread:$0]  %s46_s8, 96, %s48_s0, [#allocation6]  }
   0xd   :  { %s57_s14 = sshll.u32 %s2333_s13, 4  ;;  %s58_s14 = int_to_ptr.vmem [resolvable:$true] %s57_s14 }
   0xe   :  { %63 = dma.hbm_to_vmem [thread:$0]  %s56_s12, 6144, %s58_s14, [#allocation9], %s2330_s30, %s2330_s30, %s2331_s6  }
   0xf   :  { %2318 = dma.done.wait [#allocation3], 1024  }
  0x10   :  { %2319 = vsyncadd [#allocation3], 4294966272 }
  0x11   :  { %2320 = dma.done.wait [#allocation6], 6240  }
  0x12   :  { %2321 = vsyncadd [#allocation6], 4294961056 }
  0x13   :  { %2322 = dma.done.wait [#allocation9], 6144  }
  0x14   :  { %2323 = vsyncadd [#allocation9], 4294961152  ;;  %v1823_v0 = vld [vmem:[#allocation5 + $0x150] sm:$0xf]  ;;  %v2090_v1 = vld [vmem:[#allocation5 + $0x164] sm:$0xf0] }
  0x15   :  { %v2087_v2 = vld [vmem:[#allocation5 + $0x154] sm:$0xf]  ;;  %v1824_v3 = vor.u32 %v2090_v1, %v1823_v0  ;;  %v1825_v4 = vld [vmem:[#allocation5 + $0x168] sm:$0xf0]  ;;  %v1799_v5 = vld [vmem:[#allocation5 + $0x120] sm:$0xf] }
  0x16   :  { %v2084_v6 = vld [vmem:[#allocation5 + $0x134] sm:$0xf0]  ;;  %v1828_v7 = vor.u32 %v2087_v2, %v1825_v4  ;;  %v2081_v8 = vld [vmem:[#allocation5 + $0x124] sm:$0xf]  ;;  %v1801_v9 = vld [vmem:[#allocation5 + $0x138] sm:$0xf0] }
  0x17   :  { %v1831_v10 = vld [vmem:[#allocation5 + $0x158] sm:$0xf]  ;;  %448 = vmatpush.bf16.msra.mxu0 %v1824_v3  ;;  %v1800_v11 = vor.u32 %v2084_v6, %v1799_v5  ;;  %v2091_v12 = vld [vmem:[#allocation5 + $0x16c] sm:$0xf0]  ;;  %v2088_v13 = vld [vmem:[#allocation5 + $0x15c] sm:$0xf]  ;;  %v1804_v15 = vor.u32 %v2081_v8, %v1801_v9 }
  0x18   :  { %v1833_v14 = vld [vmem:[#allocation5 + $0x170] sm:$0xf0]  ;;  %497 = vmatpush.bf16.msra.mxu1 %v1828_v7  ;;  %v1832_v16 = vor.u32 %v2091_v12, %v1831_v10  ;;  %v1775_v18 = vld [vmem:[#allocation5 + $0xf0] sm:$0xf]  ;;  %v2078_v19 = vld [vmem:[#allocation5 + $0x104] sm:$0xf0] }
  0x19   :  { %v1836_v17 = vor.u32 %v2088_v13, %v1833_v14  ;;  %v2075_v20 = vld [vmem:[#allocation5 + $0xf4] sm:$0xf]  ;;  %v1777_v21 = vld [vmem:[#allocation5 + $0x108] sm:$0xf0]  ;;  %v1807_v22 = vld [vmem:[#allocation5 + $0x128] sm:$0xf]  ;;  %v1776_v27 = vor.u32 %v2078_v19, %v1775_v18 }
  0x1a   :  { %v2085_v23 = vld [vmem:[#allocation5 + $0x13c] sm:$0xf0]  ;;  %546 = vmatpush.bf16.msra.mxu2 %v1832_v16  ;;  %v2082_v25 = vld [vmem:[#allocation5 + $0x12c] sm:$0xf]  ;;  %v1809_v26 = vld [vmem:[#allocation5 + $0x140] sm:$0xf0]  ;;  %v1780_v31 = vor.u32 %v2075_v20, %v1777_v21 }
  0x1b   :  { %595 = vmatpush.bf16.msra.mxu3 %v1836_v17  ;;  %v1808_v24 = vor.u32 %v2085_v23, %v1807_v22  ;;  %449 = vmatpush.bf16.msra.mxu0 %v1800_v11  ;;  %v1812_v28 = vor.u32 %v2082_v25, %v1809_v26  ;;  %v1751_v29 = vld [vmem:[#allocation5 + $0xc0] sm:$0xf]  ;;  %v2072_v30 = vld [vmem:[#allocation5 + $0xd4] sm:$0xf0]  ;;  %v2079_v33 = vld [vmem:[#allocation5 + $0x10c] sm:$0xf0] }
  0x1c   :  { %498 = vmatpush.bf16.msra.mxu1 %v1804_v15  ;;  %v1783_v32 = vld [vmem:[#allocation5 + $0xf8] sm:$0xf]  ;;  %v2076_v34 = vld [vmem:[#allocation5 + $0xfc] sm:$0xf]  ;;  %v2069_v35 = vld [vmem:[#allocation5 + $0xc4] sm:$0xf]  ;;  %v1752_v41 = vor.u32 %v2072_v30, %v1751_v29 }
  0x1d   :  { %v1753_v36 = vld [vmem:[#allocation5 + $0xd8] sm:$0xf0]  ;;  %v1785_v37 = vld [vmem:[#allocation5 + $0x110] sm:$0xf0]  ;;  %v1784_v38 = vor.u32 %v2079_v33, %v1783_v32  ;;  %v1759_v40 = vld [vmem:[#allocation5 + $0xc8] sm:$0xf] }
  0x1e   :  { %547 = vmatpush.bf16.msra.mxu2 %v1808_v24  ;;  %v1788_v39 = vor.u32 %v2076_v34, %v1785_v37  ;;  %v2073_v42 = vld [vmem:[#allocation5 + $0xdc] sm:$0xf0]  ;;  %v2070_v43 = vld [vmem:[#allocation5 + $0xcc] sm:$0xf]  ;;  %v1761_v44 = vld [vmem:[#allocation5 + $0xe0] sm:$0xf0]  ;;  %v1756_v45 = vor.u32 %v2069_v35, %v1753_v36 }
  0x1f   :  { %596 = vmatpush.bf16.msra.mxu3 %v1812_v28  ;;  %450 = vmatpush.bf16.msra.mxu0 %v1776_v27  ;;  %v1727_v46 = vld [vmem:[#allocation5 + $0x90] sm:$0xf]  ;;  %v2066_v47 = vld [vmem:[#allocation5 + $0xa4] sm:$0xf0]  ;;  %v2063_v48 = vld [vmem:[#allocation5 + $0x94] sm:$0xf]  ;;  %v1760_v50 = vor.u32 %v2073_v42, %v1759_v40  ;;  %v1764_v51 = vor.u32 %v2070_v43, %v1761_v44 }
  0x20   :  { %499 = vmatpush.bf16.msra.mxu1 %v1780_v31  ;;  %v1729_v49 = vld [vmem:[#allocation5 + $0xa8] sm:$0xf0]  ;;  %v1735_v52 = vld [vmem:[#allocation5 + $0x98] sm:$0xf]  ;;  %v1728_v53 = vor.u32 %v2066_v47, %v1727_v46  ;;  %v2067_v54 = vld [vmem:[#allocation5 + $0xac] sm:$0xf0] }
  0x21   :  { %v2064_v55 = vld [vmem:[#allocation5 + $0x9c] sm:$0xf]  ;;  %v1737_v56 = vld [vmem:[#allocation5 + $0xb0] sm:$0xf0]  ;;  %v1732_v57 = vor.u32 %v2063_v48, %v1729_v49  ;;  %v1703_v58 = vld [vmem:[#allocation5 + $0x60] sm:$0xf]  ;;  %v1736_v62 = vor.u32 %v2067_v54, %v1735_v52 }
  0x22   :  { %548 = vmatpush.bf16.msra.mxu2 %v1784_v38  ;;  %v2060_v59 = vld [vmem:[#allocation5 + $0x74] sm:$0xf0]  ;;  %v2057_v60 = vld [vmem:[#allocation5 + $0x64] sm:$0xf]  ;;  %v1705_v61 = vld [vmem:[#allocation5 + $0x78] sm:$0xf0]  ;;  %v1740_v63 = vor.u32 %v2064_v55, %v1737_v56 }
  0x23   :  { %597 = vmatpush.bf16.msra.mxu3 %v1788_v39  ;;  %451 = vmatpush.bf16.msra.mxu0 %v1752_v41  ;;  %v1711_v0 = vld [vmem:[#allocation5 + $0x68] sm:$0xf]  ;;  %v1704_v1 = vor.u32 %v2060_v59, %v1703_v58  ;;  %v2061_v2 = vld [vmem:[#allocation5 + $0x7c] sm:$0xf0]  ;;  %v2058_v3 = vld [vmem:[#allocation5 + $0x6c] sm:$0xf]  ;;  %v1708_v5 = vor.u32 %v2057_v60, %v1705_v61 }
  0x24   :  { %500 = vmatpush.bf16.msra.mxu1 %v1756_v45  ;;  %v1713_v4 = vld [vmem:[#allocation5 + $0x80] sm:$0xf0]  ;;  %v1679_v6 = vld [vmem:[#allocation5 + $0x30] sm:$0xf]  ;;  %v2054_v7 = vld [vmem:[#allocation5 + $0x44] sm:$0xf0]  ;;  %v1712_v10 = vor.u32 %v2061_v2, %v1711_v0 }
  0x25   :  { %v2051_v8 = vld [vmem:[#allocation5 + $0x34] sm:$0xf]  ;;  %v1681_v9 = vld [vmem:[#allocation5 + $0x48] sm:$0xf0]  ;;  %v1716_v11 = vor.u32 %v2058_v3, %v1713_v4  ;;  %v1687_v12 = vld [vmem:[#allocation5 + $0x38] sm:$0xf]  ;;  %v1680_v13 = vor.u32 %v2054_v7, %v1679_v6 }
  0x26   :  { %549 = vmatpush.bf16.msra.mxu2 %v1760_v50  ;;  %v2055_v14 = vld [vmem:[#allocation5 + $0x4c] sm:$0xf0]  ;;  %v2052_v15 = vld [vmem:[#allocation5 + $0x3c] sm:$0xf]  ;;  %v1689_v16 = vld [vmem:[#allocation5 + $0x50] sm:$0xf0]  ;;  %v1684_v17 = vor.u32 %v2051_v8, %v1681_v9 }
  0x27   :  { %598 = vmatpush.bf16.msra.mxu3 %v1764_v51  ;;  %452 = vmatpush.bf16.msra.mxu0 %v1728_v53  ;;  %v1655_v18 = vld [vmem:[#allocation5] sm:$0xf]  ;;  %v2048_v19 = vld [vmem:[#allocation5 + $0x14] sm:$0xf0]  ;;  %v2045_v20 = vld [vmem:[#allocation5 + $0x4] sm:$0xf]  ;;  %v1688_v24 = vor.u32 %v2055_v14, %v1687_v12  ;;  %v1692_v25 = vor.u32 %v2052_v15, %v1689_v16 }
  0x28   :  { %501 = vmatpush.bf16.msra.mxu1 %v1732_v57  ;;  %v1657_v21 = vld [vmem:[#allocation5 + $0x18] sm:$0xf0]  ;;  %v1839_v22 = vld [vmem:[#allocation5 + $0x160] sm:$0xf]  ;;  %v2092_v23 = vld [vmem:[#allocation5 + $0x174] sm:$0xf0]  ;;  %v1656_v28 = vor.u32 %v2048_v19, %v1655_v18 }
  0x29   :  { %v2089_v26 = vld [vmem:[#allocation5 + $0x164] sm:$0xf]  ;;  %v1841_v27 = vld [vmem:[#allocation5 + $0x178] sm:$0xf0]  ;;  %v1663_v29 = vld [vmem:[#allocation5 + $0x8] sm:$0xf]  ;;  %v1660_v31 = vor.u32 %v2045_v20, %v1657_v21  ;;  %v1840_v32 = vor.u32 %v2092_v23, %v1839_v22 }
  0x2a   :  { %550 = vmatpush.bf16.msra.mxu2 %v1736_v62  ;;  %v2049_v30 = vld [vmem:[#allocation5 + $0x1c] sm:$0xf0]  ;;  %v2046_v33 = vld [vmem:[#allocation5 + $0xc] sm:$0xf]  ;;  %v1665_v34 = vld [vmem:[#allocation5 + $0x20] sm:$0xf0]  ;;  %v1844_v35 = vor.u32 %v2089_v26, %v1841_v27 }
  0x2b   :  { %599 = vmatpush.bf16.msra.mxu3 %v1740_v63  ;;  %453 = vmatpush.bf16.msra.mxu0 %v1704_v1  ;;  %v2383_v36 = vld [vmem:[#allocation2] sm:$0xff]  ;;  %v1664_v37 = vor.u32 %v2049_v30, %v1663_v29  ;;  %v1815_v38 = vld [vmem:[#allocation5 + $0x130] sm:$0xf]  ;;  %v2086_v39 = vld [vmem:[#allocation5 + $0x144] sm:$0xf0]  ;;  %v1668_v40 = vor.u32 %v2046_v33, %v1665_v34  ;;  %s1606_s18 = sshll.u32 %s2691_s5, 4  ;;  %s1607_s18 = int_to_ptr.hbm [resolvable:$true] %s1606_s18 }
  0x2c   :  { %502 = vmatpush.bf16.msra.mxu1 %v1708_v5  ;;  %v2083_v41 = vld [vmem:[#allocation5 + $0x134] sm:$0xf]  ;;  %v1817_v42 = vld [vmem:[#allocation5 + $0x148] sm:$0xf0]  ;;  %v2100_v43 = vld [vmem:[#allocation8 + $0x38] sm:$0xff]  ;;  %v1816_v45 = vor.u32 %v2086_v39, %v1815_v38 }
  0x2d   :  { %v2108_v44 = vld [vmem:[#allocation8 + $0x78] sm:$0xff]  ;;  %v1820_v46 = vor.u32 %v2083_v41, %v1817_v42  ;;  %v2080_v48 = vld [vmem:[#allocation5 + $0x114] sm:$0xf0]  ;;  %v2098_v55 = vld [vmem:[#allocation8 + $0x28] sm:$0xff] }
  0x2e   :  { %551 = vmatpush.bf16.msra.mxu2 %v1712_v10  ;;  %v1791_v47 = vld [vmem:[#allocation5 + $0x100] sm:$0xf]  ;;  %v2077_v49 = vld [vmem:[#allocation5 + $0x104] sm:$0xf]  ;;  %v2099_v50 = vld [vmem:[#allocation8 + $0x30] sm:$0xff] }
  0x2f   :  { %600 = vmatpush.bf16.msra.mxu3 %v1716_v11  ;;  %454 = vmatpush.bf16.msra.mxu0 %v1680_v13  ;;  %v2107_v51 = vld [vmem:[#allocation8 + $0x70] sm:$0xff]  ;;  %v1792_v53 = vor.u32 %v2080_v48, %v1791_v47  ;;  %v2106_v56 = vld [vmem:[#allocation8 + $0x68] sm:$0xff]  ;;  %v2074_v59 = vld [vmem:[#allocation5 + $0xe4] sm:$0xf0] }
  0x30   :  { %503 = vmatpush.bf16.msra.mxu1 %v1684_v17  ;;  %v1793_v52 = vld [vmem:[#allocation5 + $0x118] sm:$0xf0]  ;;  %v2389_v57 = vld [vmem:[#allocation2 + $0x8] sm:$0xff]  ;;  %v1767_v58 = vld [vmem:[#allocation5 + $0xd0] sm:$0xf] }
  0x31   :  { %v1796_v54 = vor.u32 %v2077_v49, %v1793_v52  ;;  %v2071_v60 = vld [vmem:[#allocation5 + $0xd4] sm:$0xf]  ;;  %v1768_v61 = vor.u32 %v2074_v59, %v1767_v58  ;;  %v1769_v62 = vld [vmem:[#allocation5 + $0xe8] sm:$0xf0]  ;;  %v1743_v3 = vld [vmem:[#allocation5 + $0xa0] sm:$0xf] }
  0x32   :  { %552 = vmatpush.bf16.msra.mxu2 %v1688_v24  ;;  %v1772_v63 = vor.u32 %v2071_v60, %v1769_v62  ;;  %v2097_v0 = vld [vmem:[#allocation8 + $0x20] sm:$0xff]  ;;  %v2395_v2 = vld [vmem:[#allocation2 + $0x10] sm:$0xff]  ;;  %v2068_v4 = vld [vmem:[#allocation5 + $0xb4] sm:$0xf0] }
  0x33   :  { %601 = vmatpush.bf16.msra.mxu3 %v1692_v25  ;;  %455 = vmatpush.bf16.msra.mxu0 %v1656_v28  ;;  %v2105_v1 = vld [vmem:[#allocation8 + $0x60] sm:$0xff]  ;;  %v1744_v6 = vor.u32 %v2068_v4, %v1743_v3  ;;  %v1745_v7 = vld [vmem:[#allocation5 + $0xb8] sm:$0xf0]  ;;  %v1719_v12 = vld [vmem:[#allocation5 + $0x70] sm:$0xf] }
  0x34   :  { %504 = vmatpush.bf16.msra.mxu1 %v1660_v31  ;;  %v2065_v5 = vld [vmem:[#allocation5 + $0xa4] sm:$0xf]  ;;  %v2401_v11 = vld [vmem:[#allocation2 + $0x18] sm:$0xff]  ;;  %v2062_v13 = vld [vmem:[#allocation5 + $0x84] sm:$0xf0] }
  0x35   :  { %v1748_v8 = vor.u32 %v2065_v5, %v1745_v7  ;;  %v2096_v9 = vld [vmem:[#allocation8 + $0x18] sm:$0xff]  ;;  %v2059_v14 = vld [vmem:[#allocation5 + $0x74] sm:$0xf]  ;;  %v1720_v15 = vor.u32 %v2062_v13, %v1719_v12  ;;  %v1721_v16 = vld [vmem:[#allocation5 + $0x88] sm:$0xf0] }
  0x36   :  { %456 = vmatmul.bf16.vlgmr.msra.gmra.mxu0 %v2383_v36  ;;  %553 = vmatpush.bf16.msra.mxu2 %v1664_v37  ;;  %v2104_v10 = vld [vmem:[#allocation8 + $0x58] sm:$0xff]  ;;  %v1724_v17 = vor.u32 %v2059_v14, %v1721_v16  ;;  %v2095_v18 = vld [vmem:[#allocation8 + $0x10] sm:$0xff]  ;;  %v2094_v27 = vld [vmem:[#allocation8 + $0x8] sm:$0xff] }
  0x37   :  { %644 = vmatpush.bf16.msrb.mxu0 %v1840_v32  ;;  %505 = vmatmul.bf16.vlgmr.msra.gmra.mxu1 %v2383_v36  ;;  %v2103_v19 = vld [vmem:[#allocation8 + $0x50] sm:$0xff]  ;;  %v2407_v20 = vld [vmem:[#allocation2 + $0x20] sm:$0xff]  ;;  %v2102_v28 = vld [vmem:[#allocation8 + $0x48] sm:$0xff] }
  0x38   :  { %693 = vmatpush.bf16.msrb.mxu1 %v1844_v35  ;;  %602 = vmatpush.bf16.msra.mxu3 %v1668_v40  ;;  %v1695_v21 = vld [vmem:[#allocation5 + $0x40] sm:$0xf]  ;;  %v2056_v22 = vld [vmem:[#allocation5 + $0x54] sm:$0xf0]  ;;  %v2053_v23 = vld [vmem:[#allocation5 + $0x44] sm:$0xf] }
  0x39   :  { %554 = vmatmul.bf16.vlgmr.msra.gmra.mxu2 %v2383_v36  ;;  %v1696_v24 = vor.u32 %v2056_v22, %v1695_v21  ;;  %v1697_v25 = vld [vmem:[#allocation5 + $0x58] sm:$0xf0]  ;;  %v2413_v29 = vld [vmem:[#allocation2 + $0x28] sm:$0xff]  ;;  %v1671_v30 = vld [vmem:[#allocation5 + $0x10] sm:$0xf] }
  0x3a   :  { %1274 = vmatpush.bf16.msrb.mxu2 %v2100_v43  ;;  %v1700_v26 = vor.u32 %v2053_v23, %v1697_v25  ;;  %v2050_v31 = vld [vmem:[#allocation5 + $0x24] sm:$0xf0]  ;;  %v2047_v32 = vld [vmem:[#allocation5 + $0x14] sm:$0xf]  ;;  %v1673_v34 = vld [vmem:[#allocation5 + $0x28] sm:$0xf0] }
  0x3b   :  { %645 = vmatpush.bf16.msrb.mxu0 %v1816_v45  ;;  %603 = vmatmul.bf16.vlgmr.msra.gmra.mxu3 %v2383_v36  ;;  %v1672_v33 = vor.u32 %v2050_v31, %v1671_v30  ;;  %v1676_v35 = vor.u32 %v2047_v32, %v1673_v34  ;;  %v2093_v37 = vld [vmem:[#allocation8] sm:$0xff]  ;;  %v2419_v38 = vld [vmem:[#allocation2 + $0x30] sm:$0xff]  ;;  %v2425_v40 = vld [vmem:[#allocation2 + $0x38] sm:$0xff] }
  0x3c   :  { %1323 = vmatpush.bf16.msrb.mxu3 %v2108_v44  ;;  %694 = vmatpush.bf16.msrb.mxu1 %v1820_v46  ;;  %v2101_v39 = vld [vmem:[#allocation8 + $0x40] sm:$0xff]  ;;  %v2132_v41 = vld [vmem:[#allocation8 + $0x138] sm:$0xff]  ;;  %v2131_v47 = vld [vmem:[#allocation8 + $0x130] sm:$0xff] }
  0x3d   :  { %v2116_v42 = vld [vmem:[#allocation8 + $0xb8] sm:$0xff]  ;;  %v2139_v52 = vld [vmem:[#allocation8 + $0x170] sm:$0xff]  ;;  %v2114_v21 = vld [vmem:[#allocation8 + $0xa8] sm:$0xff] }
  0x3e   :  { %1275 = vmatpush.bf16.msrb.mxu2 %v2099_v50  ;;  %v2140_v43 = vld [vmem:[#allocation8 + $0x178] sm:$0xff]  ;;  %v2138_v22 = vld [vmem:[#allocation8 + $0x168] sm:$0xff] }
  0x3f   :  { %646 = vmatpush.bf16.msrb.mxu0 %v1792_v53  ;;  %v2124_v44 = vld [vmem:[#allocation8 + $0xf8] sm:$0xff]  ;;  %v2123_v53 = vld [vmem:[#allocation8 + $0xf0] sm:$0xff]  ;;  %v2122_v23 = vld [vmem:[#allocation8 + $0xe8] sm:$0xff] }
  0x40   :  { %1324 = vmatpush.bf16.msrb.mxu3 %v2107_v51  ;;  %695 = vmatpush.bf16.msrb.mxu1 %v1796_v54  ;;  %v2431_v45 = vld [vmem:[#allocation7] sm:$0x3f]  ;;  %v2115_v51 = vld [vmem:[#allocation8 + $0xb0] sm:$0xff] }
  0x41   :  { %v2434_v49 = vperm.slane %v2431_v45, 0  ;;  %v2438_v50 = vperm.slane %v2431_v45, 1  ;;  %v2446_v62 = vperm.slane %v2431_v45, 2 }
  0x42   :  { %1276 = vmatpush.bf16.msrb.mxu2 %v2098_v55 }
  0x43   :  { %647 = vmatpush.bf16.msrb.mxu0 %v1768_v61 }
  0x44   :  { %1325 = vmatpush.bf16.msrb.mxu3 %v2106_v56  ;;  %696 = vmatpush.bf16.msrb.mxu1 %v1772_v63 }
  0x46   :  { %461 = vmatmul.bf16.gmra.mxu0 %v2389_v57  ;;  %1277 = vmatpush.bf16.msrb.mxu2 %v2097_v0 }
  0x47   :  { %510 = vmatmul.bf16.gmra.mxu1 %v2389_v57  ;;  %648 = vmatpush.bf16.msrb.mxu0 %v1744_v6 }
  0x48   :  { %1326 = vmatpush.bf16.msrb.mxu3 %v2105_v1  ;;  %697 = vmatpush.bf16.msrb.mxu1 %v1748_v8  ;;  %v2449_v1 = vperm.slane %v2431_v45, 3 }
  0x49   :  { %559 = vmatmul.bf16.gmra.mxu2 %v2389_v57 }
  0x4a   :  { %1278 = vmatpush.bf16.msrb.mxu2 %v2096_v9 }
  0x4b   :  { %608 = vmatmul.bf16.gmra.mxu3 %v2389_v57  ;;  %649 = vmatpush.bf16.msrb.mxu0 %v1720_v15 }
  0x4c   :  { %1327 = vmatpush.bf16.msrb.mxu3 %v2104_v10  ;;  %698 = vmatpush.bf16.msrb.mxu1 %v1724_v17  ;;  %v2130_v10 = vld [vmem:[#allocation8 + $0x128] sm:$0xff] }
  0x4e   :  { %1279 = vmatpush.bf16.msrb.mxu2 %v2095_v18 }
  0x4f   :  { %650 = vmatpush.bf16.msrb.mxu0 %v1696_v24 }
  0x50   :  { %1328 = vmatpush.bf16.msrb.mxu3 %v2103_v19  ;;  %699 = vmatpush.bf16.msrb.mxu1 %v1700_v26 }
  0x52   :  { %1280 = vmatpush.bf16.msrb.mxu2 %v2094_v27 }
  0x53   :  { %651 = vmatpush.bf16.msrb.mxu0 %v1672_v33 }
  0x54   :  { %1329 = vmatpush.bf16.msrb.mxu3 %v2102_v28  ;;  %700 = vmatpush.bf16.msrb.mxu1 %v1676_v35 }
  0x56   :  { %466 = vmatmul.bf16.gmra.mxu0 %v2395_v2  ;;  %1281 = vmatpush.bf16.msrb.mxu2 %v2093_v37 }
  0x57   :  { %515 = vmatmul.bf16.gmra.mxu1 %v2395_v2  ;;  %1372 = vmatpush.bf16.msra.mxu0 %v2116_v42 }
  0x58   :  { %1330 = vmatpush.bf16.msrb.mxu3 %v2101_v39  ;;  %1421 = vmatpush.bf16.msra.mxu1 %v2124_v44 }
  0x59   :  { %564 = vmatmul.bf16.gmra.mxu2 %v2395_v2 }
  0x5a   :  { %1470 = vmatpush.bf16.msra.mxu2 %v2132_v41 }
  0x5b   :  { %613 = vmatmul.bf16.gmra.mxu3 %v2395_v2  ;;  %1373 = vmatpush.bf16.msra.mxu0 %v2115_v51 }
  0x5c   :  { %1519 = vmatpush.bf16.msra.mxu3 %v2140_v43  ;;  %1422 = vmatpush.bf16.msra.mxu1 %v2123_v53 }
  0x5e   :  { %1471 = vmatpush.bf16.msra.mxu2 %v2131_v47 }
  0x5f   :  { %1374 = vmatpush.bf16.msra.mxu0 %v2114_v21 }
  0x60   :  { %1520 = vmatpush.bf16.msra.mxu3 %v2139_v52  ;;  %1423 = vmatpush.bf16.msra.mxu1 %v2122_v23 }
  0x62   :  { %1472 = vmatpush.bf16.msra.mxu2 %v2130_v10 }
  0x64   :  { %1521 = vmatpush.bf16.msra.mxu3 %v2138_v22  ;;  %v2128_v22 = vld [vmem:[#allocation8 + $0x118] sm:$0xff] }
  0x66   :  { %471 = vmatmul.bf16.gmra.mxu0 %v2401_v11 }
  0x67   :  { %520 = vmatmul.bf16.gmra.mxu1 %v2401_v11 }
  0x69   :  { %569 = vmatmul.bf16.gmra.mxu2 %v2401_v11 }
  0x6b   :  { %618 = vmatmul.bf16.gmra.mxu3 %v2401_v11 }
  0x76   :  { %476 = vmatmul.bf16.gmra.mxu0 %v2407_v20 }
  0x77   :  { %525 = vmatmul.bf16.gmra.mxu1 %v2407_v20 }
  0x79   :  { %574 = vmatmul.bf16.gmra.mxu2 %v2407_v20 }
  0x7b   :  { %623 = vmatmul.bf16.gmra.mxu3 %v2407_v20 }
  0x86   :  { %481 = vmatmul.bf16.gmra.mxu0 %v2413_v29 }
  0x87   :  { %530 = vmatmul.bf16.gmra.mxu1 %v2413_v29 }
  0x89   :  { %579 = vmatmul.bf16.gmra.mxu2 %v2413_v29 }
  0x8b   :  { %628 = vmatmul.bf16.gmra.mxu3 %v2413_v29 }
  0x96   :  { %486 = vmatmul.bf16.gmra.mxu0 %v2419_v38 }
  0x97   :  { %535 = vmatmul.bf16.gmra.mxu1 %v2419_v38 }
  0x99   :  { %584 = vmatmul.bf16.gmra.mxu2 %v2419_v38 }
  0x9b   :  { %633 = vmatmul.bf16.gmra.mxu3 %v2419_v38 }
  0xa6   :  { %491 = vmatmul.bf16.gmra.mxu0 %v2425_v40 }
  0xa7   :  { %540 = vmatmul.bf16.gmra.mxu1 %v2425_v40 }
  0xa9   :  { %589 = vmatmul.bf16.gmra.mxu2 %v2425_v40 }
  0xab   :  { %638 = vmatmul.bf16.gmra.mxu3 %v2425_v40 }
  0xb3   :  { %v457_v46 = vpop.f32.mrf.mxu0 }
  0xb4   :  { %v506_v48 = vpop.f32.mrf.mxu1  ;;  %v458_v54 = vadd.f32 %v457_v46, %v2434_v49 }
  0xb5   :  { %v507_v55 = vadd.f32 %v506_v48, %v2438_v50  ;;  %v2129_v48 = vld [vmem:[#allocation8 + $0x120] sm:$0xff] }
  0xb6   :  { %652 = vmatmul.bf16.vlgmr.msrb.gmra.mxu0 %v2383_v36  ;;  %v742_v63 = vmax.f32 %v458_v54, 0.0  ;;  %1473 = vmatpush.bf16.msra.mxu2 %v2129_v48 }
  0xb7   :  { %701 = vmatmul.bf16.vlgmr.msrb.gmra.mxu1 %v2383_v36  ;;  %v743_v3 = vmax.f32 %v507_v55, 0.0 }
  0xba   :  { %1474 = vmatpush.bf16.msra.mxu2 %v2128_v22 }
  0xbb   :  { %v459_v56 = vpop.f32.mrf.mxu0 }
  0xbc   :  { %v460_v58 = vadd.f32 %v459_v56, %v2434_v49  ;;  %v508_v59 = vpop.f32.mrf.mxu1  ;;  %v555_v60 = vpop.f32.mrf.mxu2 }
  0xbd   :  { %v509_v61 = vadd.f32 %v508_v59, %v2438_v50  ;;  %v556_v6 = vadd.f32 %v555_v60, %v2446_v62  ;;  %v2113_v60 = vld [vmem:[#allocation8 + $0xa0] sm:$0xff] }
  0xbe   :  { %v604_v36 = vpop.f32.mrf.mxu3  ;;  %v748_v0 = vmax.f32 %v460_v58, 0.0  ;;  %1375 = vmatpush.bf16.msra.mxu0 %v2113_v60 }
  0xbf   :  { %v749_v4 = vmax.f32 %v509_v61, 0.0  ;;  %v605_v8 = vadd.f32 %v604_v36, %v2449_v1  ;;  %v744_v14 = vmax.f32 %v556_v6, 0.0  ;;  %v2137_v61 = vld [vmem:[#allocation8 + $0x160] sm:$0xff] }
  0xc0   :  { %v838_v5 = vpack.c.bf16 %v748_v0, %v742_v63  ;;  %v2121_v36 = vld [vmem:[#allocation8 + $0xe0] sm:$0xff]  ;;  %1522 = vmatpush.bf16.msra.mxu3 %v2137_v61 }
  0xc1   :  { %v839_v7 = vpack.c.bf16 %v749_v4, %v743_v3  ;;  %v745_v17 = vmax.f32 %v605_v8, 0.0  ;;  %1424 = vmatpush.bf16.msra.mxu1 %v2121_v36  ;;  %v2127_v36 = vld [vmem:[#allocation8 + $0x110] sm:$0xff] }
  0xc2   :  { %1282 = vmatmul.bf16.vlgmr.msrb.gmra.mxu2 %v838_v5 }
  0xc3   :  { %1331 = vmatmul.bf16.vlgmr.msrb.gmra.mxu3 %v839_v7  ;;  %v462_v9 = vpop.f32.mrf.mxu0  ;;  %1475 = vmatpush.bf16.msra.mxu2 %v2127_v36 }
  0xc4   :  { %v511_v12 = vpop.f32.mrf.mxu1  ;;  %v557_v13 = vpop.f32.mrf.mxu2  ;;  %v463_v26 = vadd.f32 %v462_v9, %v2434_v49 }
  0xc5   :  { %v558_v15 = vadd.f32 %v557_v13, %v2446_v62  ;;  %v512_v28 = vadd.f32 %v511_v12, %v2438_v50 }
  0xc6   :  { %v606_v16 = vpop.f32.mrf.mxu3  ;;  %657 = vmatmul.bf16.gmra.mxu0 %v2389_v57  ;;  %v754_v35 = vmax.f32 %v463_v26, 0.0 }
  0xc7   :  { %v607_v18 = vadd.f32 %v606_v16, %v2449_v1  ;;  %v750_v19 = vmax.f32 %v558_v15, 0.0  ;;  %706 = vmatmul.bf16.gmra.mxu1 %v2389_v57  ;;  %v755_v39 = vmax.f32 %v512_v28, 0.0 }
  0xc9   :  { %v751_v24 = vmax.f32 %v607_v18, 0.0  ;;  %v2457_v25 = vpack.c.bf16 %v750_v19, %v744_v14 }
  0xcb   :  { %v2460_v27 = vpack.c.bf16 %v751_v24, %v745_v17  ;;  %v464_v30 = vpop.f32.mrf.mxu0 }
  0xcc   :  { %v465_v31 = vadd.f32 %v464_v30, %v2434_v49  ;;  %v513_v32 = vpop.f32.mrf.mxu1  ;;  %v560_v57 = vpop.f32.mrf.mxu2 }
  0xcd   :  { %v514_v33 = vadd.f32 %v513_v32, %v2438_v50  ;;  %v561_v43 = vadd.f32 %v560_v57, %v2446_v62 }
  0xce   :  { %v609_v34 = vpop.f32.mrf.mxu3  ;;  %v760_v37 = vmax.f32 %v465_v31, 0.0 }
  0xcf   :  { %v761_v41 = vmax.f32 %v514_v33, 0.0  ;;  %v610_v46 = vadd.f32 %v609_v34, %v2449_v1  ;;  %v756_v53 = vmax.f32 %v561_v43, 0.0  ;;  %v2112_v33 = vld [vmem:[#allocation8 + $0x98] sm:$0xff] }
  0xd0   :  { %v844_v42 = vpack.c.bf16 %v760_v37, %v754_v35  ;;  %v2136_v34 = vld [vmem:[#allocation8 + $0x158] sm:$0xff]  ;;  %1376 = vmatpush.bf16.msra.mxu0 %v2112_v33 }
  0xd1   :  { %v845_v44 = vpack.c.bf16 %v761_v41, %v755_v39  ;;  %v757_v56 = vmax.f32 %v610_v46, 0.0  ;;  %v2120_v35 = vld [vmem:[#allocation8 + $0xd8] sm:$0xff]  ;;  %1523 = vmatpush.bf16.msra.mxu3 %v2136_v34 }
  0xd2   :  { %1287 = vmatmul.bf16.gmra.mxu2 %v844_v42  ;;  %1425 = vmatpush.bf16.msra.mxu1 %v2120_v35 }
  0xd3   :  { %1336 = vmatmul.bf16.gmra.mxu3 %v845_v44  ;;  %v467_v47 = vpop.f32.mrf.mxu0 }
  0xd4   :  { %v516_v51 = vpop.f32.mrf.mxu1  ;;  %v562_v52 = vpop.f32.mrf.mxu2  ;;  %v468_v3 = vadd.f32 %v467_v47, %v2434_v49 }
  0xd5   :  { %v563_v54 = vadd.f32 %v562_v52, %v2446_v62  ;;  %v517_v5 = vadd.f32 %v516_v51, %v2438_v50 }
  0xd6   :  { %v611_v55 = vpop.f32.mrf.mxu3  ;;  %662 = vmatmul.bf16.gmra.mxu0 %v2395_v2  ;;  %v766_v12 = vmax.f32 %v468_v3, 0.0 }
  0xd7   :  { %v612_v58 = vadd.f32 %v611_v55, %v2449_v1  ;;  %v762_v59 = vmax.f32 %v563_v54, 0.0  ;;  %711 = vmatmul.bf16.gmra.mxu1 %v2395_v2  ;;  %v767_v14 = vmax.f32 %v517_v5, 0.0 }
  0xd9   :  { %v763_v63 = vmax.f32 %v612_v58, 0.0  ;;  %v2471_v0 = vpack.c.bf16 %v762_v59, %v756_v53 }
  0xdb   :  { %v2474_v4 = vpack.c.bf16 %v763_v63, %v757_v56  ;;  %v469_v6 = vpop.f32.mrf.mxu0 }
  0xdc   :  { %v470_v7 = vadd.f32 %v469_v6, %v2434_v49  ;;  %v518_v8 = vpop.f32.mrf.mxu1  ;;  %v565_v2 = vpop.f32.mrf.mxu2 }
  0xdd   :  { %v519_v9 = vadd.f32 %v518_v8, %v2438_v50  ;;  %v566_v17 = vadd.f32 %v565_v2, %v2446_v62 }
  0xde   :  { %v614_v10 = vpop.f32.mrf.mxu3  ;;  %v772_v13 = vmax.f32 %v470_v7, 0.0 }
  0xdf   :  { %v773_v15 = vmax.f32 %v519_v9, 0.0  ;;  %v615_v19 = vadd.f32 %v614_v10, %v2449_v1  ;;  %v768_v26 = vmax.f32 %v566_v17, 0.0  ;;  %v2111_v10 = vld [vmem:[#allocation8 + $0x90] sm:$0xff] }
  0xe0   :  { %v850_v16 = vpack.c.bf16 %v772_v13, %v766_v12  ;;  %v2135_v12 = vld [vmem:[#allocation8 + $0x150] sm:$0xff]  ;;  %1377 = vmatpush.bf16.msra.mxu0 %v2111_v10 }
  0xe1   :  { %v851_v18 = vpack.c.bf16 %v773_v15, %v767_v14  ;;  %v769_v31 = vmax.f32 %v615_v19, 0.0  ;;  %v2119_v13 = vld [vmem:[#allocation8 + $0xd0] sm:$0xff]  ;;  %1524 = vmatpush.bf16.msra.mxu3 %v2135_v12 }
  0xe2   :  { %1292 = vmatmul.bf16.gmra.mxu2 %v850_v16  ;;  %1426 = vmatpush.bf16.msra.mxu1 %v2119_v13 }
  0xe3   :  { %1341 = vmatmul.bf16.gmra.mxu3 %v851_v18  ;;  %v472_v21 = vpop.f32.mrf.mxu0 }
  0xe4   :  { %v521_v23 = vpop.f32.mrf.mxu1  ;;  %v567_v24 = vpop.f32.mrf.mxu2  ;;  %v473_v41 = vadd.f32 %v472_v21, %v2434_v49 }
  0xe5   :  { %v568_v28 = vadd.f32 %v567_v24, %v2446_v62  ;;  %v522_v43 = vadd.f32 %v521_v23, %v2438_v50 }
  0xe6   :  { %v616_v30 = vpop.f32.mrf.mxu3  ;;  %667 = vmatmul.bf16.gmra.mxu0 %v2401_v11  ;;  %v778_v52 = vmax.f32 %v473_v41, 0.0 }
  0xe7   :  { %v617_v32 = vadd.f32 %v616_v30, %v2449_v1  ;;  %v774_v57 = vmax.f32 %v568_v28, 0.0  ;;  %716 = vmatmul.bf16.gmra.mxu1 %v2401_v11  ;;  %v779_v54 = vmax.f32 %v522_v43, 0.0 }
  0xe9   :  { %v775_v37 = vmax.f32 %v617_v32, 0.0  ;;  %v2485_v39 = vpack.c.bf16 %v774_v57, %v768_v26 }
  0xeb   :  { %v2488_v42 = vpack.c.bf16 %v775_v37, %v769_v31  ;;  %v474_v44 = vpop.f32.mrf.mxu0  ;;  %v2126_v37 = vld [vmem:[#allocation8 + $0x108] sm:$0xff] }
  0xec   :  { %v475_v46 = vadd.f32 %v474_v44, %v2434_v49  ;;  %v523_v47 = vpop.f32.mrf.mxu1  ;;  %v570_v11 = vpop.f32.mrf.mxu2  ;;  %1476 = vmatpush.bf16.msra.mxu2 %v2126_v37 }
  0xed   :  { %v524_v48 = vadd.f32 %v523_v47, %v2438_v50  ;;  %v571_v58 = vadd.f32 %v570_v11, %v2446_v62 }
  0xee   :  { %v619_v51 = vpop.f32.mrf.mxu3  ;;  %v784_v53 = vmax.f32 %v475_v46, 0.0 }
  0xef   :  { %v785_v55 = vmax.f32 %v524_v48, 0.0  ;;  %v620_v60 = vadd.f32 %v619_v51, %v2449_v1  ;;  %v780_v5 = vmax.f32 %v571_v58, 0.0 }
  0xf0   :  { %v856_v56 = vpack.c.bf16 %v784_v53, %v778_v52  ;;  %v2110_v52 = vld [vmem:[#allocation8 + $0x88] sm:$0xff] }
  0xf1   :  { %v857_v59 = vpack.c.bf16 %v785_v55, %v779_v54  ;;  %v781_v8 = vmax.f32 %v620_v60, 0.0  ;;  %v2134_v53 = vld [vmem:[#allocation8 + $0x148] sm:$0xff]  ;;  %1378 = vmatpush.bf16.msra.mxu0 %v2110_v52 }
  0xf2   :  { %1297 = vmatmul.bf16.gmra.mxu2 %v856_v56  ;;  %v2118_v54 = vld [vmem:[#allocation8 + $0xc8] sm:$0xff]  ;;  %1525 = vmatpush.bf16.msra.mxu3 %v2134_v53 }
  0xf3   :  { %1346 = vmatmul.bf16.gmra.mxu3 %v857_v59  ;;  %v477_v61 = vpop.f32.mrf.mxu0  ;;  %1427 = vmatpush.bf16.msra.mxu1 %v2118_v54 }
  0xf4   :  { %v526_v63 = vpop.f32.mrf.mxu1  ;;  %v572_v3 = vpop.f32.mrf.mxu2  ;;  %v478_v16 = vadd.f32 %v477_v61, %v2434_v49 }
  0xf5   :  { %v573_v6 = vadd.f32 %v572_v3, %v2446_v62  ;;  %v527_v18 = vadd.f32 %v526_v63, %v2438_v50 }
  0xf6   :  { %v621_v7 = vpop.f32.mrf.mxu3  ;;  %672 = vmatmul.bf16.gmra.mxu0 %v2407_v20  ;;  %v790_v26 = vmax.f32 %v478_v16, 0.0  ;;  %v2117_v16 = vld [vmem:[#allocation8 + $0xc0] sm:$0xff] }
  0xf7   :  { %v622_v2 = vadd.f32 %v621_v7, %v2449_v1  ;;  %v786_v9 = vmax.f32 %v573_v6, 0.0  ;;  %721 = vmatmul.bf16.gmra.mxu1 %v2407_v20  ;;  %v791_v30 = vmax.f32 %v527_v18, 0.0 }
  0xf8   :  { %1428 = vmatpush.bf16.msra.mxu1 %v2117_v16 }
  0xf9   :  { %v787_v14 = vmax.f32 %v622_v2, 0.0  ;;  %v2499_v15 = vpack.c.bf16 %v786_v9, %v780_v5 }
  0xfb   :  { %v2502_v17 = vpack.c.bf16 %v787_v14, %v781_v8  ;;  %v479_v19 = vpop.f32.mrf.mxu0  ;;  %v2109_v14 = vld [vmem:[#allocation8 + $0x80] sm:$0xff] }
  0xfc   :  { %v480_v21 = vadd.f32 %v479_v19, %v2434_v49  ;;  %v528_v22 = vpop.f32.mrf.mxu1  ;;  %v575_v20 = vpop.f32.mrf.mxu2  ;;  %v2125_v19 = vld [vmem:[#allocation8 + $0x100] sm:$0xff]  ;;  %1379 = vmatpush.bf16.msra.mxu0 %v2109_v14 }
  0xfd   :  { %v529_v23 = vadd.f32 %v528_v22, %v2438_v50  ;;  %v576_v57 = vadd.f32 %v575_v20, %v2446_v62  ;;  %1477 = vmatpush.bf16.msra.mxu2 %v2125_v19 }
  0xfe   :  { %v624_v24 = vpop.f32.mrf.mxu3  ;;  %v796_v28 = vmax.f32 %v480_v21, 0.0 }
  0xff   :  { %v797_v31 = vmax.f32 %v529_v23, 0.0  ;;  %v625_v34 = vadd.f32 %v624_v24, %v2449_v1  ;;  %v792_v44 = vmax.f32 %v576_v57, 0.0 }
 0x100   :  { %v862_v32 = vpack.c.bf16 %v796_v28, %v790_v26 }
 0x101   :  { %v863_v33 = vpack.c.bf16 %v797_v31, %v791_v30  ;;  %v793_v11 = vmax.f32 %v625_v34, 0.0  ;;  %v2133_v31 = vld [vmem:[#allocation8 + $0x140] sm:$0xff] }
 0x102   :  { %1302 = vmatmul.bf16.gmra.mxu2 %v862_v32  ;;  %1526 = vmatpush.bf16.msra.mxu3 %v2133_v31 }
 0x103   :  { %1351 = vmatmul.bf16.gmra.mxu3 %v863_v33  ;;  %v482_v35 = vpop.f32.mrf.mxu0 }
 0x104   :  { %v531_v41 = vpop.f32.mrf.mxu1  ;;  %v577_v43 = vpop.f32.mrf.mxu2  ;;  %v483_v58 = vadd.f32 %v482_v35, %v2434_v49 }
 0x105   :  { %v578_v46 = vadd.f32 %v577_v43, %v2446_v62  ;;  %v532_v60 = vadd.f32 %v531_v41, %v2438_v50 }
 0x106   :  { %v626_v47 = vpop.f32.mrf.mxu3  ;;  %677 = vmatmul.bf16.gmra.mxu0 %v2413_v29  ;;  %v802_v6 = vmax.f32 %v483_v58, 0.0 }
 0x107   :  { %v627_v48 = vadd.f32 %v626_v47, %v2449_v1  ;;  %v798_v51 = vmax.f32 %v578_v46, 0.0  ;;  %726 = vmatmul.bf16.gmra.mxu1 %v2413_v29  ;;  %v803_v8 = vmax.f32 %v532_v60, 0.0 }
 0x109   :  { %v799_v55 = vmax.f32 %v627_v48, 0.0  ;;  %v2513_v56 = vpack.c.bf16 %v798_v51, %v792_v44 }
 0x10b   :  { %v2516_v59 = vpack.c.bf16 %v799_v55, %v793_v11  ;;  %v484_v61 = vpop.f32.mrf.mxu0 }
 0x10c   :  { %v485_v36 = vadd.f32 %v484_v61, %v2434_v49  ;;  %v533_v63 = vpop.f32.mrf.mxu1  ;;  %v580_v29 = vpop.f32.mrf.mxu2 }
 0x10d   :  { %v534_v3 = vadd.f32 %v533_v63, %v2438_v50  ;;  %v581_v10 = vadd.f32 %v580_v29, %v2446_v62 }
 0x10e   :  { %v629_v5 = vpop.f32.mrf.mxu3  ;;  %v808_v7 = vmax.f32 %v485_v36, 0.0 }
 0x10f   :  { %v809_v2 = vmax.f32 %v534_v3, 0.0  ;;  %v630_v13 = vadd.f32 %v629_v5, %v2449_v1  ;;  %v804_v20 = vmax.f32 %v581_v10, 0.0 }
 0x110   :  { %v868_v9 = vpack.c.bf16 %v808_v7, %v802_v6 }
 0x111   :  { %v869_v12 = vpack.c.bf16 %v809_v2, %v803_v8  ;;  %v805_v26 = vmax.f32 %v630_v13, 0.0 }
 0x112   :  { %1307 = vmatmul.bf16.gmra.mxu2 %v868_v9 }
 0x113   :  { %1356 = vmatmul.bf16.gmra.mxu3 %v869_v12  ;;  %v487_v18 = vpop.f32.mrf.mxu0 }
 0x114   :  { %v536_v21 = vpop.f32.mrf.mxu1  ;;  %v582_v22 = vpop.f32.mrf.mxu2  ;;  %v488_v33 = vadd.f32 %v487_v18, %v2434_v49 }
 0x115   :  { %v583_v23 = vadd.f32 %v582_v22, %v2446_v62  ;;  %v537_v35 = vadd.f32 %v536_v21, %v2438_v50 }
 0x116   :  { %v631_v24 = vpop.f32.mrf.mxu3  ;;  %682 = vmatmul.bf16.gmra.mxu0 %v2419_v38 }
 0x117   :  { %v632_v28 = vadd.f32 %v631_v24, %v2449_v1  ;;  %v810_v30 = vmax.f32 %v583_v23, 0.0  ;;  %731 = vmatmul.bf16.gmra.mxu1 %v2419_v38  ;;  %v814_v38 = vmax.f32 %v488_v33, 0.0  ;;  %v815_v48 = vmax.f32 %v537_v35, 0.0 }
 0x119   :  { %v811_v32 = vmax.f32 %v632_v28, 0.0  ;;  %v2527_v57 = vpack.c.bf16 %v810_v30, %v804_v20 }
 0x11b   :  { %v2530_v34 = vpack.c.bf16 %v811_v32, %v805_v26  ;;  %v489_v37 = vpop.f32.mrf.mxu0 }
 0x11c   :  { %v490_v41 = vadd.f32 %v489_v37, %v2434_v49  ;;  %v538_v43 = vpop.f32.mrf.mxu1  ;;  %v585_v44 = vpop.f32.mrf.mxu2  ;;  %v2553_v37 = vperm.slane %v2431_v45, 4 }
 0x11d   :  { %v539_v46 = vadd.f32 %v538_v43, %v2438_v50  ;;  %v586_v53 = vadd.f32 %v585_v44, %v2446_v62  ;;  %v2558_v43 = vperm.slane %v2431_v45, 5 }
 0x11e   :  { %v634_v47 = vpop.f32.mrf.mxu3  ;;  %v820_v11 = vmax.f32 %v490_v41, 0.0 }
 0x11f   :  { %v821_v51 = vmax.f32 %v539_v46, 0.0  ;;  %v635_v55 = vadd.f32 %v634_v47, %v2449_v1  ;;  %v816_v36 = vmax.f32 %v586_v53, 0.0 }
 0x120   :  { %v874_v52 = vpack.c.bf16 %v820_v11, %v814_v38 }
 0x121   :  { %v875_v54 = vpack.c.bf16 %v821_v51, %v815_v48  ;;  %v817_v3 = vmax.f32 %v635_v55, 0.0 }
 0x122   :  { %1312 = vmatmul.bf16.gmra.mxu2 %v874_v52 }
 0x123   :  { %1361 = vmatmul.bf16.gmra.mxu3 %v875_v54  ;;  %v492_v58 = vpop.f32.mrf.mxu0 }
 0x124   :  { %v541_v60 = vpop.f32.mrf.mxu1  ;;  %v587_v61 = vpop.f32.mrf.mxu2  ;;  %v493_v2 = vadd.f32 %v492_v58, %v2434_v49  ;;  %v2572_v58 = vld [vmem:[%s2690_s4] ss:$0 sm:$0xff]  ;;  %s2334_s4 = smov [#allocation10]  }
 0x125   :  { %v588_v63 = vadd.f32 %v587_v61, %v2446_v62  ;;  %v542_v10 = vadd.f32 %v541_v60, %v2438_v50  ;;  %s1604_s15 = sshll.u32 %s2334_s4, 4  ;;  %s1605_s15 = int_to_ptr.vmem [resolvable:$true] %s1604_s15 }
 0x126   :  { %v636_v29 = vpop.f32.mrf.mxu3  ;;  %687 = vmatmul.bf16.gmra.mxu0 %v2425_v40  ;;  %v826_v21 = vmax.f32 %v493_v2, 0.0 }
 0x127   :  { %v637_v5 = vadd.f32 %v636_v29, %v2449_v1  ;;  %v822_v6 = vmax.f32 %v588_v63, 0.0  ;;  %736 = vmatmul.bf16.gmra.mxu1 %v2425_v40  ;;  %v827_v40 = vmax.f32 %v542_v10, 0.0 }
 0x129   :  { %v823_v7 = vmax.f32 %v637_v5, 0.0  ;;  %v2541_v8 = vpack.c.bf16 %v822_v6, %v816_v36 }
 0x12b   :  { %v2544_v9 = vpack.c.bf16 %v823_v7, %v817_v3  ;;  %v494_v12 = vpop.f32.mrf.mxu0 }
 0x12c   :  { %v495_v13 = vadd.f32 %v494_v12, %v2434_v49  ;;  %v543_v14 = vpop.f32.mrf.mxu1  ;;  %v590_v16 = vpop.f32.mrf.mxu2 }
 0x12d   :  { %v544_v18 = vadd.f32 %v543_v14, %v2438_v50  ;;  %v591_v24 = vadd.f32 %v590_v16, %v2446_v62 }
 0x12e   :  { %v639_v19 = vpop.f32.mrf.mxu3  ;;  %v832_v22 = vmax.f32 %v495_v13, 0.0 }
 0x12f   :  { %v833_v20 = vmax.f32 %v544_v18, 0.0  ;;  %v640_v28 = vadd.f32 %v639_v19, %v2449_v1  ;;  %v828_v32 = vmax.f32 %v591_v24, 0.0 }
 0x130   :  { %v880_v23 = vpack.c.bf16 %v832_v22, %v826_v21 }
 0x131   :  { %v881_v26 = vpack.c.bf16 %v833_v20, %v827_v40  ;;  %v829_v35 = vmax.f32 %v640_v28, 0.0 }
 0x132   :  { %1317 = vmatmul.bf16.gmra.mxu2 %v880_v23 }
 0x133   :  { %1366 = vmatmul.bf16.gmra.mxu3 %v881_v26  ;;  %v653_v30 = vpop.f32.mrf.mxu0 }
 0x134   :  { %v702_v31 = vpop.f32.mrf.mxu1  ;;  %v592_v49 = vpop.f32.mrf.mxu2 }
 0x135   :  { %v593_v33 = vadd.f32 %v592_v49, %v2446_v62  ;;  %v654_v62 = vadd.f32 %v653_v30, %v2553_v37  ;;  %v703_v11 = vadd.f32 %v702_v31, %v2558_v43 }
 0x136   :  { %v641_v50 = vpop.f32.mrf.mxu3  ;;  %1380 = vmatmul.bf16.vlgmr.msra.gmra.mxu0 %v2457_v25 }
 0x137   :  { %v642_v41 = vadd.f32 %v641_v50, %v2449_v1  ;;  %v834_v44 = vmax.f32 %v593_v33, 0.0  ;;  %1429 = vmatmul.bf16.vlgmr.msra.gmra.mxu1 %v2460_v27  ;;  %v746_v45 = vmax.f32 %v654_v62, 0.0  ;;  %v747_v53 = vmax.f32 %v703_v11, 0.0 }
 0x139   :  { %v835_v46 = vmax.f32 %v642_v41, 0.0  ;;  %v2561_v47 = vpack.c.bf16 %v834_v44, %v828_v32 }
 0x13b   :  { %v2564_v38 = vpack.c.bf16 %v835_v46, %v829_v35  ;;  %v655_v48 = vpop.f32.mrf.mxu0 }
 0x13c   :  { %v656_v25 = vadd.f32 %v655_v48, %v2553_v37  ;;  %v704_v51 = vpop.f32.mrf.mxu1 }
 0x13d   :  { %v705_v1 = vadd.f32 %v704_v51, %v2558_v43 }
 0x13e   :  { %v752_v52 = vmax.f32 %v656_v25, 0.0 }
 0x13f   :  { %v753_v54 = vmax.f32 %v705_v1, 0.0 }
 0x140   :  { %v842_v27 = vpack.c.bf16 %v752_v52, %v746_v45 }
 0x141   :  { %v843_v55 = vpack.c.bf16 %v753_v54, %v747_v53 }
 0x142   :  { %1478 = vmatmul.bf16.vlgmr.msra.gmra.mxu2 %v842_v27 }
 0x143   :  { %1527 = vmatmul.bf16.vlgmr.msra.gmra.mxu3 %v843_v55  ;;  %v658_v60 = vpop.f32.mrf.mxu0 }
 0x144   :  { %v707_v61 = vpop.f32.mrf.mxu1  ;;  %v659_v5 = vadd.f32 %v658_v60, %v2553_v37 }
 0x145   :  { %v1283_v36 = vpop.f32.mrf.mxu2  ;;  %v708_v6 = vadd.f32 %v707_v61, %v2558_v43 }
 0x146   :  { %v1284_v63 = vadd.f32 %v2572_v58, %v1283_v36  ;;  %v1332_v29 = vpop.f32.mrf.mxu3  ;;  %1385 = vmatmul.bf16.gmra.mxu0 %v2471_v0  ;;  %v758_v14 = vmax.f32 %v659_v5, 0.0 }
 0x147   :  { %1434 = vmatmul.bf16.gmra.mxu1 %v2474_v4  ;;  %v759_v19 = vmax.f32 %v708_v6, 0.0 }
 0x148   :  { %v2577_v3 = vadd.f32 %v1332_v29, %v1284_v63 }
 0x14b   :  { %v660_v7 = vpop.f32.mrf.mxu0 }
 0x14c   :  { %v661_v2 = vadd.f32 %v660_v7, %v2553_v37  ;;  %v709_v10 = vpop.f32.mrf.mxu1 }
 0x14d   :  { %v710_v12 = vadd.f32 %v709_v10, %v2558_v43  ;;  %v1285_v13 = vpop.f32.mrf.mxu2 }
 0x14e   :  { %v764_v16 = vmax.f32 %v661_v2, 0.0  ;;  %v1286_v18 = vadd.f32 %v2572_v58, %v1285_v13  ;;  %v1334_v0 = vpop.f32.mrf.mxu3 }
 0x14f   :  { %v765_v4 = vmax.f32 %v710_v12, 0.0 }
 0x150   :  { %v2584_v21 = vadd.f32 %v1334_v0, %v1286_v18  ;;  %v848_v22 = vpack.c.bf16 %v764_v16, %v758_v14 }
 0x151   :  { %v849_v40 = vpack.c.bf16 %v765_v4, %v759_v19 }
 0x152   :  { %1483 = vmatmul.bf16.gmra.mxu2 %v848_v22 }
 0x153   :  { %1532 = vmatmul.bf16.gmra.mxu3 %v849_v40  ;;  %v663_v20 = vpop.f32.mrf.mxu0 }
 0x154   :  { %v712_v23 = vpop.f32.mrf.mxu1  ;;  %v664_v31 = vadd.f32 %v663_v20, %v2553_v37 }
 0x155   :  { %v1288_v24 = vpop.f32.mrf.mxu2  ;;  %v713_v49 = vadd.f32 %v712_v23, %v2558_v43 }
 0x156   :  { %v1289_v26 = vadd.f32 %v2572_v58, %v1288_v24  ;;  %v1337_v28 = vpop.f32.mrf.mxu3  ;;  %1390 = vmatmul.bf16.gmra.mxu0 %v2485_v39  ;;  %v770_v44 = vmax.f32 %v664_v31, 0.0 }
 0x157   :  { %1439 = vmatmul.bf16.gmra.mxu1 %v2488_v42  ;;  %v771_v11 = vmax.f32 %v713_v49, 0.0 }
 0x158   :  { %v2589_v30 = vadd.f32 %v1337_v28, %v1289_v26 }
 0x15b   :  { %v665_v32 = vpop.f32.mrf.mxu0 }
 0x15c   :  { %v666_v33 = vadd.f32 %v665_v32, %v2553_v37  ;;  %v714_v50 = vpop.f32.mrf.mxu1 }
 0x15d   :  { %v715_v35 = vadd.f32 %v714_v50, %v2558_v43  ;;  %v1290_v41 = vpop.f32.mrf.mxu2 }
 0x15e   :  { %v776_v46 = vmax.f32 %v666_v33, 0.0  ;;  %v1291_v62 = vadd.f32 %v2572_v58, %v1290_v41  ;;  %v1339_v39 = vpop.f32.mrf.mxu3 }
 0x15f   :  { %v777_v42 = vmax.f32 %v715_v35, 0.0 }
 0x160   :  { %v2596_v48 = vadd.f32 %v1339_v39, %v1291_v62  ;;  %v854_v25 = vpack.c.bf16 %v776_v46, %v770_v44 }
 0x161   :  { %v855_v51 = vpack.c.bf16 %v777_v42, %v771_v11 }
 0x162   :  { %1488 = vmatmul.bf16.gmra.mxu2 %v854_v25 }
 0x163   :  { %1537 = vmatmul.bf16.gmra.mxu3 %v855_v51  ;;  %v668_v1 = vpop.f32.mrf.mxu0 }
 0x164   :  { %v717_v45 = vpop.f32.mrf.mxu1  ;;  %v669_v55 = vadd.f32 %v668_v1, %v2553_v37 }
 0x165   :  { %v1293_v52 = vpop.f32.mrf.mxu2  ;;  %v718_v60 = vadd.f32 %v717_v45, %v2558_v43 }
 0x166   :  { %v1294_v53 = vadd.f32 %v2572_v58, %v1293_v52  ;;  %v1342_v54 = vpop.f32.mrf.mxu3  ;;  %1395 = vmatmul.bf16.gmra.mxu0 %v2499_v15  ;;  %v782_v6 = vmax.f32 %v669_v55, 0.0 }
 0x167   :  { %1444 = vmatmul.bf16.gmra.mxu1 %v2502_v17  ;;  %v783_v10 = vmax.f32 %v718_v60, 0.0 }
 0x168   :  { %v2601_v27 = vadd.f32 %v1342_v54, %v1294_v53 }
 0x16b   :  { %v670_v61 = vpop.f32.mrf.mxu0 }
 0x16c   :  { %v671_v36 = vadd.f32 %v670_v61, %v2553_v37  ;;  %v719_v63 = vpop.f32.mrf.mxu1 }
 0x16d   :  { %v720_v29 = vadd.f32 %v719_v63, %v2558_v43  ;;  %v1295_v5 = vpop.f32.mrf.mxu2 }
 0x16e   :  { %v788_v7 = vmax.f32 %v671_v36, 0.0  ;;  %v1296_v2 = vadd.f32 %v2572_v58, %v1295_v5  ;;  %v1344_v15 = vpop.f32.mrf.mxu3 }
 0x16f   :  { %v789_v17 = vmax.f32 %v720_v29, 0.0 }
 0x170   :  { %v2608_v12 = vadd.f32 %v1344_v15, %v1296_v2  ;;  %v860_v13 = vpack.c.bf16 %v788_v7, %v782_v6 }
 0x171   :  { %v861_v14 = vpack.c.bf16 %v789_v17, %v783_v10 }
 0x172   :  { %1493 = vmatmul.bf16.gmra.mxu2 %v860_v13 }
 0x173   :  { %1542 = vmatmul.bf16.gmra.mxu3 %v861_v14  ;;  %v673_v16 = vpop.f32.mrf.mxu0 }
 0x174   :  { %v722_v18 = vpop.f32.mrf.mxu1  ;;  %v674_v40 = vadd.f32 %v673_v16, %v2553_v37 }
 0x175   :  { %v1298_v0 = vpop.f32.mrf.mxu2  ;;  %v723_v20 = vadd.f32 %v722_v18, %v2558_v43 }
 0x176   :  { %v1299_v19 = vadd.f32 %v2572_v58, %v1298_v0  ;;  %v1347_v4 = vpop.f32.mrf.mxu3  ;;  %1400 = vmatmul.bf16.gmra.mxu0 %v2513_v56  ;;  %v794_v49 = vmax.f32 %v674_v40, 0.0 }
 0x177   :  { %1449 = vmatmul.bf16.gmra.mxu1 %v2516_v59  ;;  %v795_v50 = vmax.f32 %v723_v20, 0.0 }
 0x178   :  { %v2613_v22 = vadd.f32 %v1347_v4, %v1299_v19 }
 0x17b   :  { %v675_v23 = vpop.f32.mrf.mxu0 }
 0x17c   :  { %v676_v24 = vadd.f32 %v675_v23, %v2553_v37  ;;  %v724_v26 = vpop.f32.mrf.mxu1 }
 0x17d   :  { %v725_v28 = vadd.f32 %v724_v26, %v2558_v43  ;;  %v1300_v31 = vpop.f32.mrf.mxu2 }
 0x17e   :  { %v800_v32 = vmax.f32 %v676_v24, 0.0  ;;  %v1301_v33 = vadd.f32 %v2572_v58, %v1300_v31  ;;  %v1349_v56 = vpop.f32.mrf.mxu3 }
 0x17f   :  { %v801_v59 = vmax.f32 %v725_v28, 0.0 }
 0x180   :  { %v866_v35 = vpack.c.bf16 %v800_v32, %v794_v49  ;;  %v2620_v41 = vadd.f32 %v1349_v56, %v1301_v33 }
 0x181   :  { %v867_v44 = vpack.c.bf16 %v801_v59, %v795_v50 }
 0x182   :  { %1498 = vmatmul.bf16.gmra.mxu2 %v866_v35 }
 0x183   :  { %1547 = vmatmul.bf16.gmra.mxu3 %v867_v44  ;;  %v678_v46 = vpop.f32.mrf.mxu0 }
 0x184   :  { %v727_v62 = vpop.f32.mrf.mxu1  ;;  %v679_v51 = vadd.f32 %v678_v46, %v2553_v37 }
 0x185   :  { %v1303_v39 = vpop.f32.mrf.mxu2  ;;  %v728_v1 = vadd.f32 %v727_v62, %v2558_v43 }
 0x186   :  { %v1304_v11 = vadd.f32 %v2572_v58, %v1303_v39  ;;  %v1352_v42 = vpop.f32.mrf.mxu3  ;;  %1405 = vmatmul.bf16.gmra.mxu0 %v2527_v57  ;;  %v806_v60 = vmax.f32 %v679_v51, 0.0 }
 0x187   :  { %1454 = vmatmul.bf16.gmra.mxu1 %v2530_v34  ;;  %v807_v63 = vmax.f32 %v728_v1, 0.0 }
 0x188   :  { %v2625_v25 = vadd.f32 %v1352_v42, %v1304_v11 }
 0x18b   :  { %v680_v45 = vpop.f32.mrf.mxu0 }
 0x18c   :  { %v681_v52 = vadd.f32 %v680_v45, %v2553_v37  ;;  %v729_v53 = vpop.f32.mrf.mxu1 }
 0x18d   :  { %v730_v54 = vadd.f32 %v729_v53, %v2558_v43  ;;  %v1305_v55 = vpop.f32.mrf.mxu2 }
 0x18e   :  { %v812_v61 = vmax.f32 %v681_v52, 0.0  ;;  %v1306_v36 = vadd.f32 %v2572_v58, %v1305_v55  ;;  %v1354_v57 = vpop.f32.mrf.mxu3 }
 0x18f   :  { %v813_v34 = vmax.f32 %v730_v54, 0.0 }
 0x190   :  { %v872_v29 = vpack.c.bf16 %v812_v61, %v806_v60  ;;  %v2632_v5 = vadd.f32 %v1354_v57, %v1306_v36 }
 0x191   :  { %v873_v6 = vpack.c.bf16 %v813_v34, %v807_v63 }
 0x192   :  { %1503 = vmatmul.bf16.gmra.mxu2 %v872_v29 }
 0x193   :  { %1552 = vmatmul.bf16.gmra.mxu3 %v873_v6  ;;  %v683_v7 = vpop.f32.mrf.mxu0 }
 0x194   :  { %v732_v2 = vpop.f32.mrf.mxu1  ;;  %v684_v14 = vadd.f32 %v683_v7, %v2553_v37 }
 0x195   :  { %v1308_v15 = vpop.f32.mrf.mxu2  ;;  %v733_v16 = vadd.f32 %v732_v2, %v2558_v43 }
 0x196   :  { %v1309_v10 = vadd.f32 %v2572_v58, %v1308_v15  ;;  %v1357_v17 = vpop.f32.mrf.mxu3  ;;  %1410 = vmatmul.bf16.gmra.mxu0 %v2541_v8  ;;  %v818_v20 = vmax.f32 %v684_v14, 0.0 }
 0x197   :  { %1459 = vmatmul.bf16.gmra.mxu1 %v2544_v9  ;;  %v819_v26 = vmax.f32 %v733_v16, 0.0 }
 0x198   :  { %v2637_v13 = vadd.f32 %v1357_v17, %v1309_v10 }
 0x19b   :  { %v685_v18 = vpop.f32.mrf.mxu0 }
 0x19c   :  { %v686_v0 = vadd.f32 %v685_v18, %v2553_v37  ;;  %v734_v19 = vpop.f32.mrf.mxu1 }
 0x19d   :  { %v735_v4 = vadd.f32 %v734_v19, %v2558_v43  ;;  %v1310_v40 = vpop.f32.mrf.mxu2 }
 0x19e   :  { %v824_v23 = vmax.f32 %v686_v0, 0.0  ;;  %v1311_v24 = vadd.f32 %v2572_v58, %v1310_v40  ;;  %v1359_v8 = vpop.f32.mrf.mxu3 }
 0x19f   :  { %v825_v9 = vmax.f32 %v735_v4, 0.0 }
 0x1a0   :  { %v878_v28 = vpack.c.bf16 %v824_v23, %v818_v20  ;;  %v2644_v31 = vadd.f32 %v1359_v8, %v1311_v24 }
 0x1a1   :  { %v879_v49 = vpack.c.bf16 %v825_v9, %v819_v26 }
 0x1a2   :  { %1508 = vmatmul.bf16.gmra.mxu2 %v878_v28 }
 0x1a3   :  { %1557 = vmatmul.bf16.gmra.mxu3 %v879_v49  ;;  %v688_v32 = vpop.f32.mrf.mxu0 }
 0x1a4   :  { %v737_v33 = vpop.f32.mrf.mxu1  ;;  %v689_v44 = vadd.f32 %v688_v32, %v2553_v37 }
 0x1a5   :  { %v1313_v56 = vpop.f32.mrf.mxu2  ;;  %v738_v46 = vadd.f32 %v737_v33, %v2558_v43 }
 0x1a6   :  { %v1314_v50 = vadd.f32 %v2572_v58, %v1313_v56  ;;  %v1362_v59 = vpop.f32.mrf.mxu3  ;;  %1415 = vmatmul.bf16.gmra.mxu0 %v2561_v47  ;;  %v830_v1 = vmax.f32 %v689_v44, 0.0 }
 0x1a7   :  { %1464 = vmatmul.bf16.gmra.mxu1 %v2564_v38  ;;  %v831_v53 = vmax.f32 %v738_v46, 0.0 }
 0x1a8   :  { %v2649_v35 = vadd.f32 %v1362_v59, %v1314_v50 }
 0x1ab   :  { %v690_v62 = vpop.f32.mrf.mxu0 }
 0x1ac   :  { %v691_v39 = vadd.f32 %v690_v62, %v2553_v37  ;;  %v739_v11 = vpop.f32.mrf.mxu1 }
 0x1ad   :  { %v740_v42 = vadd.f32 %v739_v11, %v2558_v43  ;;  %v1315_v51 = vpop.f32.mrf.mxu2 }
 0x1ae   :  { %v836_v45 = vmax.f32 %v691_v39, 0.0  ;;  %v1316_v52 = vadd.f32 %v2572_v58, %v1315_v51  ;;  %v1364_v47 = vpop.f32.mrf.mxu3 }
 0x1af   :  { %v837_v38 = vmax.f32 %v740_v42, 0.0 }
 0x1b0   :  { %v884_v54 = vpack.c.bf16 %v836_v45, %v830_v1  ;;  %v2656_v55 = vadd.f32 %v1364_v47, %v1316_v52 }
 0x1b1   :  { %v885_v60 = vpack.c.bf16 %v837_v38, %v831_v53 }
 0x1b2   :  { %1513 = vmatmul.bf16.gmra.mxu2 %v884_v54 }
 0x1b3   :  { %1562 = vmatmul.bf16.gmra.mxu3 %v885_v60  ;;  %v1381_v61 = vpop.f32.mrf.mxu0 }
 0x1b4   :  { %v1430_v36 = vpop.f32.mrf.mxu1  ;;  %v1382_v16 = vadd.f32 %v1381_v61, %v2577_v3 }
 0x1b5   :  { %v1318_v37 = vpop.f32.mrf.mxu2 }
 0x1b6   :  { %v1319_v57 = vadd.f32 %v2572_v58, %v1318_v37  ;;  %v1367_v43 = vpop.f32.mrf.mxu3  ;;  %v1431_v19 = vadd.f32 %v1430_v36, %v1382_v16 }
 0x1b8   :  { %v2659_v63 = vadd.f32 %v1367_v43, %v1319_v57 }
 0x1bb   :  { %v1383_v34 = vpop.f32.mrf.mxu0 }
 0x1bc   :  { %v1432_v29 = vpop.f32.mrf.mxu1  ;;  %v1384_v0 = vadd.f32 %v1383_v34, %v2584_v21 }
 0x1bd   :  { %v1320_v6 = vpop.f32.mrf.mxu2 }
 0x1be   :  { %v1321_v7 = vadd.f32 %v2572_v58, %v1320_v6  ;;  %v1369_v2 = vpop.f32.mrf.mxu3  ;;  %v1433_v40 = vadd.f32 %v1432_v29, %v1384_v0 }
 0x1c0   :  { %v2662_v15 = vadd.f32 %v1369_v2, %v1321_v7 }
 0x1c3   :  { %v1386_v10 = vpop.f32.mrf.mxu0 }
 0x1c4   :  { %v1435_v17 = vpop.f32.mrf.mxu1  ;;  %v1387_v3 = vadd.f32 %v1386_v10, %v2589_v30 }
 0x1c5   :  { %v1479_v14 = vpop.f32.mrf.mxu2 }
 0x1c6   :  { %v1528_v18 = vpop.f32.mrf.mxu3  ;;  %v1480_v20 = vadd.f32 %v1479_v14, %v1431_v19  ;;  %v1436_v50 = vadd.f32 %v1435_v17, %v1387_v3 }
 0x1c8   :  { %v1529_v58 = vadd.f32 %v1528_v18, %v1480_v20 }
 0x1cb   :  { %v1388_v4 = vpop.f32.mrf.mxu0 }
 0x1cc   :  { %v1437_v23 = vpop.f32.mrf.mxu1  ;;  %v1389_v21 = vadd.f32 %v1388_v4, %v2596_v48 }
 0x1cd   :  { %v1481_v24 = vpop.f32.mrf.mxu2 }
 0x1ce   :  { %v1482_v8 = vadd.f32 %v1481_v24, %v1433_v40  ;;  %v1530_v26 = vpop.f32.mrf.mxu3  ;;  %v1438_v44 = vadd.f32 %v1437_v23, %v1389_v21 }
 0x1d0   :  { %v1531_v9 = vadd.f32 %v1530_v26, %v1482_v8 }
 0x1d2   :  { %v2144_v28 = vpack.c.bf16 %v1531_v9, %v1529_v58 }
 0x1d3   :  { %v1391_v49 = vpop.f32.mrf.mxu0 }
 0x1d4   :  { %2145 = vst [vmem:[#allocation10] sm:$0xff] %v2144_v28   ;;  %v1440_v32 = vpop.f32.mrf.mxu1  ;;  %v1392_v30 = vadd.f32 %v1391_v49, %v2601_v27 }
 0x1d5   :  { %v1484_v33 = vpop.f32.mrf.mxu2 }
 0x1d6   :  { %v1533_v56 = vpop.f32.mrf.mxu3  ;;  %v1485_v46 = vadd.f32 %v1484_v33, %v1436_v50  ;;  %v1441_v54 = vadd.f32 %v1440_v32, %v1392_v30 }
 0x1d8   :  { %v1534_v51 = vadd.f32 %v1533_v56, %v1485_v46 }
 0x1db   :  { %v1393_v59 = vpop.f32.mrf.mxu0 }
 0x1dc   :  { %v1442_v62 = vpop.f32.mrf.mxu1  ;;  %v1394_v48 = vadd.f32 %v1393_v59, %v2608_v12 }
 0x1dd   :  { %v1486_v39 = vpop.f32.mrf.mxu2 }
 0x1de   :  { %v1487_v11 = vadd.f32 %v1486_v39, %v1438_v44  ;;  %v1535_v42 = vpop.f32.mrf.mxu3  ;;  %v1443_v61 = vadd.f32 %v1442_v62, %v1394_v48 }
 0x1e0   :  { %v1536_v1 = vadd.f32 %v1535_v42, %v1487_v11 }
 0x1e2   :  { %v2149_v45 = vpack.c.bf16 %v1536_v1, %v1534_v51 }
 0x1e3   :  { %v1396_v52 = vpop.f32.mrf.mxu0 }
 0x1e4   :  { %2181 = vst [vmem:[#allocation10 + $0x8] sm:$0xff] %v2149_v45   ;;  %v1445_v47 = vpop.f32.mrf.mxu1  ;;  %v1397_v27 = vadd.f32 %v1396_v52, %v2613_v22 }
 0x1e5   :  { %v1489_v53 = vpop.f32.mrf.mxu2 }
 0x1e6   :  { %v1538_v38 = vpop.f32.mrf.mxu3  ;;  %v1490_v36 = vadd.f32 %v1489_v53, %v1441_v54  ;;  %v1446_v16 = vadd.f32 %v1445_v47, %v1397_v27 }
 0x1e8   :  { %v1539_v29 = vadd.f32 %v1538_v38, %v1490_v36 }
 0x1eb   :  { %v1398_v60 = vpop.f32.mrf.mxu0 }
 0x1ec   :  { %v1447_v37 = vpop.f32.mrf.mxu1  ;;  %v1399_v12 = vadd.f32 %v1398_v60, %v2620_v41 }
 0x1ed   :  { %v1491_v57 = vpop.f32.mrf.mxu2 }
 0x1ee   :  { %v1492_v43 = vadd.f32 %v1491_v57, %v1443_v61  ;;  %v1540_v34 = vpop.f32.mrf.mxu3  ;;  %v1448_v0 = vadd.f32 %v1447_v37, %v1399_v12 }
 0x1f0   :  { %v1541_v6 = vadd.f32 %v1540_v34, %v1492_v43 }
 0x1f2   :  { %v2154_v7 = vpack.c.bf16 %v1541_v6, %v1539_v29 }
 0x1f3   :  { %v1401_v2 = vpop.f32.mrf.mxu0 }
 0x1f4   :  { %2182 = vst [vmem:[#allocation10 + $0x10] sm:$0xff] %v2154_v7   ;;  %v1450_v10 = vpop.f32.mrf.mxu1  ;;  %v1402_v28 = vadd.f32 %v1401_v2, %v2625_v25 }
 0x1f5   :  { %v1494_v17 = vpop.f32.mrf.mxu2 }
 0x1f6   :  { %v1543_v14 = vpop.f32.mrf.mxu3  ;;  %v1495_v19 = vadd.f32 %v1494_v17, %v1446_v16  ;;  %v1451_v32 = vadd.f32 %v1450_v10, %v1402_v28 }
 0x1f8   :  { %v1544_v24 = vadd.f32 %v1543_v14, %v1495_v19 }
 0x1fb   :  { %v1403_v18 = vpop.f32.mrf.mxu0 }
 0x1fc   :  { %v1452_v23 = vpop.f32.mrf.mxu1  ;;  %v1404_v49 = vadd.f32 %v1403_v18, %v2632_v5 }
 0x1fd   :  { %v1496_v4 = vpop.f32.mrf.mxu2 }
 0x1fe   :  { %v1497_v40 = vadd.f32 %v1496_v4, %v1448_v0  ;;  %v1545_v20 = vpop.f32.mrf.mxu3  ;;  %v1453_v33 = vadd.f32 %v1452_v23, %v1404_v49 }
 0x200   :  { %v1546_v8 = vadd.f32 %v1545_v20, %v1497_v40 }
 0x202   :  { %v2159_v26 = vpack.c.bf16 %v1546_v8, %v1544_v24 }
 0x203   :  { %v1406_v58 = vpop.f32.mrf.mxu0 }
 0x204   :  { %2183 = vst [vmem:[#allocation10 + $0x18] sm:$0xff] %v2159_v26   ;;  %v1455_v41 = vpop.f32.mrf.mxu1  ;;  %v1407_v42 = vadd.f32 %v1406_v58, %v2637_v13 }
 0x205   :  { %v1499_v9 = vpop.f32.mrf.mxu2 }
 0x206   :  { %v1548_v22 = vpop.f32.mrf.mxu3  ;;  %v1500_v3 = vadd.f32 %v1499_v9, %v1451_v32  ;;  %v1456_v1 = vadd.f32 %v1455_v41, %v1407_v42 }
 0x208   :  { %v1549_v44 = vadd.f32 %v1548_v22, %v1500_v3 }
 0x20b   :  { %v1408_v56 = vpop.f32.mrf.mxu0 }
 0x20c   :  { %v1457_v39 = vpop.f32.mrf.mxu1  ;;  %v1409_v5 = vadd.f32 %v1408_v56, %v2644_v31 }
 0x20d   :  { %v1501_v21 = vpop.f32.mrf.mxu2 }
 0x20e   :  { %v1502_v50 = vadd.f32 %v1501_v21, %v1453_v33  ;;  %v1550_v59 = vpop.f32.mrf.mxu3  ;;  %v1458_v45 = vadd.f32 %v1457_v39, %v1409_v5 }
 0x210   :  { %v1551_v46 = vadd.f32 %v1550_v59, %v1502_v50 }
 0x212   :  { %v2164_v62 = vpack.c.bf16 %v1551_v46, %v1549_v44 }
 0x213   :  { %v1411_v51 = vpop.f32.mrf.mxu0 }
 0x214   :  { %2184 = vst [vmem:[#allocation10 + $0x20] sm:$0xff] %v2164_v62   ;;  %v1460_v47 = vpop.f32.mrf.mxu1  ;;  %v1412_v37 = vadd.f32 %v1411_v51, %v2649_v35 }
 0x215   :  { %v1504_v11 = vpop.f32.mrf.mxu2 }
 0x216   :  { %v1553_v25 = vpop.f32.mrf.mxu3  ;;  %v1505_v52 = vadd.f32 %v1504_v11, %v1456_v1  ;;  %v1461_v31 = vadd.f32 %v1460_v47, %v1412_v37 }
 0x218   :  { %v1554_v48 = vadd.f32 %v1553_v25, %v1505_v52 }
 0x21b   :  { %v1413_v60 = vpop.f32.mrf.mxu0 }
 0x21c   :  { %v1462_v57 = vpop.f32.mrf.mxu1  ;;  %v1414_v43 = vadd.f32 %v1413_v60, %v2656_v55 }
 0x21d   :  { %v1506_v53 = vpop.f32.mrf.mxu2 }
 0x21e   :  { %v1507_v30 = vadd.f32 %v1506_v53, %v1458_v45  ;;  %v1555_v38 = vpop.f32.mrf.mxu3  ;;  %v1463_v29 = vadd.f32 %v1462_v57, %v1414_v43 }
 0x220   :  { %v1556_v54 = vadd.f32 %v1555_v38, %v1507_v30 }
 0x222   :  { %v2169_v61 = vpack.c.bf16 %v1556_v54, %v1554_v48 }
 0x223   :  { %v1416_v34 = vpop.f32.mrf.mxu0 }
 0x224   :  { %2185 = vst [vmem:[#allocation10 + $0x28] sm:$0xff] %v2169_v61   ;;  %v1465_v14 = vpop.f32.mrf.mxu1  ;;  %v1417_v35 = vadd.f32 %v1416_v34, %v2659_v63 }
 0x225   :  { %v1509_v36 = vpop.f32.mrf.mxu2 }
 0x226   :  { %v1558_v13 = vpop.f32.mrf.mxu3  ;;  %v1510_v6 = vadd.f32 %v1509_v36, %v1461_v31  ;;  %v1466_v55 = vadd.f32 %v1465_v14, %v1417_v35 }
 0x228   :  { %v1559_v17 = vadd.f32 %v1558_v13, %v1510_v6 }
 0x22b   :  { %v1418_v16 = vpop.f32.mrf.mxu0 }
 0x22c   :  { %v1419_v19 = vadd.f32 %v1418_v16, %v2662_v15  ;;  %v1467_v4 = vpop.f32.mrf.mxu1 }
 0x22d   :  { %v1511_v7 = vpop.f32.mrf.mxu2 }
 0x22e   :  { %v1512_v2 = vadd.f32 %v1511_v7, %v1463_v29  ;;  %v1560_v10 = vpop.f32.mrf.mxu3  ;;  %v1468_v40 = vadd.f32 %v1467_v4, %v1419_v19 }
 0x230   :  { %v1561_v27 = vadd.f32 %v1560_v10, %v1512_v2 }
 0x232   :  { %v2174_v12 = vpack.c.bf16 %v1561_v27, %v1559_v17 }
 0x234   :  { %2186 = vst [vmem:[#allocation10 + $0x30] sm:$0xff] %v2174_v12  }
 0x235   :  { %v1514_v18 = vpop.f32.mrf.mxu2 }
 0x236   :  { %v1563_v0 = vpop.f32.mrf.mxu3  ;;  %v1515_v20 = vadd.f32 %v1514_v18, %v1466_v55 }
 0x238   :  { %v1564_v26 = vadd.f32 %v1563_v0, %v1515_v20 }
 0x23d   :  { %v1516_v23 = vpop.f32.mrf.mxu2 }
 0x23e   :  { %v1517_v24 = vadd.f32 %v1516_v23, %v1468_v40  ;;  %v1565_v8 = vpop.f32.mrf.mxu3 }
 0x240   :  { %v1566_v58 = vadd.f32 %v1565_v8, %v1517_v24 }
 0x242   :  { %v2179_v9 = vpack.c.bf16 %v1566_v58, %v1564_v26 }
 0x244   :  { %2187 = vst [vmem:[#allocation10 + $0x38] sm:$0xff] %v2179_v9  }
 0x245   :  { %1612 = dma.vmem_to_hbm [thread:$0]  %s1605_s15, 1024, %s1607_s18, [#allocation4], %s2330_s30, %s2330_s30, %s2331_s6  }
 0x246   :  { %2324 = dma.done.wait [#allocation4], 1024  }
 0x247   :  { %2325 = vsyncadd [#allocation4], 4294966272 }
 0x248   :  { %1617 = vsyncpa [#allocation3], 1 }
 0x249   :  { %1618 = vsyncpa [#allocation6], 1 }
 0x24a   :  { %1619 = vsyncpa [#allocation9], 1 }
 0x24b   :  { %1620 = vsyncpa [#allocation4], 1 }

</bundles_post_ra>
